<compile_context>
chip_gen: v7x
topology: tpu7x:2x2x1
jax: 0.10.0
libtpu: 0.0.40
codegen_flags: <defaults>
</compile_context>

<pallas_src>
import numpy as np
import jax
import jax.numpy as jnp
from jax import lax
from jax.experimental import pallas as pl
from jax.experimental.pallas import tpu as pltpu

EPS = 1e-5  # torch.nn.GroupNorm default eps


# ----------------------------- Pallas kernel ------------------------------- #
def _make_odefunc_kernel(img_w, HW, C):
    taps = [(dy, dx) for dy in (-1, 0, 1) for dx in (-1, 0, 1)]
    # want result[h] = x[h + off] (off = dy*W+dx); jnp/pltpu roll: shift = -off
    shifts = [(-(dy * img_w + dx)) % HW for dy, dx in taps]

    def kernel(v_ref, m_ref, w1_ref, b1_ref, w2_ref, b2_ref, gb_ref, o_ref):
        masks = m_ref[...]            # (9, HW) 0/1 boundary masks
        gb = gb_ref[...]              # (6, C, 1) packed gamma/beta

        def group_norm(x, idx):
            # groups == channels: per-(sample, channel) stats over HW (lanes),
            # exact f32 on the VPU/XLU -- no MXU, no relayout.
            g = gb[2 * idx]                                    # (C, 1)
            b = gb[2 * idx + 1]                                # (C, 1)
            mu = jnp.mean(x, axis=-1, keepdims=True)           # (TB, C, 1)
            cx = x - mu
            var = jnp.mean(cx * cx, axis=-1, keepdims=True)    # (TB, C, 1)
            return cx * lax.rsqrt(var + EPS) * g + b

        def conv3x3(x, w_ref, b_ref):
            # Per-tap accumulation (no im2col slab).  Spatial shift = lane roll
            # within each sample's own HW row (XLU) + boundary mask; channel
            # contraction = unrolled sublane-broadcast FMA against the
            # (cout, 1) weight column (VPU), accumulated in f32.
            w = w_ref[...]                                     # (9, Cin, Cout, 1)
            acc = jnp.broadcast_to(b_ref[...], x.shape)        # bias (+ folded t)
            for k, s in enumerate(shifts):
                xk = pltpu.roll(x, shift=s, axis=2) if s else x
                if k != 4:                                     # center tap: all-ones mask
                    xk = xk * masks[k:k + 1, :]
                for c in range(C):
                    # (TB,1,HW) * (Cout,1) -> broadcasts to (TB, Cout, HW)
                    acc = acc + xk[:, c:c + 1, :] * w[k, c]
            return acc

        out = group_norm(v_ref[...], 0)
        out = jnp.maximum(out, 0.0)
        out = conv3x3(out, w1_ref, b1_ref)
        out = group_norm(out, 1)
        out = jnp.maximum(out, 0.0)
        out = conv3x3(out, w2_ref, b2_ref)
        out = group_norm(out, 2)
        o_ref[...] = out

    return kernel


# ------------------------- hoisted (per-solve) prep ------------------------- #
def _pick_tb(B, cap=64):
    # >= 2 grid steps whenever B >= 2 (so "parallel" uses both v7x TCs); prefer
    # an exact divisor of B near the cap, else fall back to padding B.
    hi = max(1, min(B // 2, cap))
    for tb in range(hi, max(1, hi // 2) - 1, -1):
        if B % tb == 0:
            return tb
    return hi


def _vmem_limit_bytes(TB, C, HW):
    blk = TB * C * HW * 4                                     # one (TB,C,HW) f32 block
    consts = (9 * HW + 2 * C * HW + 2 * 9 * C * 128 + 6 * 128) * 4
    # in + out double-buffered, plus headroom for the kernel's streamed f32
    # temporaries (a handful of live (TB, C, HW) tiles), plus constants.
    need = 2 * 2 * blk + 16 * blk + consts + (2 << 20)
    return int(min(max(need, 8 << 20), 32 << 20))             # safe on v5e/v6e/v7x


def prepare_odefunc(params, C, H, W, B):
    """All t-independent host-side prep. Run once per ODE solve, not per step."""
    (g1, be1, w1, b1, g2, be2, w2, b2, g3, be3) = params
    HW = H * W
    assert min(32, C) == C, "kernel implements GroupNorm with groups == channels"
    # TODO(synk): general min(32, dim)-group GroupNorm for dim > 32.

    TB = _pick_tb(B)
    Bp = ((B + TB - 1) // TB) * TB          # pad batch instead of shrinking TB
    steps = Bp // TB

    taps = [(dy, dx) for dy in (-1, 0, 1) for dx in (-1, 0, 1)]
    hh, ww = np.divmod(np.arange(HW), W)
    masks_hw = np.stack([((hh + dy >= 0) & (hh + dy < H) &
                          (ww + dx >= 0) & (ww + dx < W)).astype(np.float32)
                         for dy, dx in taps])                   # (9, HW)
    masks = jnp.asarray(masks_hw)

    def rearrange(w):
        # torch layout (Cout, Cin+1, 3, 3); input channel 0 is the constant-t
        # channel.  -> (tap, Cin, Cout, 1) so w[k, cin] is a (Cout, 1) column.
        w = jnp.asarray(w, jnp.float32)
        w_sp = jnp.transpose(w[:, 1:], (2, 3, 1, 0)).reshape(9, C, C)
        return w_sp[..., None]

    def tproj(w):
        # conv contribution of the constant-t channel: t * (W_t_taps @ masks).
        wt = jnp.asarray(w, jnp.float32)[:, 0].reshape(C, 9)
        return wt @ jnp.asarray(masks_hw)                       # (Cout, HW)

    gb = jnp.stack([jnp.asarray(p, jnp.float32)
                    for p in (g1, be1, g2, be2, g3, be3)])[..., None]   # (6, C, 1)

    kernel = _make_odefunc_kernel(W, HW, C)

    def const_spec(shape):
        nd = len(shape)
        return pl.BlockSpec(shape, lambda i, nd=nd: (0,) * nd)

    call = pl.pallas_call(
        kernel,
        out_shape=jax.ShapeDtypeStruct((Bp, C, HW), jnp.float32),
        grid=(steps,),
        in_specs=[pl.BlockSpec((TB, C, HW), lambda i: (i, 0, 0)),  # v block
                  const_spec((9, HW)),          # boundary masks
                  const_spec((9, C, C, 1)),     # conv1 weights (tap, cin, cout, 1)
                  const_spec((C, HW)),          # conv1 bias (+ folded t channel)
                  const_spec((9, C, C, 1)),     # conv2 weights
                  const_spec((C, HW)),          # conv2 bias (+ folded t channel)
                  const_spec((6, C, 1))],       # packed gamma/beta
        out_specs=pl.BlockSpec((TB, C, HW), lambda i: (i, 0, 0)),
        compiler_params=pltpu.CompilerParams(
            dimension_semantics=("parallel",),
            vmem_limit_bytes=_vmem_limit_bytes(TB, C, HW)),
    )

    return dict(C=C, H=H, W=W, HW=HW, B=B, Bp=Bp, TB=TB,
                masks=masks, w1a=rearrange(w1), w2a=rearrange(w2),
                tproj1=tproj(w1), tproj2=tproj(w2),
                b1=jnp.asarray(b1, jnp.float32), b2=jnp.asarray(b2, jnp.float32),
                gb=gb, call=call)


# ------------------------------- per-step wrapper ---------------------------- #
def odefunc_forward(t, x, prep):
    """x: (2B, C, H, W) float32 NCHW. Returns (2B, C, H, W)."""
    C, H, W, HW = prep["C"], prep["H"], prep["W"], prep["HW"]
    B, Bp = prep["B"], prep["Bp"]
    assert x.shape == (2 * B, C, H, W)

    v = x[B:]                                   # (B, C, H, W)
    v3 = v.reshape(B, C, HW)                    # free view: no pad, no transpose
    if Bp != B:
        v3 = jnp.concatenate(
            [v3, jnp.zeros((Bp - B, C, HW), jnp.float32)], axis=0)

    # fold scalar t and the conv bias into one tiny (C, HW) bias per conv
    t32 = jnp.asarray(t, jnp.float32)
    bias1 = prep["b1"][:, None] + t32 * prep["tproj1"]
    bias2 = prep["b2"][:, None] + t32 * prep["tproj2"]

    out = prep["call"](v3, prep["masks"], prep["w1a"], bias1,
                       prep["w2a"], bias2, prep["gb"])          # (Bp, C, HW)
    out = out[:B].reshape(B, C, H, W)
    return jnp.concatenate([v, out], axis=0)


# --------------------------- pure-JAX reference ------------------------------ #
def ref_forward(t, x, params):
    (g1, be1, w1, b1, g2, be2, w2, b2, g3, be3) = params
    twoB = x.shape[0]
    B = twoB // 2
    v = x[B:]

    def gn(a, g, b):
        m = jnp.mean(a, axis=(2, 3), keepdims=True)
        var = jnp.mean((a - m) ** 2, axis=(2, 3), keepdims=True)
        return (a - m) * lax.rsqrt(var + EPS) * g[None, :, None, None] + b[None, :, None, None]

    def cc(tv, a, w, b):
        tt = jnp.full((a.shape[0], 1, a.shape[2], a.shape[3]), tv, a.dtype)
        at = jnp.concatenate([tt, a], axis=1)
        y = lax.conv_general_dilated(
            at, w, window_strides=(1, 1), padding=((1, 1), (1, 1)),
            dimension_numbers=("NCHW", "OIHW", "NCHW"),
            precision=lax.Precision.HIGHEST)
        return y + b[None, :, None, None]

    out = gn(v, g1, be1)
    out = jnp.maximum(out, 0.0)
    out = cc(t, out, w1, b1)
    out = gn(out, g2, be2)
    out = jnp.maximum(out, 0.0)
    out = cc(t, out, w2, b2)
    out = gn(out, g3, be3)
    return jnp.concatenate([v, out], axis=0)


# ------------------------------ parameter init ------------------------------- #
def init_params(key, C):
    fan_in = (C + 1) * 9
    bound = 1.0 / np.sqrt(fan_in)
    ks = jax.random.split(key, 10)
    w1 = jax.random.uniform(ks[0], (C, C + 1, 3, 3), jnp.float32, -bound, bound)
    b1 = jax.random.uniform(ks[1], (C,), jnp.float32, -bound, bound)
    w2 = jax.random.uniform(ks[2], (C, C + 1, 3, 3), jnp.float32, -bound, bound)
    b2 = jax.random.uniform(ks[3], (C,), jnp.float32, -bound, bound)
    g1 = 1.0 + 0.1 * jax.random.normal(ks[4], (C,), jnp.float32)
    be1 = 0.1 * jax.random.normal(ks[5], (C,), jnp.float32)
    g2 = 1.0 + 0.1 * jax.random.normal(ks[6], (C,), jnp.float32)
    be2 = 0.1 * jax.random.normal(ks[7], (C,), jnp.float32)
    g3 = 1.0 + 0.1 * jax.random.normal(ks[8], (C,), jnp.float32)
    be3 = 0.1 * jax.random.normal(ks[9], (C,), jnp.float32)
    return (g1, be1, w1, b1, g2, be2, w2, b2, g3, be3)


if __name__ == "__main__":
    key = jax.random.PRNGKey(0)
    kx, kp = jax.random.split(key)

    B, C, H, W = 2, 4, 16, 16          # half-batch B; full input stacks z and v
    x = jax.random.normal(kx, (2 * B, C, H, W), jnp.float32)
    t = jnp.float32(0.5)
    params = init_params(kp, C)

    prep = prepare_odefunc(params, C, H, W, B)   # hoisted: once per ODE solve
    y = odefunc_forward(t, x, prep)
    y = jax.block_until_ready(y)

    y_ref = ref_forward(t, x, params)
    np.testing.assert_allclose(np.asarray(y), np.asarray(y_ref),
                               atol=1e-3, rtol=1e-3)
    assert y.shape == x.shape
    print("KERNEL_OK")
</pallas_src>

<mosaic_0001>
module attributes {stable_mosaic.version = 11 : i64} {
  func.func @kernel(%arg0: i32, %arg1: memref<1x4x256xf32, #tpu.memory_space<vmem>>, %arg2: memref<9x256xf32, #tpu.memory_space<vmem>>, %arg3: memref<9x4x4x1xf32, #tpu.memory_space<vmem>>, %arg4: memref<4x256xf32, #tpu.memory_space<vmem>>, %arg5: memref<9x4x4x1xf32, #tpu.memory_space<vmem>>, %arg6: memref<4x256xf32, #tpu.memory_space<vmem>>, %arg7: memref<6x4x1xf32, #tpu.memory_space<vmem>>, %arg8: memref<1x4x256xf32, #tpu.memory_space<vmem>>) attributes {dimension_semantics = [#tpu.dimension_semantics<parallel>], iteration_bounds = array<i64: 2>, scalar_prefetch = 0 : i64, scratch_operands = 0 : i64, tpu.core_type = #tpu.core_type<tc>, window_params = [{transform_indices = @transform_0, window_bounds = array<i64: 1, 4, 256>}, {pipeline_mode = #tpu.pipeline_mode<synchronous>, transform_indices = @transform_1, window_bounds = array<i64: 9, 256>}, {pipeline_mode = #tpu.pipeline_mode<synchronous>, transform_indices = @transform_2, window_bounds = array<i64: 9, 4, 4, 1>}, {pipeline_mode = #tpu.pipeline_mode<synchronous>, transform_indices = @transform_3, window_bounds = array<i64: 4, 256>}, {pipeline_mode = #tpu.pipeline_mode<synchronous>, transform_indices = @transform_4, window_bounds = array<i64: 9, 4, 4, 1>}, {pipeline_mode = #tpu.pipeline_mode<synchronous>, transform_indices = @transform_5, window_bounds = array<i64: 4, 256>}, {pipeline_mode = #tpu.pipeline_mode<synchronous>, transform_indices = @transform_6, window_bounds = array<i64: 6, 4, 1>}, {transform_indices = @transform_7, window_bounds = array<i64: 1, 4, 256>}]} {
    %c0 = arith.constant 0 : index
    %c0_0 = arith.constant 0 : index
    %0 = vector.load %arg2[%c0, %c0_0] : memref<9x256xf32, #tpu.memory_space<vmem>>, vector<9x256xf32>
    %c0_1 = arith.constant 0 : index
    %c0_2 = arith.constant 0 : index
    %c0_3 = arith.constant 0 : index
    %1 = vector.load %arg7[%c0_1, %c0_2, %c0_3] : memref<6x4x1xf32, #tpu.memory_space<vmem>>, vector<6x4x1xf32>
    %c0_4 = arith.constant 0 : index
    %c0_5 = arith.constant 0 : index
    %c0_6 = arith.constant 0 : index
    %2 = vector.load %arg1[%c0_4, %c0_5, %c0_6] : memref<1x4x256xf32, #tpu.memory_space<vmem>>, vector<1x4x256xf32>
    %3 = vector.extract_strided_slice %1 {offsets = [0, 0, 0], sizes = [1, 4, 1], strides = [1, 1, 1]} : vector<6x4x1xf32> to vector<1x4x1xf32>
    %4 = vector.shape_cast %3 : vector<1x4x1xf32> to vector<4x1xf32>
    %5 = vector.extract_strided_slice %1 {offsets = [1, 0, 0], sizes = [1, 4, 1], strides = [1, 1, 1]} : vector<6x4x1xf32> to vector<1x4x1xf32>
    %6 = vector.shape_cast %5 : vector<1x4x1xf32> to vector<4x1xf32>
    %cst = arith.constant dense<0.000000e+00> : vector<1x4xf32>
    %7 = vector.multi_reduction <add>, %2, %cst [2] : vector<1x4x256xf32> to vector<1x4xf32>
    %8 = vector.shape_cast %7 : vector<1x4xf32> to vector<1x4x1xf32>
    %cst_7 = arith.constant 2.560000e+02 : f32
    %9 = vector.broadcast %cst_7 : f32 to vector<1x4x1xf32>
    %10 = arith.divf %8, %9 : vector<1x4x1xf32>
    %11 = vector.broadcast %10 : vector<1x4x1xf32> to vector<1x4x256xf32>
    %12 = arith.subf %2, %11 : vector<1x4x256xf32>
    %13 = arith.mulf %12, %12 : vector<1x4x256xf32>
    %cst_8 = arith.constant dense<0.000000e+00> : vector<1x4xf32>
    %14 = vector.multi_reduction <add>, %13, %cst_8 [2] : vector<1x4x256xf32> to vector<1x4xf32>
    %15 = vector.shape_cast %14 : vector<1x4xf32> to vector<1x4x1xf32>
    %cst_9 = arith.constant 2.560000e+02 : f32
    %16 = vector.broadcast %cst_9 : f32 to vector<1x4x1xf32>
    %17 = arith.divf %15, %16 : vector<1x4x1xf32>
    %cst_10 = arith.constant 9.99999974E-6 : f32
    %18 = vector.broadcast %cst_10 : f32 to vector<1x4x1xf32>
    %19 = arith.addf %17, %18 : vector<1x4x1xf32>
    %20 = math.rsqrt %19 : vector<1x4x1xf32>
    %21 = vector.broadcast %20 : vector<1x4x1xf32> to vector<1x4x256xf32>
    %22 = arith.mulf %12, %21 : vector<1x4x256xf32>
    %23 = vector.shape_cast %4 : vector<4x1xf32> to vector<1x4x1xf32>
    %24 = vector.broadcast %23 : vector<1x4x1xf32> to vector<1x4x256xf32>
    %25 = arith.mulf %22, %24 : vector<1x4x256xf32>
    %26 = vector.shape_cast %6 : vector<4x1xf32> to vector<1x4x1xf32>
    %27 = vector.broadcast %26 : vector<1x4x1xf32> to vector<1x4x256xf32>
    %28 = arith.addf %25, %27 : vector<1x4x256xf32>
    %cst_11 = arith.constant 0.000000e+00 : f32
    %29 = vector.broadcast %cst_11 : f32 to vector<1x4x256xf32>
    %30 = arith.maximumf %28, %29 : vector<1x4x256xf32>
    %c0_12 = arith.constant 0 : index
    %c0_13 = arith.constant 0 : index
    %c0_14 = arith.constant 0 : index
    %c0_15 = arith.constant 0 : index
    %31 = vector.load %arg3[%c0_12, %c0_13, %c0_14, %c0_15] : memref<9x4x4x1xf32, #tpu.memory_space<vmem>>, vector<9x4x4x1xf32>
    %c0_16 = arith.constant 0 : index
    %c0_17 = arith.constant 0 : index
    %32 = vector.load %arg4[%c0_16, %c0_17] : memref<4x256xf32, #tpu.memory_space<vmem>>, vector<4x256xf32>
    %33 = vector.shape_cast %32 : vector<4x256xf32> to vector<1x4x256xf32>
    %c17_i32 = arith.constant 17 : i32
    %34 = tpu.dynamic_rotate %30 by %c17_i32 dim 2 : vector<1x4x256xf32>, i32 -> vector<1x4x256xf32>
    %35 = vector.extract_strided_slice %0 {offsets = [0, 0], sizes = [1, 256], strides = [1, 1]} : vector<9x256xf32> to vector<1x256xf32>
    %36 = vector.shape_cast %35 : vector<1x256xf32> to vector<1x1x256xf32>
    %37 = vector.broadcast %36 : vector<1x1x256xf32> to vector<1x4x256xf32>
    %38 = arith.mulf %34, %37 : vector<1x4x256xf32>
    %39 = vector.extract_strided_slice %38 {offsets = [0, 0, 0], sizes = [1, 1, 256], strides = [1, 1, 1]} : vector<1x4x256xf32> to vector<1x1x256xf32>
    %40 = vector.extract_strided_slice %31 {offsets = [0, 0, 0, 0], sizes = [1, 1, 4, 1], strides = [1, 1, 1, 1]} : vector<9x4x4x1xf32> to vector<1x1x4x1xf32>
    %41 = vector.shape_cast %40 : vector<1x1x4x1xf32> to vector<4x1xf32>
    %42 = vector.shape_cast %41 : vector<4x1xf32> to vector<1x4x1xf32>
    %43 = vector.broadcast %39 : vector<1x1x256xf32> to vector<1x4x256xf32>
    %44 = vector.broadcast %42 : vector<1x4x1xf32> to vector<1x4x256xf32>
    %45 = arith.mulf %43, %44 : vector<1x4x256xf32>
    %46 = arith.addf %33, %45 : vector<1x4x256xf32>
    %47 = vector.extract_strided_slice %38 {offsets = [0, 1, 0], sizes = [1, 1, 256], strides = [1, 1, 1]} : vector<1x4x256xf32> to vector<1x1x256xf32>
    %48 = vector.extract_strided_slice %31 {offsets = [0, 1, 0, 0], sizes = [1, 1, 4, 1], strides = [1, 1, 1, 1]} : vector<9x4x4x1xf32> to vector<1x1x4x1xf32>
    %49 = vector.shape_cast %48 : vector<1x1x4x1xf32> to vector<4x1xf32>
    %50 = vector.shape_cast %49 : vector<4x1xf32> to vector<1x4x1xf32>
    %51 = vector.broadcast %47 : vector<1x1x256xf32> to vector<1x4x256xf32>
    %52 = vector.broadcast %50 : vector<1x4x1xf32> to vector<1x4x256xf32>
    %53 = arith.mulf %51, %52 : vector<1x4x256xf32>
    %54 = arith.addf %46, %53 : vector<1x4x256xf32>
    %55 = vector.extract_strided_slice %38 {offsets = [0, 2, 0], sizes = [1, 1, 256], strides = [1, 1, 1]} : vector<1x4x256xf32> to vector<1x1x256xf32>
    %56 = vector.extract_strided_slice %31 {offsets = [0, 2, 0, 0], sizes = [1, 1, 4, 1], strides = [1, 1, 1, 1]} : vector<9x4x4x1xf32> to vector<1x1x4x1xf32>
    %57 = vector.shape_cast %56 : vector<1x1x4x1xf32> to vector<4x1xf32>
    %58 = vector.shape_cast %57 : vector<4x1xf32> to vector<1x4x1xf32>
    %59 = vector.broadcast %55 : vector<1x1x256xf32> to vector<1x4x256xf32>
    %60 = vector.broadcast %58 : vector<1x4x1xf32> to vector<1x4x256xf32>
    %61 = arith.mulf %59, %60 : vector<1x4x256xf32>
    %62 = arith.addf %54, %61 : vector<1x4x256xf32>
    %63 = vector.extract_strided_slice %38 {offsets = [0, 3, 0], sizes = [1, 1, 256], strides = [1, 1, 1]} : vector<1x4x256xf32> to vector<1x1x256xf32>
    %64 = vector.extract_strided_slice %31 {offsets = [0, 3, 0, 0], sizes = [1, 1, 4, 1], strides = [1, 1, 1, 1]} : vector<9x4x4x1xf32> to vector<1x1x4x1xf32>
    %65 = vector.shape_cast %64 : vector<1x1x4x1xf32> to vector<4x1xf32>
    %66 = vector.shape_cast %65 : vector<4x1xf32> to vector<1x4x1xf32>
    %67 = vector.broadcast %63 : vector<1x1x256xf32> to vector<1x4x256xf32>
    %68 = vector.broadcast %66 : vector<1x4x1xf32> to vector<1x4x256xf32>
    %69 = arith.mulf %67, %68 : vector<1x4x256xf32>
    %70 = arith.addf %62, %69 : vector<1x4x256xf32>
    %c16_i32 = arith.constant 16 : i32
    %71 = tpu.dynamic_rotate %30 by %c16_i32 dim 2 : vector<1x4x256xf32>, i32 -> vector<1x4x256xf32>
    %72 = vector.extract_strided_slice %0 {offsets = [1, 0], sizes = [1, 256], strides = [1, 1]} : vector<9x256xf32> to vector<1x256xf32>
    %73 = vector.shape_cast %72 : vector<1x256xf32> to vector<1x1x256xf32>
    %74 = vector.broadcast %73 : vector<1x1x256xf32> to vector<1x4x256xf32>
    %75 = arith.mulf %71, %74 : vector<1x4x256xf32>
    %76 = vector.extract_strided_slice %75 {offsets = [0, 0, 0], sizes = [1, 1, 256], strides = [1, 1, 1]} : vector<1x4x256xf32> to vector<1x1x256xf32>
    %77 = vector.extract_strided_slice %31 {offsets = [1, 0, 0, 0], sizes = [1, 1, 4, 1], strides = [1, 1, 1, 1]} : vector<9x4x4x1xf32> to vector<1x1x4x1xf32>
    %78 = vector.shape_cast %77 : vector<1x1x4x1xf32> to vector<4x1xf32>
    %79 = vector.shape_cast %78 : vector<4x1xf32> to vector<1x4x1xf32>
    %80 = vector.broadcast %76 : vector<1x1x256xf32> to vector<1x4x256xf32>
    %81 = vector.broadcast %79 : vector<1x4x1xf32> to vector<1x4x256xf32>
    %82 = arith.mulf %80, %81 : vector<1x4x256xf32>
    %83 = arith.addf %70, %82 : vector<1x4x256xf32>
    %84 = vector.extract_strided_slice %75 {offsets = [0, 1, 0], sizes = [1, 1, 256], strides = [1, 1, 1]} : vector<1x4x256xf32> to vector<1x1x256xf32>
    %85 = vector.extract_strided_slice %31 {offsets = [1, 1, 0, 0], sizes = [1, 1, 4, 1], strides = [1, 1, 1, 1]} : vector<9x4x4x1xf32> to vector<1x1x4x1xf32>
    %86 = vector.shape_cast %85 : vector<1x1x4x1xf32> to vector<4x1xf32>
    %87 = vector.shape_cast %86 : vector<4x1xf32> to vector<1x4x1xf32>
    %88 = vector.broadcast %84 : vector<1x1x256xf32> to vector<1x4x256xf32>
    %89 = vector.broadcast %87 : vector<1x4x1xf32> to vector<1x4x256xf32>
    %90 = arith.mulf %88, %89 : vector<1x4x256xf32>
    %91 = arith.addf %83, %90 : vector<1x4x256xf32>
    %92 = vector.extract_strided_slice %75 {offsets = [0, 2, 0], sizes = [1, 1, 256], strides = [1, 1, 1]} : vector<1x4x256xf32> to vector<1x1x256xf32>
    %93 = vector.extract_strided_slice %31 {offsets = [1, 2, 0, 0], sizes = [1, 1, 4, 1], strides = [1, 1, 1, 1]} : vector<9x4x4x1xf32> to vector<1x1x4x1xf32>
    %94 = vector.shape_cast %93 : vector<1x1x4x1xf32> to vector<4x1xf32>
    %95 = vector.shape_cast %94 : vector<4x1xf32> to vector<1x4x1xf32>
    %96 = vector.broadcast %92 : vector<1x1x256xf32> to vector<1x4x256xf32>
    %97 = vector.broadcast %95 : vector<1x4x1xf32> to vector<1x4x256xf32>
    %98 = arith.mulf %96, %97 : vector<1x4x256xf32>
    %99 = arith.addf %91, %98 : vector<1x4x256xf32>
    %100 = vector.extract_strided_slice %75 {offsets = [0, 3, 0], sizes = [1, 1, 256], strides = [1, 1, 1]} : vector<1x4x256xf32> to vector<1x1x256xf32>
    %101 = vector.extract_strided_slice %31 {offsets = [1, 3, 0, 0], sizes = [1, 1, 4, 1], strides = [1, 1, 1, 1]} : vector<9x4x4x1xf32> to vector<1x1x4x1xf32>
    %102 = vector.shape_cast %101 : vector<1x1x4x1xf32> to vector<4x1xf32>
    %103 = vector.shape_cast %102 : vector<4x1xf32> to vector<1x4x1xf32>
    %104 = vector.broadcast %100 : vector<1x1x256xf32> to vector<1x4x256xf32>
    %105 = vector.broadcast %103 : vector<1x4x1xf32> to vector<1x4x256xf32>
    %106 = arith.mulf %104, %105 : vector<1x4x256xf32>
    %107 = arith.addf %99, %106 : vector<1x4x256xf32>
    %c15_i32 = arith.constant 15 : i32
    %108 = tpu.dynamic_rotate %30 by %c15_i32 dim 2 : vector<1x4x256xf32>, i32 -> vector<1x4x256xf32>
    %109 = vector.extract_strided_slice %0 {offsets = [2, 0], sizes = [1, 256], strides = [1, 1]} : vector<9x256xf32> to vector<1x256xf32>
    %110 = vector.shape_cast %109 : vector<1x256xf32> to vector<1x1x256xf32>
    %111 = vector.broadcast %110 : vector<1x1x256xf32> to vector<1x4x256xf32>
    %112 = arith.mulf %108, %111 : vector<1x4x256xf32>
    %113 = vector.extract_strided_slice %112 {offsets = [0, 0, 0], sizes = [1, 1, 256], strides = [1, 1, 1]} : vector<1x4x256xf32> to vector<1x1x256xf32>
    %114 = vector.extract_strided_slice %31 {offsets = [2, 0, 0, 0], sizes = [1, 1, 4, 1], strides = [1, 1, 1, 1]} : vector<9x4x4x1xf32> to vector<1x1x4x1xf32>
    %115 = vector.shape_cast %114 : vector<1x1x4x1xf32> to vector<4x1xf32>
    %116 = vector.shape_cast %115 : vector<4x1xf32> to vector<1x4x1xf32>
    %117 = vector.broadcast %113 : vector<1x1x256xf32> to vector<1x4x256xf32>
    %118 = vector.broadcast %116 : vector<1x4x1xf32> to vector<1x4x256xf32>
    %119 = arith.mulf %117, %118 : vector<1x4x256xf32>
    %120 = arith.addf %107, %119 : vector<1x4x256xf32>
    %121 = vector.extract_strided_slice %112 {offsets = [0, 1, 0], sizes = [1, 1, 256], strides = [1, 1, 1]} : vector<1x4x256xf32> to vector<1x1x256xf32>
    %122 = vector.extract_strided_slice %31 {offsets = [2, 1, 0, 0], sizes = [1, 1, 4, 1], strides = [1, 1, 1, 1]} : vector<9x4x4x1xf32> to vector<1x1x4x1xf32>
    %123 = vector.shape_cast %122 : vector<1x1x4x1xf32> to vector<4x1xf32>
    %124 = vector.shape_cast %123 : vector<4x1xf32> to vector<1x4x1xf32>
    %125 = vector.broadcast %121 : vector<1x1x256xf32> to vector<1x4x256xf32>
    %126 = vector.broadcast %124 : vector<1x4x1xf32> to vector<1x4x256xf32>
    %127 = arith.mulf %125, %126 : vector<1x4x256xf32>
    %128 = arith.addf %120, %127 : vector<1x4x256xf32>
    %129 = vector.extract_strided_slice %112 {offsets = [0, 2, 0], sizes = [1, 1, 256], strides = [1, 1, 1]} : vector<1x4x256xf32> to vector<1x1x256xf32>
    %130 = vector.extract_strided_slice %31 {offsets = [2, 2, 0, 0], sizes = [1, 1, 4, 1], strides = [1, 1, 1, 1]} : vector<9x4x4x1xf32> to vector<1x1x4x1xf32>
    %131 = vector.shape_cast %130 : vector<1x1x4x1xf32> to vector<4x1xf32>
    %132 = vector.shape_cast %131 : vector<4x1xf32> to vector<1x4x1xf32>
    %133 = vector.broadcast %129 : vector<1x1x256xf32> to vector<1x4x256xf32>
    %134 = vector.broadcast %132 : vector<1x4x1xf32> to vector<1x4x256xf32>
    %135 = arith.mulf %133, %134 : vector<1x4x256xf32>
    %136 = arith.addf %128, %135 : vector<1x4x256xf32>
    %137 = vector.extract_strided_slice %112 {offsets = [0, 3, 0], sizes = [1, 1, 256], strides = [1, 1, 1]} : vector<1x4x256xf32> to vector<1x1x256xf32>
    %138 = vector.extract_strided_slice %31 {offsets = [2, 3, 0, 0], sizes = [1, 1, 4, 1], strides = [1, 1, 1, 1]} : vector<9x4x4x1xf32> to vector<1x1x4x1xf32>
    %139 = vector.shape_cast %138 : vector<1x1x4x1xf32> to vector<4x1xf32>
    %140 = vector.shape_cast %139 : vector<4x1xf32> to vector<1x4x1xf32>
    %141 = vector.broadcast %137 : vector<1x1x256xf32> to vector<1x4x256xf32>
    %142 = vector.broadcast %140 : vector<1x4x1xf32> to vector<1x4x256xf32>
    %143 = arith.mulf %141, %142 : vector<1x4x256xf32>
    %144 = arith.addf %136, %143 : vector<1x4x256xf32>
    %c1_i32 = arith.constant 1 : i32
    %145 = tpu.dynamic_rotate %30 by %c1_i32 dim 2 : vector<1x4x256xf32>, i32 -> vector<1x4x256xf32>
    %146 = vector.extract_strided_slice %0 {offsets = [3, 0], sizes = [1, 256], strides = [1, 1]} : vector<9x256xf32> to vector<1x256xf32>
    %147 = vector.shape_cast %146 : vector<1x256xf32> to vector<1x1x256xf32>
    %148 = vector.broadcast %147 : vector<1x1x256xf32> to vector<1x4x256xf32>
    %149 = arith.mulf %145, %148 : vector<1x4x256xf32>
    %150 = vector.extract_strided_slice %149 {offsets = [0, 0, 0], sizes = [1, 1, 256], strides = [1, 1, 1]} : vector<1x4x256xf32> to vector<1x1x256xf32>
    %151 = vector.extract_strided_slice %31 {offsets = [3, 0, 0, 0], sizes = [1, 1, 4, 1], strides = [1, 1, 1, 1]} : vector<9x4x4x1xf32> to vector<1x1x4x1xf32>
    %152 = vector.shape_cast %151 : vector<1x1x4x1xf32> to vector<4x1xf32>
    %153 = vector.shape_cast %152 : vector<4x1xf32> to vector<1x4x1xf32>
    %154 = vector.broadcast %150 : vector<1x1x256xf32> to vector<1x4x256xf32>
    %155 = vector.broadcast %153 : vector<1x4x1xf32> to vector<1x4x256xf32>
    %156 = arith.mulf %154, %155 : vector<1x4x256xf32>
    %157 = arith.addf %144, %156 : vector<1x4x256xf32>
    %158 = vector.extract_strided_slice %149 {offsets = [0, 1, 0], sizes = [1, 1, 256], strides = [1, 1, 1]} : vector<1x4x256xf32> to vector<1x1x256xf32>
    %159 = vector.extract_strided_slice %31 {offsets = [3, 1, 0, 0], sizes = [1, 1, 4, 1], strides = [1, 1, 1, 1]} : vector<9x4x4x1xf32> to vector<1x1x4x1xf32>
    %160 = vector.shape_cast %159 : vector<1x1x4x1xf32> to vector<4x1xf32>
    %161 = vector.shape_cast %160 : vector<4x1xf32> to vector<1x4x1xf32>
    %162 = vector.broadcast %158 : vector<1x1x256xf32> to vector<1x4x256xf32>
    %163 = vector.broadcast %161 : vector<1x4x1xf32> to vector<1x4x256xf32>
    %164 = arith.mulf %162, %163 : vector<1x4x256xf32>
    %165 = arith.addf %157, %164 : vector<1x4x256xf32>
    %166 = vector.extract_strided_slice %149 {offsets = [0, 2, 0], sizes = [1, 1, 256], strides = [1, 1, 1]} : vector<1x4x256xf32> to vector<1x1x256xf32>
    %167 = vector.extract_strided_slice %31 {offsets = [3, 2, 0, 0], sizes = [1, 1, 4, 1], strides = [1, 1, 1, 1]} : vector<9x4x4x1xf32> to vector<1x1x4x1xf32>
    %168 = vector.shape_cast %167 : vector<1x1x4x1xf32> to vector<4x1xf32>
    %169 = vector.shape_cast %168 : vector<4x1xf32> to vector<1x4x1xf32>
    %170 = vector.broadcast %166 : vector<1x1x256xf32> to vector<1x4x256xf32>
    %171 = vector.broadcast %169 : vector<1x4x1xf32> to vector<1x4x256xf32>
    %172 = arith.mulf %170, %171 : vector<1x4x256xf32>
    %173 = arith.addf %165, %172 : vector<1x4x256xf32>
    %174 = vector.extract_strided_slice %149 {offsets = [0, 3, 0], sizes = [1, 1, 256], strides = [1, 1, 1]} : vector<1x4x256xf32> to vector<1x1x256xf32>
    %175 = vector.extract_strided_slice %31 {offsets = [3, 3, 0, 0], sizes = [1, 1, 4, 1], strides = [1, 1, 1, 1]} : vector<9x4x4x1xf32> to vector<1x1x4x1xf32>
    %176 = vector.shape_cast %175 : vector<1x1x4x1xf32> to vector<4x1xf32>
    %177 = vector.shape_cast %176 : vector<4x1xf32> to vector<1x4x1xf32>
    %178 = vector.broadcast %174 : vector<1x1x256xf32> to vector<1x4x256xf32>
    %179 = vector.broadcast %177 : vector<1x4x1xf32> to vector<1x4x256xf32>
    %180 = arith.mulf %178, %179 : vector<1x4x256xf32>
    %181 = arith.addf %173, %180 : vector<1x4x256xf32>
    %182 = vector.extract_strided_slice %30 {offsets = [0, 0, 0], sizes = [1, 1, 256], strides = [1, 1, 1]} : vector<1x4x256xf32> to vector<1x1x256xf32>
    %183 = vector.extract_strided_slice %31 {offsets = [4, 0, 0, 0], sizes = [1, 1, 4, 1], strides = [1, 1, 1, 1]} : vector<9x4x4x1xf32> to vector<1x1x4x1xf32>
    %184 = vector.shape_cast %183 : vector<1x1x4x1xf32> to vector<4x1xf32>
    %185 = vector.shape_cast %184 : vector<4x1xf32> to vector<1x4x1xf32>
    %186 = vector.broadcast %182 : vector<1x1x256xf32> to vector<1x4x256xf32>
    %187 = vector.broadcast %185 : vector<1x4x1xf32> to vector<1x4x256xf32>
    %188 = arith.mulf %186, %187 : vector<1x4x256xf32>
    %189 = arith.addf %181, %188 : vector<1x4x256xf32>
    %190 = vector.extract_strided_slice %30 {offsets = [0, 1, 0], sizes = [1, 1, 256], strides = [1, 1, 1]} : vector<1x4x256xf32> to vector<1x1x256xf32>
    %191 = vector.extract_strided_slice %31 {offsets = [4, 1, 0, 0], sizes = [1, 1, 4, 1], strides = [1, 1, 1, 1]} : vector<9x4x4x1xf32> to vector<1x1x4x1xf32>
    %192 = vector.shape_cast %191 : vector<1x1x4x1xf32> to vector<4x1xf32>
    %193 = vector.shape_cast %192 : vector<4x1xf32> to vector<1x4x1xf32>
    %194 = vector.broadcast %190 : vector<1x1x256xf32> to vector<1x4x256xf32>
    %195 = vector.broadcast %193 : vector<1x4x1xf32> to vector<1x4x256xf32>
    %196 = arith.mulf %194, %195 : vector<1x4x256xf32>
    %197 = arith.addf %189, %196 : vector<1x4x256xf32>
    %198 = vector.extract_strided_slice %30 {offsets = [0, 2, 0], sizes = [1, 1, 256], strides = [1, 1, 1]} : vector<1x4x256xf32> to vector<1x1x256xf32>
    %199 = vector.extract_strided_slice %31 {offsets = [4, 2, 0, 0], sizes = [1, 1, 4, 1], strides = [1, 1, 1, 1]} : vector<9x4x4x1xf32> to vector<1x1x4x1xf32>
    %200 = vector.shape_cast %199 : vector<1x1x4x1xf32> to vector<4x1xf32>
    %201 = vector.shape_cast %200 : vector<4x1xf32> to vector<1x4x1xf32>
    %202 = vector.broadcast %198 : vector<1x1x256xf32> to vector<1x4x256xf32>
    %203 = vector.broadcast %201 : vector<1x4x1xf32> to vector<1x4x256xf32>
    %204 = arith.mulf %202, %203 : vector<1x4x256xf32>
    %205 = arith.addf %197, %204 : vector<1x4x256xf32>
    %206 = vector.extract_strided_slice %30 {offsets = [0, 3, 0], sizes = [1, 1, 256], strides = [1, 1, 1]} : vector<1x4x256xf32> to vector<1x1x256xf32>
    %207 = vector.extract_strided_slice %31 {offsets = [4, 3, 0, 0], sizes = [1, 1, 4, 1], strides = [1, 1, 1, 1]} : vector<9x4x4x1xf32> to vector<1x1x4x1xf32>
    %208 = vector.shape_cast %207 : vector<1x1x4x1xf32> to vector<4x1xf32>
    %209 = vector.shape_cast %208 : vector<4x1xf32> to vector<1x4x1xf32>
    %210 = vector.broadcast %206 : vector<1x1x256xf32> to vector<1x4x256xf32>
    %211 = vector.broadcast %209 : vector<1x4x1xf32> to vector<1x4x256xf32>
    %212 = arith.mulf %210, %211 : vector<1x4x256xf32>
    %213 = arith.addf %205, %212 : vector<1x4x256xf32>
    %c255_i32 = arith.constant 255 : i32
    %214 = tpu.dynamic_rotate %30 by %c255_i32 dim 2 : vector<1x4x256xf32>, i32 -> vector<1x4x256xf32>
    %215 = vector.extract_strided_slice %0 {offsets = [5, 0], sizes = [1, 256], strides = [1, 1]} : vector<9x256xf32> to vector<1x256xf32>
    %216 = vector.shape_cast %215 : vector<1x256xf32> to vector<1x1x256xf32>
    %217 = vector.broadcast %216 : vector<1x1x256xf32> to vector<1x4x256xf32>
    %218 = arith.mulf %214, %217 : vector<1x4x256xf32>
    %219 = vector.extract_strided_slice %218 {offsets = [0, 0, 0], sizes = [1, 1, 256], strides = [1, 1, 1]} : vector<1x4x256xf32> to vector<1x1x256xf32>
    %220 = vector.extract_strided_slice %31 {offsets = [5, 0, 0, 0], sizes = [1, 1, 4, 1], strides = [1, 1, 1, 1]} : vector<9x4x4x1xf32> to vector<1x1x4x1xf32>
    %221 = vector.shape_cast %220 : vector<1x1x4x1xf32> to vector<4x1xf32>
    %222 = vector.shape_cast %221 : vector<4x1xf32> to vector<1x4x1xf32>
    %223 = vector.broadcast %219 : vector<1x1x256xf32> to vector<1x4x256xf32>
    %224 = vector.broadcast %222 : vector<1x4x1xf32> to vector<1x4x256xf32>
    %225 = arith.mulf %223, %224 : vector<1x4x256xf32>
    %226 = arith.addf %213, %225 : vector<1x4x256xf32>
    %227 = vector.extract_strided_slice %218 {offsets = [0, 1, 0], sizes = [1, 1, 256], strides = [1, 1, 1]} : vector<1x4x256xf32> to vector<1x1x256xf32>
    %228 = vector.extract_strided_slice %31 {offsets = [5, 1, 0, 0], sizes = [1, 1, 4, 1], strides = [1, 1, 1, 1]} : vector<9x4x4x1xf32> to vector<1x1x4x1xf32>
    %229 = vector.shape_cast %228 : vector<1x1x4x1xf32> to vector<4x1xf32>
    %230 = vector.shape_cast %229 : vector<4x1xf32> to vector<1x4x1xf32>
    %231 = vector.broadcast %227 : vector<1x1x256xf32> to vector<1x4x256xf32>
    %232 = vector.broadcast %230 : vector<1x4x1xf32> to vector<1x4x256xf32>
    %233 = arith.mulf %231, %232 : vector<1x4x256xf32>
    %234 = arith.addf %226, %233 : vector<1x4x256xf32>
    %235 = vector.extract_strided_slice %218 {offsets = [0, 2, 0], sizes = [1, 1, 256], strides = [1, 1, 1]} : vector<1x4x256xf32> to vector<1x1x256xf32>
    %236 = vector.extract_strided_slice %31 {offsets = [5, 2, 0, 0], sizes = [1, 1, 4, 1], strides = [1, 1, 1, 1]} : vector<9x4x4x1xf32> to vector<1x1x4x1xf32>
    %237 = vector.shape_cast %236 : vector<1x1x4x1xf32> to vector<4x1xf32>
    %238 = vector.shape_cast %237 : vector<4x1xf32> to vector<1x4x1xf32>
    %239 = vector.broadcast %235 : vector<1x1x256xf32> to vector<1x4x256xf32>
    %240 = vector.broadcast %238 : vector<1x4x1xf32> to vector<1x4x256xf32>
    %241 = arith.mulf %239, %240 : vector<1x4x256xf32>
    %242 = arith.addf %234, %241 : vector<1x4x256xf32>
    %243 = vector.extract_strided_slice %218 {offsets = [0, 3, 0], sizes = [1, 1, 256], strides = [1, 1, 1]} : vector<1x4x256xf32> to vector<1x1x256xf32>
    %244 = vector.extract_strided_slice %31 {offsets = [5, 3, 0, 0], sizes = [1, 1, 4, 1], strides = [1, 1, 1, 1]} : vector<9x4x4x1xf32> to vector<1x1x4x1xf32>
    %245 = vector.shape_cast %244 : vector<1x1x4x1xf32> to vector<4x1xf32>
    %246 = vector.shape_cast %245 : vector<4x1xf32> to vector<1x4x1xf32>
    %247 = vector.broadcast %243 : vector<1x1x256xf32> to vector<1x4x256xf32>
    %248 = vector.broadcast %246 : vector<1x4x1xf32> to vector<1x4x256xf32>
    %249 = arith.mulf %247, %248 : vector<1x4x256xf32>
    %250 = arith.addf %242, %249 : vector<1x4x256xf32>
    %c241_i32 = arith.constant 241 : i32
    %251 = tpu.dynamic_rotate %30 by %c241_i32 dim 2 : vector<1x4x256xf32>, i32 -> vector<1x4x256xf32>
    %252 = vector.extract_strided_slice %0 {offsets = [6, 0], sizes = [1, 256], strides = [1, 1]} : vector<9x256xf32> to vector<1x256xf32>
    %253 = vector.shape_cast %252 : vector<1x256xf32> to vector<1x1x256xf32>
    %254 = vector.broadcast %253 : vector<1x1x256xf32> to vector<1x4x256xf32>
    %255 = arith.mulf %251, %254 : vector<1x4x256xf32>
    %256 = vector.extract_strided_slice %255 {offsets = [0, 0, 0], sizes = [1, 1, 256], strides = [1, 1, 1]} : vector<1x4x256xf32> to vector<1x1x256xf32>
    %257 = vector.extract_strided_slice %31 {offsets = [6, 0, 0, 0], sizes = [1, 1, 4, 1], strides = [1, 1, 1, 1]} : vector<9x4x4x1xf32> to vector<1x1x4x1xf32>
    %258 = vector.shape_cast %257 : vector<1x1x4x1xf32> to vector<4x1xf32>
    %259 = vector.shape_cast %258 : vector<4x1xf32> to vector<1x4x1xf32>
    %260 = vector.broadcast %256 : vector<1x1x256xf32> to vector<1x4x256xf32>
    %261 = vector.broadcast %259 : vector<1x4x1xf32> to vector<1x4x256xf32>
    %262 = arith.mulf %260, %261 : vector<1x4x256xf32>
    %263 = arith.addf %250, %262 : vector<1x4x256xf32>
    %264 = vector.extract_strided_slice %255 {offsets = [0, 1, 0], sizes = [1, 1, 256], strides = [1, 1, 1]} : vector<1x4x256xf32> to vector<1x1x256xf32>
    %265 = vector.extract_strided_slice %31 {offsets = [6, 1, 0, 0], sizes = [1, 1, 4, 1], strides = [1, 1, 1, 1]} : vector<9x4x4x1xf32> to vector<1x1x4x1xf32>
    %266 = vector.shape_cast %265 : vector<1x1x4x1xf32> to vector<4x1xf32>
    %267 = vector.shape_cast %266 : vector<4x1xf32> to vector<1x4x1xf32>
    %268 = vector.broadcast %264 : vector<1x1x256xf32> to vector<1x4x256xf32>
    %269 = vector.broadcast %267 : vector<1x4x1xf32> to vector<1x4x256xf32>
    %270 = arith.mulf %268, %269 : vector<1x4x256xf32>
    %271 = arith.addf %263, %270 : vector<1x4x256xf32>
    %272 = vector.extract_strided_slice %255 {offsets = [0, 2, 0], sizes = [1, 1, 256], strides = [1, 1, 1]} : vector<1x4x256xf32> to vector<1x1x256xf32>
    %273 = vector.extract_strided_slice %31 {offsets = [6, 2, 0, 0], sizes = [1, 1, 4, 1], strides = [1, 1, 1, 1]} : vector<9x4x4x1xf32> to vector<1x1x4x1xf32>
    %274 = vector.shape_cast %273 : vector<1x1x4x1xf32> to vector<4x1xf32>
    %275 = vector.shape_cast %274 : vector<4x1xf32> to vector<1x4x1xf32>
    %276 = vector.broadcast %272 : vector<1x1x256xf32> to vector<1x4x256xf32>
    %277 = vector.broadcast %275 : vector<1x4x1xf32> to vector<1x4x256xf32>
    %278 = arith.mulf %276, %277 : vector<1x4x256xf32>
    %279 = arith.addf %271, %278 : vector<1x4x256xf32>
    %280 = vector.extract_strided_slice %255 {offsets = [0, 3, 0], sizes = [1, 1, 256], strides = [1, 1, 1]} : vector<1x4x256xf32> to vector<1x1x256xf32>
    %281 = vector.extract_strided_slice %31 {offsets = [6, 3, 0, 0], sizes = [1, 1, 4, 1], strides = [1, 1, 1, 1]} : vector<9x4x4x1xf32> to vector<1x1x4x1xf32>
    %282 = vector.shape_cast %281 : vector<1x1x4x1xf32> to vector<4x1xf32>
    %283 = vector.shape_cast %282 : vector<4x1xf32> to vector<1x4x1xf32>
    %284 = vector.broadcast %280 : vector<1x1x256xf32> to vector<1x4x256xf32>
    %285 = vector.broadcast %283 : vector<1x4x1xf32> to vector<1x4x256xf32>
    %286 = arith.mulf %284, %285 : vector<1x4x256xf32>
    %287 = arith.addf %279, %286 : vector<1x4x256xf32>
    %c240_i32 = arith.constant 240 : i32
    %288 = tpu.dynamic_rotate %30 by %c240_i32 dim 2 : vector<1x4x256xf32>, i32 -> vector<1x4x256xf32>
    %289 = vector.extract_strided_slice %0 {offsets = [7, 0], sizes = [1, 256], strides = [1, 1]} : vector<9x256xf32> to vector<1x256xf32>
    %290 = vector.shape_cast %289 : vector<1x256xf32> to vector<1x1x256xf32>
    %291 = vector.broadcast %290 : vector<1x1x256xf32> to vector<1x4x256xf32>
    %292 = arith.mulf %288, %291 : vector<1x4x256xf32>
    %293 = vector.extract_strided_slice %292 {offsets = [0, 0, 0], sizes = [1, 1, 256], strides = [1, 1, 1]} : vector<1x4x256xf32> to vector<1x1x256xf32>
    %294 = vector.extract_strided_slice %31 {offsets = [7, 0, 0, 0], sizes = [1, 1, 4, 1], strides = [1, 1, 1, 1]} : vector<9x4x4x1xf32> to vector<1x1x4x1xf32>
    %295 = vector.shape_cast %294 : vector<1x1x4x1xf32> to vector<4x1xf32>
    %296 = vector.shape_cast %295 : vector<4x1xf32> to vector<1x4x1xf32>
    %297 = vector.broadcast %293 : vector<1x1x256xf32> to vector<1x4x256xf32>
    %298 = vector.broadcast %296 : vector<1x4x1xf32> to vector<1x4x256xf32>
    %299 = arith.mulf %297, %298 : vector<1x4x256xf32>
    %300 = arith.addf %287, %299 : vector<1x4x256xf32>
    %301 = vector.extract_strided_slice %292 {offsets = [0, 1, 0], sizes = [1, 1, 256], strides = [1, 1, 1]} : vector<1x4x256xf32> to vector<1x1x256xf32>
    %302 = vector.extract_strided_slice %31 {offsets = [7, 1, 0, 0], sizes = [1, 1, 4, 1], strides = [1, 1, 1, 1]} : vector<9x4x4x1xf32> to vector<1x1x4x1xf32>
    %303 = vector.shape_cast %302 : vector<1x1x4x1xf32> to vector<4x1xf32>
    %304 = vector.shape_cast %303 : vector<4x1xf32> to vector<1x4x1xf32>
    %305 = vector.broadcast %301 : vector<1x1x256xf32> to vector<1x4x256xf32>
    %306 = vector.broadcast %304 : vector<1x4x1xf32> to vector<1x4x256xf32>
    %307 = arith.mulf %305, %306 : vector<1x4x256xf32>
    %308 = arith.addf %300, %307 : vector<1x4x256xf32>
    %309 = vector.extract_strided_slice %292 {offsets = [0, 2, 0], sizes = [1, 1, 256], strides = [1, 1, 1]} : vector<1x4x256xf32> to vector<1x1x256xf32>
    %310 = vector.extract_strided_slice %31 {offsets = [7, 2, 0, 0], sizes = [1, 1, 4, 1], strides = [1, 1, 1, 1]} : vector<9x4x4x1xf32> to vector<1x1x4x1xf32>
    %311 = vector.shape_cast %310 : vector<1x1x4x1xf32> to vector<4x1xf32>
    %312 = vector.shape_cast %311 : vector<4x1xf32> to vector<1x4x1xf32>
    %313 = vector.broadcast %309 : vector<1x1x256xf32> to vector<1x4x256xf32>
    %314 = vector.broadcast %312 : vector<1x4x1xf32> to vector<1x4x256xf32>
    %315 = arith.mulf %313, %314 : vector<1x4x256xf32>
    %316 = arith.addf %308, %315 : vector<1x4x256xf32>
    %317 = vector.extract_strided_slice %292 {offsets = [0, 3, 0], sizes = [1, 1, 256], strides = [1, 1, 1]} : vector<1x4x256xf32> to vector<1x1x256xf32>
    %318 = vector.extract_strided_slice %31 {offsets = [7, 3, 0, 0], sizes = [1, 1, 4, 1], strides = [1, 1, 1, 1]} : vector<9x4x4x1xf32> to vector<1x1x4x1xf32>
    %319 = vector.shape_cast %318 : vector<1x1x4x1xf32> to vector<4x1xf32>
    %320 = vector.shape_cast %319 : vector<4x1xf32> to vector<1x4x1xf32>
    %321 = vector.broadcast %317 : vector<1x1x256xf32> to vector<1x4x256xf32>
    %322 = vector.broadcast %320 : vector<1x4x1xf32> to vector<1x4x256xf32>
    %323 = arith.mulf %321, %322 : vector<1x4x256xf32>
    %324 = arith.addf %316, %323 : vector<1x4x256xf32>
    %c239_i32 = arith.constant 239 : i32
    %325 = tpu.dynamic_rotate %30 by %c239_i32 dim 2 : vector<1x4x256xf32>, i32 -> vector<1x4x256xf32>
    %326 = vector.extract_strided_slice %0 {offsets = [8, 0], sizes = [1, 256], strides = [1, 1]} : vector<9x256xf32> to vector<1x256xf32>
    %327 = vector.shape_cast %326 : vector<1x256xf32> to vector<1x1x256xf32>
    %328 = vector.broadcast %327 : vector<1x1x256xf32> to vector<1x4x256xf32>
    %329 = arith.mulf %325, %328 : vector<1x4x256xf32>
    %330 = vector.extract_strided_slice %329 {offsets = [0, 0, 0], sizes = [1, 1, 256], strides = [1, 1, 1]} : vector<1x4x256xf32> to vector<1x1x256xf32>
    %331 = vector.extract_strided_slice %31 {offsets = [8, 0, 0, 0], sizes = [1, 1, 4, 1], strides = [1, 1, 1, 1]} : vector<9x4x4x1xf32> to vector<1x1x4x1xf32>
    %332 = vector.shape_cast %331 : vector<1x1x4x1xf32> to vector<4x1xf32>
    %333 = vector.shape_cast %332 : vector<4x1xf32> to vector<1x4x1xf32>
    %334 = vector.broadcast %330 : vector<1x1x256xf32> to vector<1x4x256xf32>
    %335 = vector.broadcast %333 : vector<1x4x1xf32> to vector<1x4x256xf32>
    %336 = arith.mulf %334, %335 : vector<1x4x256xf32>
    %337 = arith.addf %324, %336 : vector<1x4x256xf32>
    %338 = vector.extract_strided_slice %329 {offsets = [0, 1, 0], sizes = [1, 1, 256], strides = [1, 1, 1]} : vector<1x4x256xf32> to vector<1x1x256xf32>
    %339 = vector.extract_strided_slice %31 {offsets = [8, 1, 0, 0], sizes = [1, 1, 4, 1], strides = [1, 1, 1, 1]} : vector<9x4x4x1xf32> to vector<1x1x4x1xf32>
    %340 = vector.shape_cast %339 : vector<1x1x4x1xf32> to vector<4x1xf32>
    %341 = vector.shape_cast %340 : vector<4x1xf32> to vector<1x4x1xf32>
    %342 = vector.broadcast %338 : vector<1x1x256xf32> to vector<1x4x256xf32>
    %343 = vector.broadcast %341 : vector<1x4x1xf32> to vector<1x4x256xf32>
    %344 = arith.mulf %342, %343 : vector<1x4x256xf32>
    %345 = arith.addf %337, %344 : vector<1x4x256xf32>
    %346 = vector.extract_strided_slice %329 {offsets = [0, 2, 0], sizes = [1, 1, 256], strides = [1, 1, 1]} : vector<1x4x256xf32> to vector<1x1x256xf32>
    %347 = vector.extract_strided_slice %31 {offsets = [8, 2, 0, 0], sizes = [1, 1, 4, 1], strides = [1, 1, 1, 1]} : vector<9x4x4x1xf32> to vector<1x1x4x1xf32>
    %348 = vector.shape_cast %347 : vector<1x1x4x1xf32> to vector<4x1xf32>
    %349 = vector.shape_cast %348 : vector<4x1xf32> to vector<1x4x1xf32>
    %350 = vector.broadcast %346 : vector<1x1x256xf32> to vector<1x4x256xf32>
    %351 = vector.broadcast %349 : vector<1x4x1xf32> to vector<1x4x256xf32>
    %352 = arith.mulf %350, %351 : vector<1x4x256xf32>
    %353 = arith.addf %345, %352 : vector<1x4x256xf32>
    %354 = vector.extract_strided_slice %329 {offsets = [0, 3, 0], sizes = [1, 1, 256], strides = [1, 1, 1]} : vector<1x4x256xf32> to vector<1x1x256xf32>
    %355 = vector.extract_strided_slice %31 {offsets = [8, 3, 0, 0], sizes = [1, 1, 4, 1], strides = [1, 1, 1, 1]} : vector<9x4x4x1xf32> to vector<1x1x4x1xf32>
    %356 = vector.shape_cast %355 : vector<1x1x4x1xf32> to vector<4x1xf32>
    %357 = vector.shape_cast %356 : vector<4x1xf32> to vector<1x4x1xf32>
    %358 = vector.broadcast %354 : vector<1x1x256xf32> to vector<1x4x256xf32>
    %359 = vector.broadcast %357 : vector<1x4x1xf32> to vector<1x4x256xf32>
    %360 = arith.mulf %358, %359 : vector<1x4x256xf32>
    %361 = arith.addf %353, %360 : vector<1x4x256xf32>
    %362 = vector.extract_strided_slice %1 {offsets = [2, 0, 0], sizes = [1, 4, 1], strides = [1, 1, 1]} : vector<6x4x1xf32> to vector<1x4x1xf32>
    %363 = vector.shape_cast %362 : vector<1x4x1xf32> to vector<4x1xf32>
    %364 = vector.extract_strided_slice %1 {offsets = [3, 0, 0], sizes = [1, 4, 1], strides = [1, 1, 1]} : vector<6x4x1xf32> to vector<1x4x1xf32>
    %365 = vector.shape_cast %364 : vector<1x4x1xf32> to vector<4x1xf32>
    %cst_18 = arith.constant dense<0.000000e+00> : vector<1x4xf32>
    %366 = vector.multi_reduction <add>, %361, %cst_18 [2] : vector<1x4x256xf32> to vector<1x4xf32>
    %367 = vector.shape_cast %366 : vector<1x4xf32> to vector<1x4x1xf32>
    %cst_19 = arith.constant 2.560000e+02 : f32
    %368 = vector.broadcast %cst_19 : f32 to vector<1x4x1xf32>
    %369 = arith.divf %367, %368 : vector<1x4x1xf32>
    %370 = vector.broadcast %369 : vector<1x4x1xf32> to vector<1x4x256xf32>
    %371 = arith.subf %361, %370 : vector<1x4x256xf32>
    %372 = arith.mulf %371, %371 : vector<1x4x256xf32>
    %cst_20 = arith.constant dense<0.000000e+00> : vector<1x4xf32>
    %373 = vector.multi_reduction <add>, %372, %cst_20 [2] : vector<1x4x256xf32> to vector<1x4xf32>
    %374 = vector.shape_cast %373 : vector<1x4xf32> to vector<1x4x1xf32>
    %cst_21 = arith.constant 2.560000e+02 : f32
    %375 = vector.broadcast %cst_21 : f32 to vector<1x4x1xf32>
    %376 = arith.divf %374, %375 : vector<1x4x1xf32>
    %cst_22 = arith.constant 9.99999974E-6 : f32
    %377 = vector.broadcast %cst_22 : f32 to vector<1x4x1xf32>
    %378 = arith.addf %376, %377 : vector<1x4x1xf32>
    %379 = math.rsqrt %378 : vector<1x4x1xf32>
    %380 = vector.broadcast %379 : vector<1x4x1xf32> to vector<1x4x256xf32>
    %381 = arith.mulf %371, %380 : vector<1x4x256xf32>
    %382 = vector.shape_cast %363 : vector<4x1xf32> to vector<1x4x1xf32>
    %383 = vector.broadcast %382 : vector<1x4x1xf32> to vector<1x4x256xf32>
    %384 = arith.mulf %381, %383 : vector<1x4x256xf32>
    %385 = vector.shape_cast %365 : vector<4x1xf32> to vector<1x4x1xf32>
    %386 = vector.broadcast %385 : vector<1x4x1xf32> to vector<1x4x256xf32>
    %387 = arith.addf %384, %386 : vector<1x4x256xf32>
    %cst_23 = arith.constant 0.000000e+00 : f32
    %388 = vector.broadcast %cst_23 : f32 to vector<1x4x256xf32>
    %389 = arith.maximumf %387, %388 : vector<1x4x256xf32>
    %c0_24 = arith.constant 0 : index
    %c0_25 = arith.constant 0 : index
    %c0_26 = arith.constant 0 : index
    %c0_27 = arith.constant 0 : index
    %390 = vector.load %arg5[%c0_24, %c0_25, %c0_26, %c0_27] : memref<9x4x4x1xf32, #tpu.memory_space<vmem>>, vector<9x4x4x1xf32>
    %c0_28 = arith.constant 0 : index
    %c0_29 = arith.constant 0 : index
    %391 = vector.load %arg6[%c0_28, %c0_29] : memref<4x256xf32, #tpu.memory_space<vmem>>, vector<4x256xf32>
    %392 = vector.shape_cast %391 : vector<4x256xf32> to vector<1x4x256xf32>
    %c17_i32_30 = arith.constant 17 : i32
    %393 = tpu.dynamic_rotate %389 by %c17_i32_30 dim 2 : vector<1x4x256xf32>, i32 -> vector<1x4x256xf32>
    %394 = vector.extract_strided_slice %0 {offsets = [0, 0], sizes = [1, 256], strides = [1, 1]} : vector<9x256xf32> to vector<1x256xf32>
    %395 = vector.shape_cast %394 : vector<1x256xf32> to vector<1x1x256xf32>
    %396 = vector.broadcast %395 : vector<1x1x256xf32> to vector<1x4x256xf32>
    %397 = arith.mulf %393, %396 : vector<1x4x256xf32>
    %398 = vector.extract_strided_slice %397 {offsets = [0, 0, 0], sizes = [1, 1, 256], strides = [1, 1, 1]} : vector<1x4x256xf32> to vector<1x1x256xf32>
    %399 = vector.extract_strided_slice %390 {offsets = [0, 0, 0, 0], sizes = [1, 1, 4, 1], strides = [1, 1, 1, 1]} : vector<9x4x4x1xf32> to vector<1x1x4x1xf32>
    %400 = vector.shape_cast %399 : vector<1x1x4x1xf32> to vector<4x1xf32>
    %401 = vector.shape_cast %400 : vector<4x1xf32> to vector<1x4x1xf32>
    %402 = vector.broadcast %398 : vector<1x1x256xf32> to vector<1x4x256xf32>
    %403 = vector.broadcast %401 : vector<1x4x1xf32> to vector<1x4x256xf32>
    %404 = arith.mulf %402, %403 : vector<1x4x256xf32>
    %405 = arith.addf %392, %404 : vector<1x4x256xf32>
    %406 = vector.extract_strided_slice %397 {offsets = [0, 1, 0], sizes = [1, 1, 256], strides = [1, 1, 1]} : vector<1x4x256xf32> to vector<1x1x256xf32>
    %407 = vector.extract_strided_slice %390 {offsets = [0, 1, 0, 0], sizes = [1, 1, 4, 1], strides = [1, 1, 1, 1]} : vector<9x4x4x1xf32> to vector<1x1x4x1xf32>
    %408 = vector.shape_cast %407 : vector<1x1x4x1xf32> to vector<4x1xf32>
    %409 = vector.shape_cast %408 : vector<4x1xf32> to vector<1x4x1xf32>
    %410 = vector.broadcast %406 : vector<1x1x256xf32> to vector<1x4x256xf32>
    %411 = vector.broadcast %409 : vector<1x4x1xf32> to vector<1x4x256xf32>
    %412 = arith.mulf %410, %411 : vector<1x4x256xf32>
    %413 = arith.addf %405, %412 : vector<1x4x256xf32>
    %414 = vector.extract_strided_slice %397 {offsets = [0, 2, 0], sizes = [1, 1, 256], strides = [1, 1, 1]} : vector<1x4x256xf32> to vector<1x1x256xf32>
    %415 = vector.extract_strided_slice %390 {offsets = [0, 2, 0, 0], sizes = [1, 1, 4, 1], strides = [1, 1, 1, 1]} : vector<9x4x4x1xf32> to vector<1x1x4x1xf32>
    %416 = vector.shape_cast %415 : vector<1x1x4x1xf32> to vector<4x1xf32>
    %417 = vector.shape_cast %416 : vector<4x1xf32> to vector<1x4x1xf32>
    %418 = vector.broadcast %414 : vector<1x1x256xf32> to vector<1x4x256xf32>
    %419 = vector.broadcast %417 : vector<1x4x1xf32> to vector<1x4x256xf32>
    %420 = arith.mulf %418, %419 : vector<1x4x256xf32>
    %421 = arith.addf %413, %420 : vector<1x4x256xf32>
    %422 = vector.extract_strided_slice %397 {offsets = [0, 3, 0], sizes = [1, 1, 256], strides = [1, 1, 1]} : vector<1x4x256xf32> to vector<1x1x256xf32>
    %423 = vector.extract_strided_slice %390 {offsets = [0, 3, 0, 0], sizes = [1, 1, 4, 1], strides = [1, 1, 1, 1]} : vector<9x4x4x1xf32> to vector<1x1x4x1xf32>
    %424 = vector.shape_cast %423 : vector<1x1x4x1xf32> to vector<4x1xf32>
    %425 = vector.shape_cast %424 : vector<4x1xf32> to vector<1x4x1xf32>
    %426 = vector.broadcast %422 : vector<1x1x256xf32> to vector<1x4x256xf32>
    %427 = vector.broadcast %425 : vector<1x4x1xf32> to vector<1x4x256xf32>
    %428 = arith.mulf %426, %427 : vector<1x4x256xf32>
    %429 = arith.addf %421, %428 : vector<1x4x256xf32>
    %c16_i32_31 = arith.constant 16 : i32
    %430 = tpu.dynamic_rotate %389 by %c16_i32_31 dim 2 : vector<1x4x256xf32>, i32 -> vector<1x4x256xf32>
    %431 = vector.extract_strided_slice %0 {offsets = [1, 0], sizes = [1, 256], strides = [1, 1]} : vector<9x256xf32> to vector<1x256xf32>
    %432 = vector.shape_cast %431 : vector<1x256xf32> to vector<1x1x256xf32>
    %433 = vector.broadcast %432 : vector<1x1x256xf32> to vector<1x4x256xf32>
    %434 = arith.mulf %430, %433 : vector<1x4x256xf32>
    %435 = vector.extract_strided_slice %434 {offsets = [0, 0, 0], sizes = [1, 1, 256], strides = [1, 1, 1]} : vector<1x4x256xf32> to vector<1x1x256xf32>
    %436 = vector.extract_strided_slice %390 {offsets = [1, 0, 0, 0], sizes = [1, 1, 4, 1], strides = [1, 1, 1, 1]} : vector<9x4x4x1xf32> to vector<1x1x4x1xf32>
    %437 = vector.shape_cast %436 : vector<1x1x4x1xf32> to vector<4x1xf32>
    %438 = vector.shape_cast %437 : vector<4x1xf32> to vector<1x4x1xf32>
    %439 = vector.broadcast %435 : vector<1x1x256xf32> to vector<1x4x256xf32>
    %440 = vector.broadcast %438 : vector<1x4x1xf32> to vector<1x4x256xf32>
    %441 = arith.mulf %439, %440 : vector<1x4x256xf32>
    %442 = arith.addf %429, %441 : vector<1x4x256xf32>
    %443 = vector.extract_strided_slice %434 {offsets = [0, 1, 0], sizes = [1, 1, 256], strides = [1, 1, 1]} : vector<1x4x256xf32> to vector<1x1x256xf32>
    %444 = vector.extract_strided_slice %390 {offsets = [1, 1, 0, 0], sizes = [1, 1, 4, 1], strides = [1, 1, 1, 1]} : vector<9x4x4x1xf32> to vector<1x1x4x1xf32>
    %445 = vector.shape_cast %444 : vector<1x1x4x1xf32> to vector<4x1xf32>
    %446 = vector.shape_cast %445 : vector<4x1xf32> to vector<1x4x1xf32>
    %447 = vector.broadcast %443 : vector<1x1x256xf32> to vector<1x4x256xf32>
    %448 = vector.broadcast %446 : vector<1x4x1xf32> to vector<1x4x256xf32>
    %449 = arith.mulf %447, %448 : vector<1x4x256xf32>
    %450 = arith.addf %442, %449 : vector<1x4x256xf32>
    %451 = vector.extract_strided_slice %434 {offsets = [0, 2, 0], sizes = [1, 1, 256], strides = [1, 1, 1]} : vector<1x4x256xf32> to vector<1x1x256xf32>
    %452 = vector.extract_strided_slice %390 {offsets = [1, 2, 0, 0], sizes = [1, 1, 4, 1], strides = [1, 1, 1, 1]} : vector<9x4x4x1xf32> to vector<1x1x4x1xf32>
    %453 = vector.shape_cast %452 : vector<1x1x4x1xf32> to vector<4x1xf32>
    %454 = vector.shape_cast %453 : vector<4x1xf32> to vector<1x4x1xf32>
    %455 = vector.broadcast %451 : vector<1x1x256xf32> to vector<1x4x256xf32>
    %456 = vector.broadcast %454 : vector<1x4x1xf32> to vector<1x4x256xf32>
    %457 = arith.mulf %455, %456 : vector<1x4x256xf32>
    %458 = arith.addf %450, %457 : vector<1x4x256xf32>
    %459 = vector.extract_strided_slice %434 {offsets = [0, 3, 0], sizes = [1, 1, 256], strides = [1, 1, 1]} : vector<1x4x256xf32> to vector<1x1x256xf32>
    %460 = vector.extract_strided_slice %390 {offsets = [1, 3, 0, 0], sizes = [1, 1, 4, 1], strides = [1, 1, 1, 1]} : vector<9x4x4x1xf32> to vector<1x1x4x1xf32>
    %461 = vector.shape_cast %460 : vector<1x1x4x1xf32> to vector<4x1xf32>
    %462 = vector.shape_cast %461 : vector<4x1xf32> to vector<1x4x1xf32>
    %463 = vector.broadcast %459 : vector<1x1x256xf32> to vector<1x4x256xf32>
    %464 = vector.broadcast %462 : vector<1x4x1xf32> to vector<1x4x256xf32>
    %465 = arith.mulf %463, %464 : vector<1x4x256xf32>
    %466 = arith.addf %458, %465 : vector<1x4x256xf32>
    %c15_i32_32 = arith.constant 15 : i32
    %467 = tpu.dynamic_rotate %389 by %c15_i32_32 dim 2 : vector<1x4x256xf32>, i32 -> vector<1x4x256xf32>
    %468 = vector.extract_strided_slice %0 {offsets = [2, 0], sizes = [1, 256], strides = [1, 1]} : vector<9x256xf32> to vector<1x256xf32>
    %469 = vector.shape_cast %468 : vector<1x256xf32> to vector<1x1x256xf32>
    %470 = vector.broadcast %469 : vector<1x1x256xf32> to vector<1x4x256xf32>
    %471 = arith.mulf %467, %470 : vector<1x4x256xf32>
    %472 = vector.extract_strided_slice %471 {offsets = [0, 0, 0], sizes = [1, 1, 256], strides = [1, 1, 1]} : vector<1x4x256xf32> to vector<1x1x256xf32>
    %473 = vector.extract_strided_slice %390 {offsets = [2, 0, 0, 0], sizes = [1, 1, 4, 1], strides = [1, 1, 1, 1]} : vector<9x4x4x1xf32> to vector<1x1x4x1xf32>
    %474 = vector.shape_cast %473 : vector<1x1x4x1xf32> to vector<4x1xf32>
    %475 = vector.shape_cast %474 : vector<4x1xf32> to vector<1x4x1xf32>
    %476 = vector.broadcast %472 : vector<1x1x256xf32> to vector<1x4x256xf32>
    %477 = vector.broadcast %475 : vector<1x4x1xf32> to vector<1x4x256xf32>
    %478 = arith.mulf %476, %477 : vector<1x4x256xf32>
    %479 = arith.addf %466, %478 : vector<1x4x256xf32>
    %480 = vector.extract_strided_slice %471 {offsets = [0, 1, 0], sizes = [1, 1, 256], strides = [1, 1, 1]} : vector<1x4x256xf32> to vector<1x1x256xf32>
    %481 = vector.extract_strided_slice %390 {offsets = [2, 1, 0, 0], sizes = [1, 1, 4, 1], strides = [1, 1, 1, 1]} : vector<9x4x4x1xf32> to vector<1x1x4x1xf32>
    %482 = vector.shape_cast %481 : vector<1x1x4x1xf32> to vector<4x1xf32>
    %483 = vector.shape_cast %482 : vector<4x1xf32> to vector<1x4x1xf32>
    %484 = vector.broadcast %480 : vector<1x1x256xf32> to vector<1x4x256xf32>
    %485 = vector.broadcast %483 : vector<1x4x1xf32> to vector<1x4x256xf32>
    %486 = arith.mulf %484, %485 : vector<1x4x256xf32>
    %487 = arith.addf %479, %486 : vector<1x4x256xf32>
    %488 = vector.extract_strided_slice %471 {offsets = [0, 2, 0], sizes = [1, 1, 256], strides = [1, 1, 1]} : vector<1x4x256xf32> to vector<1x1x256xf32>
    %489 = vector.extract_strided_slice %390 {offsets = [2, 2, 0, 0], sizes = [1, 1, 4, 1], strides = [1, 1, 1, 1]} : vector<9x4x4x1xf32> to vector<1x1x4x1xf32>
    %490 = vector.shape_cast %489 : vector<1x1x4x1xf32> to vector<4x1xf32>
    %491 = vector.shape_cast %490 : vector<4x1xf32> to vector<1x4x1xf32>
    %492 = vector.broadcast %488 : vector<1x1x256xf32> to vector<1x4x256xf32>
    %493 = vector.broadcast %491 : vector<1x4x1xf32> to vector<1x4x256xf32>
    %494 = arith.mulf %492, %493 : vector<1x4x256xf32>
    %495 = arith.addf %487, %494 : vector<1x4x256xf32>
    %496 = vector.extract_strided_slice %471 {offsets = [0, 3, 0], sizes = [1, 1, 256], strides = [1, 1, 1]} : vector<1x4x256xf32> to vector<1x1x256xf32>
    %497 = vector.extract_strided_slice %390 {offsets = [2, 3, 0, 0], sizes = [1, 1, 4, 1], strides = [1, 1, 1, 1]} : vector<9x4x4x1xf32> to vector<1x1x4x1xf32>
    %498 = vector.shape_cast %497 : vector<1x1x4x1xf32> to vector<4x1xf32>
    %499 = vector.shape_cast %498 : vector<4x1xf32> to vector<1x4x1xf32>
    %500 = vector.broadcast %496 : vector<1x1x256xf32> to vector<1x4x256xf32>
    %501 = vector.broadcast %499 : vector<1x4x1xf32> to vector<1x4x256xf32>
    %502 = arith.mulf %500, %501 : vector<1x4x256xf32>
    %503 = arith.addf %495, %502 : vector<1x4x256xf32>
    %c1_i32_33 = arith.constant 1 : i32
    %504 = tpu.dynamic_rotate %389 by %c1_i32_33 dim 2 : vector<1x4x256xf32>, i32 -> vector<1x4x256xf32>
    %505 = vector.extract_strided_slice %0 {offsets = [3, 0], sizes = [1, 256], strides = [1, 1]} : vector<9x256xf32> to vector<1x256xf32>
    %506 = vector.shape_cast %505 : vector<1x256xf32> to vector<1x1x256xf32>
    %507 = vector.broadcast %506 : vector<1x1x256xf32> to vector<1x4x256xf32>
    %508 = arith.mulf %504, %507 : vector<1x4x256xf32>
    %509 = vector.extract_strided_slice %508 {offsets = [0, 0, 0], sizes = [1, 1, 256], strides = [1, 1, 1]} : vector<1x4x256xf32> to vector<1x1x256xf32>
    %510 = vector.extract_strided_slice %390 {offsets = [3, 0, 0, 0], sizes = [1, 1, 4, 1], strides = [1, 1, 1, 1]} : vector<9x4x4x1xf32> to vector<1x1x4x1xf32>
    %511 = vector.shape_cast %510 : vector<1x1x4x1xf32> to vector<4x1xf32>
    %512 = vector.shape_cast %511 : vector<4x1xf32> to vector<1x4x1xf32>
    %513 = vector.broadcast %509 : vector<1x1x256xf32> to vector<1x4x256xf32>
    %514 = vector.broadcast %512 : vector<1x4x1xf32> to vector<1x4x256xf32>
    %515 = arith.mulf %513, %514 : vector<1x4x256xf32>
    %516 = arith.addf %503, %515 : vector<1x4x256xf32>
    %517 = vector.extract_strided_slice %508 {offsets = [0, 1, 0], sizes = [1, 1, 256], strides = [1, 1, 1]} : vector<1x4x256xf32> to vector<1x1x256xf32>
    %518 = vector.extract_strided_slice %390 {offsets = [3, 1, 0, 0], sizes = [1, 1, 4, 1], strides = [1, 1, 1, 1]} : vector<9x4x4x1xf32> to vector<1x1x4x1xf32>
    %519 = vector.shape_cast %518 : vector<1x1x4x1xf32> to vector<4x1xf32>
    %520 = vector.shape_cast %519 : vector<4x1xf32> to vector<1x4x1xf32>
    %521 = vector.broadcast %517 : vector<1x1x256xf32> to vector<1x4x256xf32>
    %522 = vector.broadcast %520 : vector<1x4x1xf32> to vector<1x4x256xf32>
    %523 = arith.mulf %521, %522 : vector<1x4x256xf32>
    %524 = arith.addf %516, %523 : vector<1x4x256xf32>
    %525 = vector.extract_strided_slice %508 {offsets = [0, 2, 0], sizes = [1, 1, 256], strides = [1, 1, 1]} : vector<1x4x256xf32> to vector<1x1x256xf32>
    %526 = vector.extract_strided_slice %390 {offsets = [3, 2, 0, 0], sizes = [1, 1, 4, 1], strides = [1, 1, 1, 1]} : vector<9x4x4x1xf32> to vector<1x1x4x1xf32>
    %527 = vector.shape_cast %526 : vector<1x1x4x1xf32> to vector<4x1xf32>
    %528 = vector.shape_cast %527 : vector<4x1xf32> to vector<1x4x1xf32>
    %529 = vector.broadcast %525 : vector<1x1x256xf32> to vector<1x4x256xf32>
    %530 = vector.broadcast %528 : vector<1x4x1xf32> to vector<1x4x256xf32>
    %531 = arith.mulf %529, %530 : vector<1x4x256xf32>
    %532 = arith.addf %524, %531 : vector<1x4x256xf32>
    %533 = vector.extract_strided_slice %508 {offsets = [0, 3, 0], sizes = [1, 1, 256], strides = [1, 1, 1]} : vector<1x4x256xf32> to vector<1x1x256xf32>
    %534 = vector.extract_strided_slice %390 {offsets = [3, 3, 0, 0], sizes = [1, 1, 4, 1], strides = [1, 1, 1, 1]} : vector<9x4x4x1xf32> to vector<1x1x4x1xf32>
    %535 = vector.shape_cast %534 : vector<1x1x4x1xf32> to vector<4x1xf32>
    %536 = vector.shape_cast %535 : vector<4x1xf32> to vector<1x4x1xf32>
    %537 = vector.broadcast %533 : vector<1x1x256xf32> to vector<1x4x256xf32>
    %538 = vector.broadcast %536 : vector<1x4x1xf32> to vector<1x4x256xf32>
    %539 = arith.mulf %537, %538 : vector<1x4x256xf32>
    %540 = arith.addf %532, %539 : vector<1x4x256xf32>
    %541 = vector.extract_strided_slice %389 {offsets = [0, 0, 0], sizes = [1, 1, 256], strides = [1, 1, 1]} : vector<1x4x256xf32> to vector<1x1x256xf32>
    %542 = vector.extract_strided_slice %390 {offsets = [4, 0, 0, 0], sizes = [1, 1, 4, 1], strides = [1, 1, 1, 1]} : vector<9x4x4x1xf32> to vector<1x1x4x1xf32>
    %543 = vector.shape_cast %542 : vector<1x1x4x1xf32> to vector<4x1xf32>
    %544 = vector.shape_cast %543 : vector<4x1xf32> to vector<1x4x1xf32>
    %545 = vector.broadcast %541 : vector<1x1x256xf32> to vector<1x4x256xf32>
    %546 = vector.broadcast %544 : vector<1x4x1xf32> to vector<1x4x256xf32>
    %547 = arith.mulf %545, %546 : vector<1x4x256xf32>
    %548 = arith.addf %540, %547 : vector<1x4x256xf32>
    %549 = vector.extract_strided_slice %389 {offsets = [0, 1, 0], sizes = [1, 1, 256], strides = [1, 1, 1]} : vector<1x4x256xf32> to vector<1x1x256xf32>
    %550 = vector.extract_strided_slice %390 {offsets = [4, 1, 0, 0], sizes = [1, 1, 4, 1], strides = [1, 1, 1, 1]} : vector<9x4x4x1xf32> to vector<1x1x4x1xf32>
    %551 = vector.shape_cast %550 : vector<1x1x4x1xf32> to vector<4x1xf32>
    %552 = vector.shape_cast %551 : vector<4x1xf32> to vector<1x4x1xf32>
    %553 = vector.broadcast %549 : vector<1x1x256xf32> to vector<1x4x256xf32>
    %554 = vector.broadcast %552 : vector<1x4x1xf32> to vector<1x4x256xf32>
    %555 = arith.mulf %553, %554 : vector<1x4x256xf32>
    %556 = arith.addf %548, %555 : vector<1x4x256xf32>
    %557 = vector.extract_strided_slice %389 {offsets = [0, 2, 0], sizes = [1, 1, 256], strides = [1, 1, 1]} : vector<1x4x256xf32> to vector<1x1x256xf32>
    %558 = vector.extract_strided_slice %390 {offsets = [4, 2, 0, 0], sizes = [1, 1, 4, 1], strides = [1, 1, 1, 1]} : vector<9x4x4x1xf32> to vector<1x1x4x1xf32>
    %559 = vector.shape_cast %558 : vector<1x1x4x1xf32> to vector<4x1xf32>
    %560 = vector.shape_cast %559 : vector<4x1xf32> to vector<1x4x1xf32>
    %561 = vector.broadcast %557 : vector<1x1x256xf32> to vector<1x4x256xf32>
    %562 = vector.broadcast %560 : vector<1x4x1xf32> to vector<1x4x256xf32>
    %563 = arith.mulf %561, %562 : vector<1x4x256xf32>
    %564 = arith.addf %556, %563 : vector<1x4x256xf32>
    %565 = vector.extract_strided_slice %389 {offsets = [0, 3, 0], sizes = [1, 1, 256], strides = [1, 1, 1]} : vector<1x4x256xf32> to vector<1x1x256xf32>
    %566 = vector.extract_strided_slice %390 {offsets = [4, 3, 0, 0], sizes = [1, 1, 4, 1], strides = [1, 1, 1, 1]} : vector<9x4x4x1xf32> to vector<1x1x4x1xf32>
    %567 = vector.shape_cast %566 : vector<1x1x4x1xf32> to vector<4x1xf32>
    %568 = vector.shape_cast %567 : vector<4x1xf32> to vector<1x4x1xf32>
    %569 = vector.broadcast %565 : vector<1x1x256xf32> to vector<1x4x256xf32>
    %570 = vector.broadcast %568 : vector<1x4x1xf32> to vector<1x4x256xf32>
    %571 = arith.mulf %569, %570 : vector<1x4x256xf32>
    %572 = arith.addf %564, %571 : vector<1x4x256xf32>
    %c255_i32_34 = arith.constant 255 : i32
    %573 = tpu.dynamic_rotate %389 by %c255_i32_34 dim 2 : vector<1x4x256xf32>, i32 -> vector<1x4x256xf32>
    %574 = vector.extract_strided_slice %0 {offsets = [5, 0], sizes = [1, 256], strides = [1, 1]} : vector<9x256xf32> to vector<1x256xf32>
    %575 = vector.shape_cast %574 : vector<1x256xf32> to vector<1x1x256xf32>
    %576 = vector.broadcast %575 : vector<1x1x256xf32> to vector<1x4x256xf32>
    %577 = arith.mulf %573, %576 : vector<1x4x256xf32>
    %578 = vector.extract_strided_slice %577 {offsets = [0, 0, 0], sizes = [1, 1, 256], strides = [1, 1, 1]} : vector<1x4x256xf32> to vector<1x1x256xf32>
    %579 = vector.extract_strided_slice %390 {offsets = [5, 0, 0, 0], sizes = [1, 1, 4, 1], strides = [1, 1, 1, 1]} : vector<9x4x4x1xf32> to vector<1x1x4x1xf32>
    %580 = vector.shape_cast %579 : vector<1x1x4x1xf32> to vector<4x1xf32>
    %581 = vector.shape_cast %580 : vector<4x1xf32> to vector<1x4x1xf32>
    %582 = vector.broadcast %578 : vector<1x1x256xf32> to vector<1x4x256xf32>
    %583 = vector.broadcast %581 : vector<1x4x1xf32> to vector<1x4x256xf32>
    %584 = arith.mulf %582, %583 : vector<1x4x256xf32>
    %585 = arith.addf %572, %584 : vector<1x4x256xf32>
    %586 = vector.extract_strided_slice %577 {offsets = [0, 1, 0], sizes = [1, 1, 256], strides = [1, 1, 1]} : vector<1x4x256xf32> to vector<1x1x256xf32>
    %587 = vector.extract_strided_slice %390 {offsets = [5, 1, 0, 0], sizes = [1, 1, 4, 1], strides = [1, 1, 1, 1]} : vector<9x4x4x1xf32> to vector<1x1x4x1xf32>
    %588 = vector.shape_cast %587 : vector<1x1x4x1xf32> to vector<4x1xf32>
    %589 = vector.shape_cast %588 : vector<4x1xf32> to vector<1x4x1xf32>
    %590 = vector.broadcast %586 : vector<1x1x256xf32> to vector<1x4x256xf32>
    %591 = vector.broadcast %589 : vector<1x4x1xf32> to vector<1x4x256xf32>
    %592 = arith.mulf %590, %591 : vector<1x4x256xf32>
    %593 = arith.addf %585, %592 : vector<1x4x256xf32>
    %594 = vector.extract_strided_slice %577 {offsets = [0, 2, 0], sizes = [1, 1, 256], strides = [1, 1, 1]} : vector<1x4x256xf32> to vector<1x1x256xf32>
    %595 = vector.extract_strided_slice %390 {offsets = [5, 2, 0, 0], sizes = [1, 1, 4, 1], strides = [1, 1, 1, 1]} : vector<9x4x4x1xf32> to vector<1x1x4x1xf32>
    %596 = vector.shape_cast %595 : vector<1x1x4x1xf32> to vector<4x1xf32>
    %597 = vector.shape_cast %596 : vector<4x1xf32> to vector<1x4x1xf32>
    %598 = vector.broadcast %594 : vector<1x1x256xf32> to vector<1x4x256xf32>
    %599 = vector.broadcast %597 : vector<1x4x1xf32> to vector<1x4x256xf32>
    %600 = arith.mulf %598, %599 : vector<1x4x256xf32>
    %601 = arith.addf %593, %600 : vector<1x4x256xf32>
    %602 = vector.extract_strided_slice %577 {offsets = [0, 3, 0], sizes = [1, 1, 256], strides = [1, 1, 1]} : vector<1x4x256xf32> to vector<1x1x256xf32>
    %603 = vector.extract_strided_slice %390 {offsets = [5, 3, 0, 0], sizes = [1, 1, 4, 1], strides = [1, 1, 1, 1]} : vector<9x4x4x1xf32> to vector<1x1x4x1xf32>
    %604 = vector.shape_cast %603 : vector<1x1x4x1xf32> to vector<4x1xf32>
    %605 = vector.shape_cast %604 : vector<4x1xf32> to vector<1x4x1xf32>
    %606 = vector.broadcast %602 : vector<1x1x256xf32> to vector<1x4x256xf32>
    %607 = vector.broadcast %605 : vector<1x4x1xf32> to vector<1x4x256xf32>
    %608 = arith.mulf %606, %607 : vector<1x4x256xf32>
    %609 = arith.addf %601, %608 : vector<1x4x256xf32>
    %c241_i32_35 = arith.constant 241 : i32
    %610 = tpu.dynamic_rotate %389 by %c241_i32_35 dim 2 : vector<1x4x256xf32>, i32 -> vector<1x4x256xf32>
    %611 = vector.extract_strided_slice %0 {offsets = [6, 0], sizes = [1, 256], strides = [1, 1]} : vector<9x256xf32> to vector<1x256xf32>
    %612 = vector.shape_cast %611 : vector<1x256xf32> to vector<1x1x256xf32>
    %613 = vector.broadcast %612 : vector<1x1x256xf32> to vector<1x4x256xf32>
    %614 = arith.mulf %610, %613 : vector<1x4x256xf32>
    %615 = vector.extract_strided_slice %614 {offsets = [0, 0, 0], sizes = [1, 1, 256], strides = [1, 1, 1]} : vector<1x4x256xf32> to vector<1x1x256xf32>
    %616 = vector.extract_strided_slice %390 {offsets = [6, 0, 0, 0], sizes = [1, 1, 4, 1], strides = [1, 1, 1, 1]} : vector<9x4x4x1xf32> to vector<1x1x4x1xf32>
    %617 = vector.shape_cast %616 : vector<1x1x4x1xf32> to vector<4x1xf32>
    %618 = vector.shape_cast %617 : vector<4x1xf32> to vector<1x4x1xf32>
    %619 = vector.broadcast %615 : vector<1x1x256xf32> to vector<1x4x256xf32>
    %620 = vector.broadcast %618 : vector<1x4x1xf32> to vector<1x4x256xf32>
    %621 = arith.mulf %619, %620 : vector<1x4x256xf32>
    %622 = arith.addf %609, %621 : vector<1x4x256xf32>
    %623 = vector.extract_strided_slice %614 {offsets = [0, 1, 0], sizes = [1, 1, 256], strides = [1, 1, 1]} : vector<1x4x256xf32> to vector<1x1x256xf32>
    %624 = vector.extract_strided_slice %390 {offsets = [6, 1, 0, 0], sizes = [1, 1, 4, 1], strides = [1, 1, 1, 1]} : vector<9x4x4x1xf32> to vector<1x1x4x1xf32>
    %625 = vector.shape_cast %624 : vector<1x1x4x1xf32> to vector<4x1xf32>
    %626 = vector.shape_cast %625 : vector<4x1xf32> to vector<1x4x1xf32>
    %627 = vector.broadcast %623 : vector<1x1x256xf32> to vector<1x4x256xf32>
    %628 = vector.broadcast %626 : vector<1x4x1xf32> to vector<1x4x256xf32>
    %629 = arith.mulf %627, %628 : vector<1x4x256xf32>
    %630 = arith.addf %622, %629 : vector<1x4x256xf32>
    %631 = vector.extract_strided_slice %614 {offsets = [0, 2, 0], sizes = [1, 1, 256], strides = [1, 1, 1]} : vector<1x4x256xf32> to vector<1x1x256xf32>
    %632 = vector.extract_strided_slice %390 {offsets = [6, 2, 0, 0], sizes = [1, 1, 4, 1], strides = [1, 1, 1, 1]} : vector<9x4x4x1xf32> to vector<1x1x4x1xf32>
    %633 = vector.shape_cast %632 : vector<1x1x4x1xf32> to vector<4x1xf32>
    %634 = vector.shape_cast %633 : vector<4x1xf32> to vector<1x4x1xf32>
    %635 = vector.broadcast %631 : vector<1x1x256xf32> to vector<1x4x256xf32>
    %636 = vector.broadcast %634 : vector<1x4x1xf32> to vector<1x4x256xf32>
    %637 = arith.mulf %635, %636 : vector<1x4x256xf32>
    %638 = arith.addf %630, %637 : vector<1x4x256xf32>
    %639 = vector.extract_strided_slice %614 {offsets = [0, 3, 0], sizes = [1, 1, 256], strides = [1, 1, 1]} : vector<1x4x256xf32> to vector<1x1x256xf32>
    %640 = vector.extract_strided_slice %390 {offsets = [6, 3, 0, 0], sizes = [1, 1, 4, 1], strides = [1, 1, 1, 1]} : vector<9x4x4x1xf32> to vector<1x1x4x1xf32>
    %641 = vector.shape_cast %640 : vector<1x1x4x1xf32> to vector<4x1xf32>
    %642 = vector.shape_cast %641 : vector<4x1xf32> to vector<1x4x1xf32>
    %643 = vector.broadcast %639 : vector<1x1x256xf32> to vector<1x4x256xf32>
    %644 = vector.broadcast %642 : vector<1x4x1xf32> to vector<1x4x256xf32>
    %645 = arith.mulf %643, %644 : vector<1x4x256xf32>
    %646 = arith.addf %638, %645 : vector<1x4x256xf32>
    %c240_i32_36 = arith.constant 240 : i32
    %647 = tpu.dynamic_rotate %389 by %c240_i32_36 dim 2 : vector<1x4x256xf32>, i32 -> vector<1x4x256xf32>
    %648 = vector.extract_strided_slice %0 {offsets = [7, 0], sizes = [1, 256], strides = [1, 1]} : vector<9x256xf32> to vector<1x256xf32>
    %649 = vector.shape_cast %648 : vector<1x256xf32> to vector<1x1x256xf32>
    %650 = vector.broadcast %649 : vector<1x1x256xf32> to vector<1x4x256xf32>
    %651 = arith.mulf %647, %650 : vector<1x4x256xf32>
    %652 = vector.extract_strided_slice %651 {offsets = [0, 0, 0], sizes = [1, 1, 256], strides = [1, 1, 1]} : vector<1x4x256xf32> to vector<1x1x256xf32>
    %653 = vector.extract_strided_slice %390 {offsets = [7, 0, 0, 0], sizes = [1, 1, 4, 1], strides = [1, 1, 1, 1]} : vector<9x4x4x1xf32> to vector<1x1x4x1xf32>
    %654 = vector.shape_cast %653 : vector<1x1x4x1xf32> to vector<4x1xf32>
    %655 = vector.shape_cast %654 : vector<4x1xf32> to vector<1x4x1xf32>
    %656 = vector.broadcast %652 : vector<1x1x256xf32> to vector<1x4x256xf32>
    %657 = vector.broadcast %655 : vector<1x4x1xf32> to vector<1x4x256xf32>
    %658 = arith.mulf %656, %657 : vector<1x4x256xf32>
    %659 = arith.addf %646, %658 : vector<1x4x256xf32>
    %660 = vector.extract_strided_slice %651 {offsets = [0, 1, 0], sizes = [1, 1, 256], strides = [1, 1, 1]} : vector<1x4x256xf32> to vector<1x1x256xf32>
    %661 = vector.extract_strided_slice %390 {offsets = [7, 1, 0, 0], sizes = [1, 1, 4, 1], strides = [1, 1, 1, 1]} : vector<9x4x4x1xf32> to vector<1x1x4x1xf32>
    %662 = vector.shape_cast %661 : vector<1x1x4x1xf32> to vector<4x1xf32>
    %663 = vector.shape_cast %662 : vector<4x1xf32> to vector<1x4x1xf32>
    %664 = vector.broadcast %660 : vector<1x1x256xf32> to vector<1x4x256xf32>
    %665 = vector.broadcast %663 : vector<1x4x1xf32> to vector<1x4x256xf32>
    %666 = arith.mulf %664, %665 : vector<1x4x256xf32>
    %667 = arith.addf %659, %666 : vector<1x4x256xf32>
    %668 = vector.extract_strided_slice %651 {offsets = [0, 2, 0], sizes = [1, 1, 256], strides = [1, 1, 1]} : vector<1x4x256xf32> to vector<1x1x256xf32>
    %669 = vector.extract_strided_slice %390 {offsets = [7, 2, 0, 0], sizes = [1, 1, 4, 1], strides = [1, 1, 1, 1]} : vector<9x4x4x1xf32> to vector<1x1x4x1xf32>
    %670 = vector.shape_cast %669 : vector<1x1x4x1xf32> to vector<4x1xf32>
    %671 = vector.shape_cast %670 : vector<4x1xf32> to vector<1x4x1xf32>
    %672 = vector.broadcast %668 : vector<1x1x256xf32> to vector<1x4x256xf32>
    %673 = vector.broadcast %671 : vector<1x4x1xf32> to vector<1x4x256xf32>
    %674 = arith.mulf %672, %673 : vector<1x4x256xf32>
    %675 = arith.addf %667, %674 : vector<1x4x256xf32>
    %676 = vector.extract_strided_slice %651 {offsets = [0, 3, 0], sizes = [1, 1, 256], strides = [1, 1, 1]} : vector<1x4x256xf32> to vector<1x1x256xf32>
    %677 = vector.extract_strided_slice %390 {offsets = [7, 3, 0, 0], sizes = [1, 1, 4, 1], strides = [1, 1, 1, 1]} : vector<9x4x4x1xf32> to vector<1x1x4x1xf32>
    %678 = vector.shape_cast %677 : vector<1x1x4x1xf32> to vector<4x1xf32>
    %679 = vector.shape_cast %678 : vector<4x1xf32> to vector<1x4x1xf32>
    %680 = vector.broadcast %676 : vector<1x1x256xf32> to vector<1x4x256xf32>
    %681 = vector.broadcast %679 : vector<1x4x1xf32> to vector<1x4x256xf32>
    %682 = arith.mulf %680, %681 : vector<1x4x256xf32>
    %683 = arith.addf %675, %682 : vector<1x4x256xf32>
    %c239_i32_37 = arith.constant 239 : i32
    %684 = tpu.dynamic_rotate %389 by %c239_i32_37 dim 2 : vector<1x4x256xf32>, i32 -> vector<1x4x256xf32>
    %685 = vector.extract_strided_slice %0 {offsets = [8, 0], sizes = [1, 256], strides = [1, 1]} : vector<9x256xf32> to vector<1x256xf32>
    %686 = vector.shape_cast %685 : vector<1x256xf32> to vector<1x1x256xf32>
    %687 = vector.broadcast %686 : vector<1x1x256xf32> to vector<1x4x256xf32>
    %688 = arith.mulf %684, %687 : vector<1x4x256xf32>
    %689 = vector.extract_strided_slice %688 {offsets = [0, 0, 0], sizes = [1, 1, 256], strides = [1, 1, 1]} : vector<1x4x256xf32> to vector<1x1x256xf32>
    %690 = vector.extract_strided_slice %390 {offsets = [8, 0, 0, 0], sizes = [1, 1, 4, 1], strides = [1, 1, 1, 1]} : vector<9x4x4x1xf32> to vector<1x1x4x1xf32>
    %691 = vector.shape_cast %690 : vector<1x1x4x1xf32> to vector<4x1xf32>
    %692 = vector.shape_cast %691 : vector<4x1xf32> to vector<1x4x1xf32>
    %693 = vector.broadcast %689 : vector<1x1x256xf32> to vector<1x4x256xf32>
    %694 = vector.broadcast %692 : vector<1x4x1xf32> to vector<1x4x256xf32>
    %695 = arith.mulf %693, %694 : vector<1x4x256xf32>
    %696 = arith.addf %683, %695 : vector<1x4x256xf32>
    %697 = vector.extract_strided_slice %688 {offsets = [0, 1, 0], sizes = [1, 1, 256], strides = [1, 1, 1]} : vector<1x4x256xf32> to vector<1x1x256xf32>
    %698 = vector.extract_strided_slice %390 {offsets = [8, 1, 0, 0], sizes = [1, 1, 4, 1], strides = [1, 1, 1, 1]} : vector<9x4x4x1xf32> to vector<1x1x4x1xf32>
    %699 = vector.shape_cast %698 : vector<1x1x4x1xf32> to vector<4x1xf32>
    %700 = vector.shape_cast %699 : vector<4x1xf32> to vector<1x4x1xf32>
    %701 = vector.broadcast %697 : vector<1x1x256xf32> to vector<1x4x256xf32>
    %702 = vector.broadcast %700 : vector<1x4x1xf32> to vector<1x4x256xf32>
    %703 = arith.mulf %701, %702 : vector<1x4x256xf32>
    %704 = arith.addf %696, %703 : vector<1x4x256xf32>
    %705 = vector.extract_strided_slice %688 {offsets = [0, 2, 0], sizes = [1, 1, 256], strides = [1, 1, 1]} : vector<1x4x256xf32> to vector<1x1x256xf32>
    %706 = vector.extract_strided_slice %390 {offsets = [8, 2, 0, 0], sizes = [1, 1, 4, 1], strides = [1, 1, 1, 1]} : vector<9x4x4x1xf32> to vector<1x1x4x1xf32>
    %707 = vector.shape_cast %706 : vector<1x1x4x1xf32> to vector<4x1xf32>
    %708 = vector.shape_cast %707 : vector<4x1xf32> to vector<1x4x1xf32>
    %709 = vector.broadcast %705 : vector<1x1x256xf32> to vector<1x4x256xf32>
    %710 = vector.broadcast %708 : vector<1x4x1xf32> to vector<1x4x256xf32>
    %711 = arith.mulf %709, %710 : vector<1x4x256xf32>
    %712 = arith.addf %704, %711 : vector<1x4x256xf32>
    %713 = vector.extract_strided_slice %688 {offsets = [0, 3, 0], sizes = [1, 1, 256], strides = [1, 1, 1]} : vector<1x4x256xf32> to vector<1x1x256xf32>
    %714 = vector.extract_strided_slice %390 {offsets = [8, 3, 0, 0], sizes = [1, 1, 4, 1], strides = [1, 1, 1, 1]} : vector<9x4x4x1xf32> to vector<1x1x4x1xf32>
    %715 = vector.shape_cast %714 : vector<1x1x4x1xf32> to vector<4x1xf32>
    %716 = vector.shape_cast %715 : vector<4x1xf32> to vector<1x4x1xf32>
    %717 = vector.broadcast %713 : vector<1x1x256xf32> to vector<1x4x256xf32>
    %718 = vector.broadcast %716 : vector<1x4x1xf32> to vector<1x4x256xf32>
    %719 = arith.mulf %717, %718 : vector<1x4x256xf32>
    %720 = arith.addf %712, %719 : vector<1x4x256xf32>
    %721 = vector.extract_strided_slice %1 {offsets = [4, 0, 0], sizes = [1, 4, 1], strides = [1, 1, 1]} : vector<6x4x1xf32> to vector<1x4x1xf32>
    %722 = vector.shape_cast %721 : vector<1x4x1xf32> to vector<4x1xf32>
    %723 = vector.extract_strided_slice %1 {offsets = [5, 0, 0], sizes = [1, 4, 1], strides = [1, 1, 1]} : vector<6x4x1xf32> to vector<1x4x1xf32>
    %724 = vector.shape_cast %723 : vector<1x4x1xf32> to vector<4x1xf32>
    %cst_38 = arith.constant dense<0.000000e+00> : vector<1x4xf32>
    %725 = vector.multi_reduction <add>, %720, %cst_38 [2] : vector<1x4x256xf32> to vector<1x4xf32>
    %726 = vector.shape_cast %725 : vector<1x4xf32> to vector<1x4x1xf32>
    %cst_39 = arith.constant 2.560000e+02 : f32
    %727 = vector.broadcast %cst_39 : f32 to vector<1x4x1xf32>
    %728 = arith.divf %726, %727 : vector<1x4x1xf32>
    %729 = vector.broadcast %728 : vector<1x4x1xf32> to vector<1x4x256xf32>
    %730 = arith.subf %720, %729 : vector<1x4x256xf32>
    %731 = arith.mulf %730, %730 : vector<1x4x256xf32>
    %cst_40 = arith.constant dense<0.000000e+00> : vector<1x4xf32>
    %732 = vector.multi_reduction <add>, %731, %cst_40 [2] : vector<1x4x256xf32> to vector<1x4xf32>
    %733 = vector.shape_cast %732 : vector<1x4xf32> to vector<1x4x1xf32>
    %cst_41 = arith.constant 2.560000e+02 : f32
    %734 = vector.broadcast %cst_41 : f32 to vector<1x4x1xf32>
    %735 = arith.divf %733, %734 : vector<1x4x1xf32>
    %cst_42 = arith.constant 9.99999974E-6 : f32
    %736 = vector.broadcast %cst_42 : f32 to vector<1x4x1xf32>
    %737 = arith.addf %735, %736 : vector<1x4x1xf32>
    %738 = math.rsqrt %737 : vector<1x4x1xf32>
    %739 = vector.broadcast %738 : vector<1x4x1xf32> to vector<1x4x256xf32>
    %740 = arith.mulf %730, %739 : vector<1x4x256xf32>
    %741 = vector.shape_cast %722 : vector<4x1xf32> to vector<1x4x1xf32>
    %742 = vector.broadcast %741 : vector<1x4x1xf32> to vector<1x4x256xf32>
    %743 = arith.mulf %740, %742 : vector<1x4x256xf32>
    %744 = vector.shape_cast %724 : vector<4x1xf32> to vector<1x4x1xf32>
    %745 = vector.broadcast %744 : vector<1x4x1xf32> to vector<1x4x256xf32>
    %746 = arith.addf %743, %745 : vector<1x4x256xf32>
    %c0_43 = arith.constant 0 : index
    %c0_44 = arith.constant 0 : index
    %c0_45 = arith.constant 0 : index
    %747 = vector.load %arg8[%c0_43, %c0_44, %c0_45] : memref<1x4x256xf32, #tpu.memory_space<vmem>>, vector<1x4x256xf32>
    tpu.vector_store %arg8[%c0_43, %c0_44, %c0_45], %746 {strides = array<i32>} : memref<1x4x256xf32, #tpu.memory_space<vmem>>, vector<1x4x256xf32>,
    return
  }
  func.func @transform_0(%arg0: i32) -> (i32, i32, i32) {
    %c0_i32 = arith.constant 0 : i32
    %c0_i32_0 = arith.constant 0 : i32
    %c0_i32_1 = arith.constant 0 : i32
    return %arg0, %c0_i32, %c0_i32_0 : i32, i32, i32
  }
  func.func @transform_1(%arg0: i32) -> (i32, i32) {
    %c0_i32 = arith.constant 0 : i32
    %c0_i32_0 = arith.constant 0 : i32
    %c0_i32_1 = arith.constant 0 : i32
    return %c0_i32, %c0_i32_0 : i32, i32
  }
  func.func @transform_2(%arg0: i32) -> (i32, i32, i32, i32) {
    %c0_i32 = arith.constant 0 : i32
    %c0_i32_0 = arith.constant 0 : i32
    %c0_i32_1 = arith.constant 0 : i32
    %c0_i32_2 = arith.constant 0 : i32
    %c0_i32_3 = arith.constant 0 : i32
    return %c0_i32, %c0_i32_0, %c0_i32_1, %c0_i32_2 : i32, i32, i32, i32
  }
  func.func @transform_3(%arg0: i32) -> (i32, i32) {
    %c0_i32 = arith.constant 0 : i32
    %c0_i32_0 = arith.constant 0 : i32
    %c0_i32_1 = arith.constant 0 : i32
    return %c0_i32, %c0_i32_0 : i32, i32
  }
  func.func @transform_4(%arg0: i32) -> (i32, i32, i32, i32) {
    %c0_i32 = arith.constant 0 : i32
    %c0_i32_0 = arith.constant 0 : i32
    %c0_i32_1 = arith.constant 0 : i32
    %c0_i32_2 = arith.constant 0 : i32
    %c0_i32_3 = arith.constant 0 : i32
    return %c0_i32, %c0_i32_0, %c0_i32_1, %c0_i32_2 : i32, i32, i32, i32
  }
  func.func @transform_5(%arg0: i32) -> (i32, i32) {
    %c0_i32 = arith.constant 0 : i32
    %c0_i32_0 = arith.constant 0 : i32
    %c0_i32_1 = arith.constant 0 : i32
    return %c0_i32, %c0_i32_0 : i32, i32
  }
  func.func @transform_6(%arg0: i32) -> (i32, i32, i32) {
    %c0_i32 = arith.constant 0 : i32
    %c0_i32_0 = arith.constant 0 : i32
    %c0_i32_1 = arith.constant 0 : i32
    %c0_i32_2 = arith.constant 0 : i32
    return %c0_i32, %c0_i32_0, %c0_i32_1 : i32, i32, i32
  }
  func.func @transform_7(%arg0: i32) -> (i32, i32, i32) {
    %c0_i32 = arith.constant 0 : i32
    %c0_i32_0 = arith.constant 0 : i32
    %c0_i32_1 = arith.constant 0 : i32
    return %arg0, %c0_i32, %c0_i32_0 : i32, i32, i32
  }
}

</mosaic_0001>

<bundles_post_ra>
// kernel: tpu_custom_call.1
= control target key start
LH: loop header
LB: loop body
LE: loop exit
PB: predicated region body
PF: predicated region fallthrough
CT: control target
= control target key end

     0   :  { %12 = vsyncpa [#allocation3], 0  ;;  %s3600_s0 = inlined_call_operand.vmem [shape: f32[2,4,256], index: 0, kind: input, shape index: {}]   ;;  %s3601_s1 = inlined_call_operand.vmem [shape: f32[9,256], index: 1, kind: input, shape index: {}]   ;;  %s3602_s2 = inlined_call_operand.vmem [shape: f32[9,4,4,1], index: 2, kind: input, shape index: {}]   ;;  %s3603_s3 = inlined_call_operand.vmem [shape: f32[4,256], index: 3, kind: input, shape index: {}]   ;;  %s3604_s4 = inlined_call_operand.vmem [shape: f32[9,4,4,1], index: 4, kind: input, shape index: {}]   ;;  %s3605_s5 = inlined_call_operand.vmem [shape: f32[4,256], index: 5, kind: input, shape index: {}]   ;;  %s3606_s6 = inlined_call_operand.vmem [shape: f32[6,4,1], index: 6, kind: input, shape index: {}]   ;;  %s3607_s7 = inlined_call_operand.hbm [shape: f32[2,4,256], index: 7, kind: output, shape index: {}]  }
   0x1   :  { %14 = vsyncpa [#allocation3 + $0x1], 0  ;;  %s2559_s24 = smov 0   ;;  %s2561_s25 = smov 0  }
   0x2   :  { %s2563_s26 = smov 0   ;;  %s2565_s27 = smov 0  }
   0x3 LB: > { %s2580_s28 = sadd.s32 4294967295, %s2506_s27   ;;  %s2370_s29 = sadd.s32 4294967294, %s2506_s27   ;;  %s2506_s27 = sphi %s2565_s27, %s3630_s27   ;;  %s2502_s26 = sphi %s2563_s26, %s3629_s26   ;;  %s2498_s25 = sphi %s2561_s25, %s3628_s25   ;;  %s2494_s24 = sphi %s2559_s24, %s3627_s24  }
   0x4   : > { %s2584_s30 = sadd.s32 1, %s2506_s27   ;;  %s179_s8 = sadd.s32 1, %s2502_s26 }
   0x5   : > { %s176_s9 = ssub.s32 %s2506_s27, %s2584_s30  ;;  %p189_p0 = scmp.ne.s32.totalorder %s2502_s26, %s2498_s25 }
   0x6   : > { %p177_p1 = scmp.eq.s32.totalorder %s176_s9, 0  ;;  %p190_p2 = scmp.eq.s32.totalorder %s2580_s28, 1 }
   0x7   : > { %p195_p3 = scmp.ne.s32.totalorder %s2498_s25, %s2494_s24  ;;  %p196_p4 = scmp.eq.s32.totalorder %s2370_s29, 1 }
   0x8   : > { %s2595_s10 = scalar_select %p177_p1, %s2502_s26, %s179_s8  }
   0x9   : > { %p2597_p5 = por %p190_p2, %p189_p0  ;;  %p2601_p6 = por %p196_p4, %p195_p3 }
   0xa   : > { %p2373_p7 = scmp.ge.s32.totalorder %s2506_s27, 1  ;;  %p240_p8 = scmp.lt.s32.totalorder %s2506_s27, 3 }
   0xc   : > { %p241_p9 = pnand %p2373_p7, %p240_p8 }
   0xe   : > { %244 = sbr.rel (%p241_p9) target bundleno = 1458 (0x5b2), region = 48 }
  0x15   : > { %p272_p10 = scmp.lt.s32.totalorder %s2580_s28, 1  ;;  %vm291_vm0 = vcmask 1043456   ;;  %v2508_v5 = vmov 0   ;;  %v281_v6 = vld [vmem:[%s3606_s6] sm:$0xf]  ;;  %v303_v19 = vlaneseq  ;;  %s2510_s9 = smov 17  }
  0x16   : > { %2435 = vset.pattern.permute.xlu1 %v2508_v5  ;;  %2436 = vset.pattern.permute.xlu0 %v2508_v5  ;;  %v282_v7 = vld [vmem:[%s3606_s6 + $0x4] sm:$0xf]  ;;  %v360_v9 = vld [vmem:[%s3602_s2 + $0x8] sm:$0xf]  ;;  %v361_v10 = vld [vmem:[%s3602_s2 + $0xc] sm:$0xf] }
  0x17   : > { %s273_s13 = scalar_select %p272_p10, %s2580_s28, 1  ;;  %333 = vperm.xlu1 %2435, %v281_v6   ;;  %v359_v8 = vld [vmem:[%s3602_s2 + $0x4] sm:$0xf]  ;;  %v362_v11 = vld [vmem:[%s3602_s2 + $0x10] sm:$0xf]  ;;  %v2648_v21 = vshrl.u32 %v303_v19, 7 }
  0x18   : > { %v363_v12 = vld [vmem:[%s3602_s2 + $0x14] sm:$0xf]  ;;  %v364_v13 = vld [vmem:[%s3602_s2 + $0x18] sm:$0xf]  ;;  %v365_v14 = vld [vmem:[%s3602_s2 + $0x1c] sm:$0xf] }
  0x19   : > { %s2384_s14 = sshll.u32 %s273_s13, 3  ;;  %v367_v15 = vld [vmem:[%s3602_s2 + $0x24] sm:$0xf]  ;;  %v369_v16 = vld [vmem:[%s3602_s2 + $0x2c] sm:$0xf]  ;;  %3620 = vst [vmem:[#allocation5_spill] sm:$0xff] %v2648_v21 }
  0x1a   : > { %s276_s17 = scalar_lea.vmem %s3600_s0, %s2384_s14  ;;  %v2509_v17 = vmov 839922192   ;;  %v358_v32 = vld [vmem:[%s3602_s2] sm:$0xf]  ;;  %v368_v34 = vld [vmem:[%s3602_s2 + $0x28] sm:$0xf] }
  0x1b   : > { %v287_v0 = vld [vmem:[%s276_s17] sm:$0xff]  ;;  %346 = vperm.xlu1 %2435, %v282_v7   ;;  %v301_v18 = vunpack.c.l.s4 %v2509_v17  ;;  %v370_v35 = vld [vmem:[%s3602_s2 + $0x30] sm:$0xf]  ;;  %v372_v36 = vld [vmem:[%s3602_s2 + $0x38] sm:$0xf]  ;;  %s2511_s13 = smov 15  }
  0x1c   : > { %v289_v1 = vcombine.high %v287_v0, %v287_v0  ;;  %v292_v2 = vsel %vm291_vm0, %v287_v0, 0.0  ;;  %v366_v33 = vld [vmem:[%s3602_s2 + $0x20] sm:$0xf]  ;;  %v376_v38 = vld [vmem:[%s3602_s2 + $0x48] sm:$0xf]  ;;  %s2512_s16 = smov 16  }
  0x1d   : > { %v302_v20 = vunpack.c.0.s8 %v301_v18  ;;  %v374_v37 = vld [vmem:[%s3602_s2 + $0x40] sm:$0xf]  ;;  %v378_v53 = vld [vmem:[%s3602_s2 + $0x50] sm:$0xf]  ;;  %s2513_s17 = smov 1   ;;  %s3608_s18 = smov 127  }
  0x1e   : > { %v293_v3 = vsel %vm291_vm0, %v289_v1, 0.0  ;;  %v380_v54 = vld [vmem:[%s3602_s2 + $0x58] sm:$0xf]  ;;  %v382_v55 = vld [vmem:[%s3602_s2 + $0x60] sm:$0xf]  ;;  %s3616_s8 = smov 113  }
  0x1f   : > { %v294_v4 = vadd.f32 %v293_v3, %v292_v2  ;;  %447 = vperm.xlu1 %2435, %v359_v8   ;;  %v2651_v22 = vsub.s32 %v302_v20, %v2648_v21  ;;  %v371_v56 = vld [vmem:[%s3602_s2 + $0x34] sm:$0xf]  ;;  %v384_v57 = vld [vmem:[%s3602_s2 + $0x68] sm:$0xf]  ;;  %v373_v58 = vld [vmem:[%s3602_s2 + $0x3c] sm:$0xf] }
  0x20   : > { %v386_v59 = vld [vmem:[%s3602_s2 + $0x70] sm:$0xf]  ;;  %v375_v60 = vld [vmem:[%s3602_s2 + $0x44] sm:$0xf]  ;;  %v377_v61 = vld [vmem:[%s3602_s2 + $0x4c] sm:$0xf] }
  0x21   : > { %295 = vadd.xlane.f32.xlu0 %v294_v4  ;;  %v388_v62 = vld [vmem:[%s3602_s2 + $0x78] sm:$0xf]  ;;  %v379_v63 = vld [vmem:[%s3602_s2 + $0x54] sm:$0xf]  ;;  %s3614_s21 = smov 112   ;;  %s3612_s15 = smov 111  }
  0x22   : > { %v381_v1 = vld [vmem:[%s3602_s2 + $0x5c] sm:$0xf]  ;;  %v392_v2 = vld [vmem:[%s3602_s2 + $0x88] sm:$0xf]  ;;  %v383_v3 = vld [vmem:[%s3602_s2 + $0x64] sm:$0xf] }
  0x23   : > { %467 = vperm.xlu1 %2435, %v360_v9   ;;  %v385_v4 = vld [vmem:[%s3602_s2 + $0x6c] sm:$0xf]  ;;  %v387_v6 = vld [vmem:[%s3602_s2 + $0x74] sm:$0xf]  ;;  %v389_v8 = vld [vmem:[%s3602_s2 + $0x7c] sm:$0xf] }
  0x24   : > { %s3621_s14 = smov 127   ;;  %s3624_s19 = smov 111  }
  0x27   : > { %487 = vperm.xlu1 %2435, %v361_v10   ;;  %v391_v10 = vld [vmem:[%s3602_s2 + $0x84] sm:$0xf] }
  0x2b   : > { %524 = vperm.xlu1 %2435, %v362_v11  }
  0x2f   : > { %544 = vperm.xlu1 %2435, %v363_v12   ;;  %v393_v12 = vld [vmem:[%s3602_s2 + $0x8c] sm:$0xf] }
  0x33   : > { %564 = vperm.xlu1 %2435, %v364_v13  }
  0x37   : > { %584 = vperm.xlu1 %2435, %v365_v14  }
  0x3b   : > { %641 = vperm.xlu1 %2435, %v367_v15  }
  0x3f   : > { %681 = vperm.xlu1 %2435, %v369_v16  }
  0x96   : > { %v334_v42 = vpop.permute.xlu1 %333 }
  0x97   : > { %v341_v45 = vrot.slane %v334_v42, %v2651_v22 }
  0x9a   : > { %v347_v47 = vpop.permute.xlu1 %346 }
  0x9b   : > { %v354_v48 = vrot.slane %v347_v47, %v2651_v22 }
  0x9e   : > { %v448_v5 = vpop.permute.xlu1 %447 }
  0xa2   : > { %v2757_v7 = vpop.permute.xlu1 %467 }
  0xa6   : > { %v2762_v9 = vpop.permute.xlu1 %487 }
  0xaa   : > { %v2769_v11 = vpop.permute.xlu1 %524 }
  0xae   : > { %v296_v23 = vpop.xlane.xlu0 %295  ;;  %v2774_v13 = vpop.permute.xlu1 %544 }
  0xaf   : > { %v298_v24 = vmul.f32 0.00390625, %v296_v23 }
  0xb1   : > { %v306_v25 = vrot.slane %v298_v24, %v2651_v22 }
  0xb2   : > { %v2776_v14 = vpop.permute.xlu1 %564 }
  0xb3   : > { %v308_v26 = vsub.f32 %v287_v0, %v306_v25  ;;  %v390_v0 = vld [vmem:[%s3602_s2 + $0x80] sm:$0xf] }
  0xb5   : > { %v309_v27 = vmul.f32 %v308_v26, %v308_v26 }
  0xb6   : > { %v2778_v16 = vpop.permute.xlu1 %584 }
  0xb7   : > { %v311_v28 = vcombine.high %v309_v27, %v309_v27  ;;  %v313_v29 = vsel %vm291_vm0, %v309_v27, 0.0 }
  0xb9   : > { %v314_v30 = vsel %vm291_vm0, %v311_v28, 0.0 }
  0xba   : > { %v315_v31 = vadd.f32 %v314_v30, %v313_v29  ;;  %v2782_v18 = vpop.permute.xlu1 %641  ;;  %v2795_v30 = vsub.s32 0, %v2648_v21 }
  0xbc   : > { %316 = vadd.xlane.f32.xlu0 %v315_v31  ;;  %v2798_v31 = vand.u32 127, %v303_v19 }
  0xbe   : > { %v2786_v23 = vpop.permute.xlu1 %681  ;;  %vm404_vm1 = vcmp.lt.s32.totalorder %v2798_v31, 17  ;;  %vm598_vm2 = vcmp.lt.s32.totalorder %v2798_v31, 15  ;;  %vm501_vm3 = vcmp.lt.s32.totalorder %v2798_v31, 16  ;;  %vm695_vm4 = vcmp.lt.s32.totalorder %v2798_v31, 1 }
  0xbf   : > { %vm912_vm5 = vcmp.lt.s32.totalorder %v2798_v31, 127  ;;  %vm1009_vm6 = vcmp.lt.s32.totalorder %v2798_v31, 113  ;;  %vm1106_vm7 = vcmp.lt.s32.totalorder %v2798_v31, 112  ;;  %vm1203_vm8 = vcmp.lt.s32.totalorder %v2798_v31, 111 }
  0xd2   : > { %427 = vperm.xlu0 %2436, %v358_v32  }
  0xd6   : > { %621 = vperm.xlu0 %2436, %v366_v33   ;;  %v2805_v33 = vld [vmem:[%s3601_s1] sm:$0xff] }
  0xda   : > { %661 = vperm.xlu0 %2436, %v368_v34   ;;  %v2810_v34 = vld [vmem:[%s3601_s1 + $0x8] sm:$0xff] }
  0xdb   : > { %v2819_v19 = vrot.slane %v2810_v34, %v2795_v30 }
  0xde   : > { %718 = vperm.xlu0 %2436, %v370_v35   ;;  %v2815_v35 = vrot.slane %v2805_v33, %v2795_v30 }
  0xe2   : > { %758 = vperm.xlu0 %2436, %v372_v36  }
  0xe6   : > { %808 = vperm.xlu0 %2436, %v374_v37  }
  0xea   : > { %868 = vperm.xlu0 %2436, %v376_v38  }
 0x149   : > { %v317_v39 = vpop.xlane.xlu0 %316 }
 0x14a   : > { %v318_v40 = vmul.f32 0.00390625, %v317_v39 }
 0x14c   : > { %v319_v41 = vadd.f32 1e-05, %v318_v40 }
 0x14e   : > { %2438 = vrsqrt.f32 %v319_v41 }
 0x151   : > { %v428_v15 = vpop.permute.xlu0 %427 }
 0x155   : > { %v2780_v17 = vpop.permute.xlu0 %621 }
 0x158   : > { %v2439_v43 = vpop.eup %2438 }
 0x159   : > { %v328_v44 = vrot.slane %v2439_v43, %v2651_v22  ;;  %v2784_v20 = vpop.permute.xlu0 %661 }
 0x15b   : > { %v330_v46 = vmul.f32 %v328_v44, %v308_v26 }
 0x15d   : > { %v343_v49 = vmul.f32 %v341_v45, %v330_v46  ;;  %v2788_v24 = vpop.permute.xlu0 %718  ;;  %v2834_v46 = vsub.s32 1, %v2648_v21 }
 0x15f   : > { %v356_v50 = vadd.f32 %v354_v48, %v343_v49 }
 0x161   : > { %v2680_v51 = vmax.f32 %v356_v50, 0.0  ;;  %v2790_v26 = vpop.permute.xlu0 %758 }
 0x163   : > { %398 = vrot.lane.b32.xlu1 %v2680_v51, %s2510_s9  ;;  %v396_v52 = vcombine.high %v2680_v51, %v2680_v51 }
 0x165   : > { %596 = vrot.lane.b32.xlu0 %v396_v52, %s2511_s13  ;;  %v2792_v29 = vpop.permute.xlu0 %808 }
 0x167   : > { %497 = vrot.lane.b32.xlu1 %v2680_v51, %s2512_s16 }
 0x169   : > { %935 = vperm.xlu0 %2436, %v378_v53   ;;  %v2821_v36 = vpop.permute.xlu0 %868 }
 0x16b   : > { %594 = vrot.lane.b32.xlu1 %v2680_v51, %s2511_s13 }
 0x16d   : > { %693 = vrot.lane.b32.xlu0 %v396_v52, %s2513_s17 }
 0x16f   : > { %691 = vrot.lane.b32.xlu1 %v2680_v51, %s2513_s17 }
 0x171   : > { %975 = vperm.xlu0 %2436, %v380_v54   ;;  %v2842_v54 = vsub.s32 3, %v2648_v21 }
 0x173   : > { %400 = vrot.lane.b32.xlu1 %v396_v52, %s2510_s9 }
 0x175   : > { %1032 = vperm.xlu0 %2436, %v382_v55   ;;  %v394_v55 = vld [vmem:[%s3603_s3] sm:$0xff] }
 0x177   : > { %738 = vperm.xlu1 %2435, %v371_v56  }
 0x179   : > { %1072 = vperm.xlu0 %2436, %v384_v57  }
 0x17b   : > { %499 = vrot.lane.b32.xlu1 %v396_v52, %s2512_s16 }
 0x17d   : > { %910 = vrot.lane.b32.xlu0 %v396_v52, %s3608_s18 }
 0x17f   : > { %778 = vperm.xlu1 %2435, %v373_v58  }
 0x181   : > { %1129 = vperm.xlu0 %2436, %v386_v59  }
 0x183   : > { %838 = vperm.xlu1 %2435, %v375_v60  }
 0x185   : > { %1007 = vrot.lane.b32.xlu0 %v396_v52, %s3616_s8 }
 0x187   : > { %898 = vperm.xlu1 %2435, %v377_v61  }
 0x189   : > { %1169 = vperm.xlu0 %2436, %v388_v62  }
 0x18b   : > { %908 = vrot.lane.b32.xlu1 %v2680_v51, %s3608_s18  ;;  %s269_s18 = sand.u32 1, %s2498_s25  }
 0x18d   : > { %1104 = vrot.lane.b32.xlu0 %v396_v52, %s3614_s21 }
 0x18f   : > { %955 = vperm.xlu1 %2435, %v379_v63  }
 0x191   : > { %1226 = vperm.xlu0 %2436, %v390_v0  }
 0x193   : > { %995 = vperm.xlu1 %2435, %v381_v1  }
 0x195   : > { %1201 = vrot.lane.b32.xlu0 %v396_v52, %s3612_s15  ;;  %v2839_v52 = vsub.s32 2, %v2648_v21 }
 0x197   : > { %1005 = vrot.lane.b32.xlu1 %v2680_v51, %s3616_s8 }
 0x199   : > { %1266 = vperm.xlu0 %2436, %v392_v2  }
 0x19b   : > { %1052 = vperm.xlu1 %2435, %v383_v3  }
 0x19f   : > { %1092 = vperm.xlu1 %2435, %v385_v4   ;;  %v2860_v4 = vrot.slane %v2805_v33, %v2839_v52 }
 0x1a3   : > { %1102 = vrot.lane.b32.xlu1 %v2680_v51, %s3614_s21 }
 0x1a7   : > { %1149 = vperm.xlu1 %2435, %v387_v6   ;;  %v2867_v6 = vrot.slane %v2805_v33, %v2834_v46 }
 0x1ab   : > { %1189 = vperm.xlu1 %2435, %v389_v8   ;;  %v2871_v8 = vrot.slane %v2810_v34, %v2834_v46 }
 0x1af   : > { %1199 = vrot.lane.b32.xlu1 %v2680_v51, %s3612_s15 }
 0x1b3   : > { %1246 = vperm.xlu1 %2435, %v391_v10   ;;  %v2875_v10 = vrot.slane %v2810_v34, %v2839_v52 }
 0x1b7   : > { %1286 = vperm.xlu1 %2435, %v393_v12  }
 0x1d5   : > { %v399_v25 = vpop.permute.xlu1 %398 }
 0x1d7   : > { %v597_v42 = vpop.permute.xlu0 %596 }
 0x1d9   : > { %v498_v27 = vpop.permute.xlu1 %497 }
 0x1dd   : > { %v595_v28 = vpop.permute.xlu1 %594 }
 0x1e1   : > { %v2800_v32 = vpop.permute.xlu1 %691 }
 0x1e5   : > { %v401_v37 = vpop.permute.xlu1 %400 }
 0x1e6   : > { %v405_v38 = vsel %vm404_vm1, %v399_v25, %v401_v37  ;;  %v406_v39 = vsel %vm404_vm1, %v401_v37, %v399_v25  ;;  %v3610_v25 = vsub.s32 4, %v2648_v21  ;;  %v599_v37 = vsel %vm598_vm2, %v595_v28, %v597_v42 }
 0x1e7   : > { %v415_v40 = vmul.f32 %v2815_v35, %v406_v39  ;;  %v416_v41 = vmul.f32 %v2819_v19, %v405_v38  ;;  %v600_v38 = vsel %vm598_vm2, %v597_v42, %v595_v28  ;;  %v2901_v42 = vmul.f32 %v2875_v10, %v599_v37 }
 0x1e8   : > { %v2831_v45 = vpop.permute.xlu0 %935  ;;  %v2898_v28 = vmul.f32 %v2860_v4, %v600_v38  ;;  %v2925_v37 = vrot.slane %v2805_v33, %v2842_v54  ;;  %v2929_v38 = vrot.slane %v2810_v34, %v2842_v54 }
 0x1e9   : > { %v420_v43 = vrot.slane %v415_v40, %v2795_v30  ;;  %v424_v44 = vrot.slane %v416_v41, %v2795_v30  ;;  %v440_v49 = vrot.slane %v415_v40, %v2834_v46  ;;  %v444_v50 = vrot.slane %v416_v41, %v2834_v46 }
 0x1ea   : > { %v460_v59 = vrot.slane %v415_v40, %v2839_v52  ;;  %v464_v60 = vrot.slane %v416_v41, %v2839_v52  ;;  %v480_v62 = vrot.slane %v415_v40, %v2842_v54  ;;  %v484_v63 = vrot.slane %v416_v41, %v2842_v54 }
 0x1eb   : > { %v430_v47 = vmul.f32 %v428_v15, %v420_v43  ;;  %v431_v48 = vmul.f32 %v428_v15, %v424_v44  ;;  %v450_v57 = vmul.f32 %v448_v5, %v440_v49  ;;  %v451_v58 = vmul.f32 %v448_v5, %v444_v50 }
 0x1ec   : > { %v2847_v56 = vpop.permute.xlu0 %693  ;;  %v470_v2 = vmul.f32 %v2757_v7, %v460_v59  ;;  %v471_v3 = vmul.f32 %v2757_v7, %v464_v60  ;;  %v490_v12 = vmul.f32 %v2762_v9, %v480_v62  ;;  %v491_v15 = vmul.f32 %v2762_v9, %v484_v63 }
 0x1ed   : > { %v434_v53 = vcombine.low %v430_v47, %v431_v48  ;;  %v454_v1 = vcombine.low %v450_v57, %v451_v58  ;;  %v2885_v40 = vsub.s32 6, %v2648_v21  ;;  %v2895_v48 = vsub.s32 5, %v2648_v21 }
 0x1ee   : > { %v474_v41 = vcombine.low %v470_v2, %v471_v3  ;;  %v494_v50 = vcombine.low %v490_v12, %v491_v15  ;;  %v614_v12 = vrot.slane %v2898_v28, %v2795_v30  ;;  %v618_v15 = vrot.slane %v2901_v42, %v2795_v30 }
 0x1ef   : > { %v436_v61 = vadd.f32 %v434_v53, %v394_v55 }
 0x1f0   : > { %v2862_v5 = vpop.permute.xlu0 %975 }
 0x1f1   : > { %v456_v7 = vadd.f32 %v454_v1, %v436_v61 }
 0x1f3   : > { %v476_v49 = vadd.f32 %v474_v41, %v456_v7 }
 0x1f4   : > { %v2903_v53 = vpop.permute.xlu0 %1032 }
 0x1f6   : > { %v2853_v0 = vpop.permute.xlu1 %738 }
 0x1fa   : > { %v500_v39 = vpop.permute.xlu1 %499 }
 0x1fb   : > { %v502_v43 = vsel %vm501_vm3, %v498_v27, %v500_v39  ;;  %v503_v44 = vsel %vm501_vm3, %v500_v39, %v498_v27  ;;  %v496_v39 = vadd.f32 %v494_v50, %v476_v49  ;;  %v697_v49 = vsel %vm695_vm4, %v2847_v56, %v2800_v32  ;;  %v2947_v50 = vpop.permute.xlu0 %1072 }
 0x1fc   : > { %v512_v9 = vmul.f32 %v2867_v6, %v503_v44  ;;  %v513_v47 = vmul.f32 %v2871_v8, %v502_v43  ;;  %v634_v44 = vrot.slane %v2898_v28, %v2834_v46 }
 0x1fe   : > { %v517_v27 = vrot.slane %v512_v9, %v2795_v30  ;;  %v521_v55 = vrot.slane %v513_v47, %v2795_v30  ;;  %v537_v57 = vrot.slane %v512_v9, %v2834_v46  ;;  %v541_v58 = vrot.slane %v513_v47, %v2834_v46  ;;  %v2909_v59 = vpop.permute.xlu1 %778 }
 0x1ff   : > { %v557_v60 = vrot.slane %v512_v9, %v2839_v52  ;;  %v561_v61 = vrot.slane %v513_v47, %v2839_v52  ;;  %v577_v62 = vrot.slane %v512_v9, %v2842_v54  ;;  %v581_v63 = vrot.slane %v513_v47, %v2842_v54 }
 0x200   : > { %v527_v1 = vmul.f32 %v2769_v11, %v517_v27  ;;  %v528_v2 = vmul.f32 %v2769_v11, %v521_v55  ;;  %v547_v3 = vmul.f32 %v2774_v13, %v537_v57  ;;  %v548_v7 = vmul.f32 %v2774_v13, %v541_v58 }
 0x201   : > { %v567_v41 = vmul.f32 %v2776_v14, %v557_v60  ;;  %v568_v13 = vmul.f32 %v2776_v14, %v561_v61  ;;  %v638_v9 = vrot.slane %v2901_v42, %v2834_v46  ;;  %v696_v47 = vsel %vm695_vm4, %v2800_v32, %v2847_v56 }
 0x202   : > { %v531_v11 = vcombine.low %v527_v1, %v528_v2  ;;  %v2933_v43 = vpop.permute.xlu1 %838  ;;  %v551_v27 = vcombine.low %v547_v3, %v548_v7  ;;  %v587_v55 = vmul.f32 %v2778_v16, %v577_v62  ;;  %v588_v57 = vmul.f32 %v2778_v16, %v581_v63 }
 0x203   : > { %v624_v58 = vmul.f32 %v2780_v17, %v614_v12  ;;  %v625_v60 = vmul.f32 %v2780_v17, %v618_v15  ;;  %v654_v61 = vrot.slane %v2898_v28, %v2839_v52  ;;  %v658_v1 = vrot.slane %v2901_v42, %v2839_v52 }
 0x204   : > { %v533_v14 = vadd.f32 %v531_v11, %v496_v39  ;;  %v2958_v32 = vmul.f32 %v2925_v37, %v697_v49  ;;  %v2961_v56 = vmul.f32 %v2929_v38, %v696_v47  ;;  %v571_v62 = vcombine.low %v567_v41, %v568_v13 }
 0x205   : > { %v791_v16 = vrot.slane %v2680_v51, %v2795_v30  ;;  %v674_v17 = vrot.slane %v2898_v28, %v2842_v54  ;;  %v678_v63 = vrot.slane %v2901_v42, %v2842_v54  ;;  %v2972_v7 = vsub.s32 7, %v2648_v21 }
 0x206   : > { %v553_v2 = vadd.f32 %v551_v27, %v533_v14  ;;  %v2963_v3 = vpop.permute.xlu1 %898  ;;  %v644_v12 = vmul.f32 %v2782_v18, %v634_v44  ;;  %v645_v15 = vmul.f32 %v2782_v18, %v638_v9  ;;  %v591_v11 = vcombine.low %v587_v55, %v588_v57  ;;  %v911_v9 = vpop.permute.xlu0 %910 }
 0x207   : > { %v795_v41 = vrot.slane %v2680_v51, %v3610_v25  ;;  %v851_v13 = vrot.slane %v2680_v51, %v2839_v52  ;;  %v664_v28 = vmul.f32 %v2784_v20, %v654_v61  ;;  %v665_v42 = vmul.f32 %v2784_v20, %v658_v1 }
 0x208   : > { %v573_v39 = vadd.f32 %v571_v62, %v553_v2  ;;  %v628_v47 = vcombine.low %v624_v58, %v625_v60  ;;  %v711_v49 = vrot.slane %v2958_v32, %v2795_v30  ;;  %v715_v18 = vrot.slane %v2961_v56, %v2795_v30 }
 0x209   : > { %v855_v27 = vrot.slane %v2680_v51, %v2885_v40  ;;  %v821_v55 = vrot.slane %v2680_v51, %v2834_v46  ;;  %v825_v57 = vrot.slane %v2680_v51, %v2895_v48  ;;  %v881_v20 = vrot.slane %v2680_v51, %v2842_v54 }
 0x20a   : > { %v593_v44 = vadd.f32 %v591_v11, %v573_v39  ;;  %v909_v14 = vpop.permute.xlu1 %908  ;;  %v648_v58 = vcombine.low %v644_v12, %v645_v15  ;;  %v684_v60 = vmul.f32 %v2786_v23, %v674_v17  ;;  %v685_v61 = vmul.f32 %v2786_v23, %v678_v63 }
 0x20b   : > { %v668_v2 = vcombine.low %v664_v28, %v665_v42  ;;  %v751_v62 = vrot.slane %v2958_v32, %v2839_v52  ;;  %v755_v39 = vrot.slane %v2961_v56, %v2839_v52  ;;  %v731_v11 = vrot.slane %v2958_v32, %v2834_v46 }
 0x20c   : > { %v630_v1 = vadd.f32 %v628_v47, %v593_v44  ;;  %v721_v25 = vmul.f32 %v2788_v24, %v711_v49  ;;  %v722_v21 = vmul.f32 %v2788_v24, %v715_v18  ;;  %v735_v17 = vrot.slane %v2961_v56, %v2834_v46  ;;  %v3016_v18 = vpop.permute.xlu0 %1129 }
 0x20d   : > { %v801_v63 = vrot.slane %v791_v16, %v2795_v30  ;;  %v805_v15 = vrot.slane %v795_v41, %v2795_v30  ;;  %v885_v28 = vrot.slane %v2680_v51, %v2972_v7  ;;  %v741_v42 = vmul.f32 %v2853_v0, %v731_v11 }
 0x20e   : > { %v650_v12 = vadd.f32 %v648_v58, %v630_v1  ;;  %v3007_v23 = vpop.permute.xlu1 %955  ;;  %v742_v47 = vmul.f32 %v2853_v0, %v735_v17  ;;  %v688_v49 = vcombine.low %v684_v60, %v685_v61  ;;  %v761_v44 = vmul.f32 %v2790_v26, %v751_v62 }
 0x20f   : > { %v771_v16 = vrot.slane %v2958_v32, %v2842_v54  ;;  %v3023_v41 = vrot.slane %v2805_v33, %v2895_v48  ;;  %v3027_v51 = vrot.slane %v2810_v34, %v2895_v48  ;;  %v725_v1 = vcombine.low %v721_v25, %v722_v21 }
 0x210   : > { %v670_v24 = vadd.f32 %v668_v2, %v650_v12  ;;  %v762_v0 = vmul.f32 %v2790_v26, %v755_v39  ;;  %v775_v60 = vrot.slane %v2961_v56, %v2842_v54  ;;  %v811_v2 = vmul.f32 %v2792_v29, %v801_v63 }
 0x211   : > { %v812_v32 = vmul.f32 %v2792_v29, %v805_v15  ;;  %v913_v62 = vsel %vm912_vm5, %v909_v14, %v911_v9  ;;  %v914_v11 = vsel %vm912_vm5, %v911_v9, %v909_v14  ;;  %v745_v17 = vcombine.low %v741_v42, %v742_v47 }
 0x212   : > { %v690_v58 = vadd.f32 %v688_v49, %v670_v24  ;;  %v3032_v61 = vpop.permute.xlu1 %995  ;;  %v781_v21 = vmul.f32 %v2909_v59, %v771_v16  ;;  %v782_v26 = vmul.f32 %v2909_v59, %v775_v60  ;;  %v861_v25 = vrot.slane %v851_v13, %v2839_v52  ;;  %v1008_v24 = vpop.permute.xlu0 %1007 }
 0x213   : > { %v865_v56 = vrot.slane %v855_v27, %v2839_v52  ;;  %v831_v39 = vrot.slane %v821_v55, %v2834_v46  ;;  %v835_v29 = vrot.slane %v825_v57, %v2834_v46  ;;  %v765_v15 = vcombine.low %v761_v44, %v762_v0 }
 0x214   : > { %v727_v12 = vadd.f32 %v725_v1, %v690_v58  ;;  %v923_v49 = vmul.f32 %v3023_v41, %v913_v62  ;;  %v924_v9 = vmul.f32 %v3027_v51, %v914_v11  ;;  %v815_v42 = vcombine.low %v811_v2, %v812_v32 }
 0x215   : > { %v891_v47 = vrot.slane %v881_v20, %v2842_v54  ;;  %v895_v59 = vrot.slane %v885_v28, %v2842_v54  ;;  %v785_v27 = vcombine.low %v781_v21, %v782_v26  ;;  %v841_v55 = vmul.f32 %v2933_v43, %v831_v39 }
 0x216   : > { %v747_v63 = vadd.f32 %v745_v17, %v727_v12  ;;  %v1006_v14 = vpop.permute.xlu1 %1005  ;;  %v842_v57 = vmul.f32 %v2933_v43, %v835_v29  ;;  %v871_v44 = vmul.f32 %v2821_v36, %v861_v25  ;;  %v872_v16 = vmul.f32 %v2821_v36, %v865_v56  ;;  %v3073_v21 = vpop.permute.xlu0 %1169 }
 0x217   : > { %v3057_v58 = vrot.slane %v2805_v33, %v2885_v40  ;;  %v3061_v20 = vrot.slane %v2810_v34, %v2885_v40  ;;  %v928_v1 = vrot.slane %v923_v49, %v2795_v30  ;;  %v932_v0 = vrot.slane %v924_v9, %v2795_v30 }
 0x218   : > { %v767_v13 = vadd.f32 %v765_v15, %v747_v63  ;;  %v1010_v43 = vsel %vm1009_vm6, %v1006_v14, %v1008_v24  ;;  %v948_v2 = vrot.slane %v923_v49, %v2834_v46  ;;  %v952_v36 = vrot.slane %v924_v9, %v2834_v46 }
 0x219   : > { %v1011_v32 = vsel %vm1009_vm6, %v1008_v24, %v1006_v14  ;;  %v845_v11 = vcombine.low %v841_v55, %v842_v57  ;;  %v901_v17 = vmul.f32 %v2963_v3, %v891_v47  ;;  %v902_v12 = vmul.f32 %v2963_v3, %v895_v59 }
 0x21a   : > { %v787_v28 = vadd.f32 %v785_v27, %v767_v13  ;;  %v1053_v60 = vpop.permute.xlu1 %1052  ;;  %v875_v26 = vcombine.low %v871_v44, %v872_v16  ;;  %v968_v25 = vrot.slane %v923_v49, %v2839_v52  ;;  %v972_v56 = vrot.slane %v924_v9, %v2839_v52  ;;  %v1105_v16 = vpop.permute.xlu0 %1104 }
 0x21b   : > { %v1020_v39 = vmul.f32 %v3057_v58, %v1010_v43  ;;  %v938_v63 = vmul.f32 %v2831_v45, %v928_v1  ;;  %v939_v15 = vmul.f32 %v2831_v45, %v932_v0  ;;  %v1021_v24 = vmul.f32 %v3061_v20, %v1011_v32 }
 0x21c   : > { %v817_v62 = vadd.f32 %v815_v42, %v787_v28  ;;  %v958_v42 = vmul.f32 %v3007_v23, %v948_v2  ;;  %v959_v3 = vmul.f32 %v3007_v23, %v952_v36  ;;  %v905_v59 = vcombine.low %v901_v17, %v902_v12 }
 0x21d   : > { %v3086_v13 = vrot.slane %v2805_v33, %v2972_v7  ;;  %v3090_v27 = vrot.slane %v2810_v34, %v2972_v7  ;;  %v978_v45 = vmul.f32 %v2862_v5, %v968_v25  ;;  %v979_v55 = vmul.f32 %v2862_v5, %v972_v56 }
 0x21e   : > { %v847_v29 = vadd.f32 %v845_v11, %v817_v62  ;;  %v1093_v14 = vpop.permute.xlu1 %1092  ;;  %v988_v57 = vrot.slane %v923_v49, %v2842_v54  ;;  %v1025_v23 = vrot.slane %v1020_v39, %v2795_v30  ;;  %v942_v28 = vcombine.low %v938_v63, %v939_v15 }
 0x21f   : > { %v992_v1 = vrot.slane %v924_v9, %v2842_v54  ;;  %v1029_v33 = vrot.slane %v1021_v24, %v2795_v30  ;;  %v962_v43 = vcombine.low %v958_v42, %v959_v3  ;;  %v1045_v32 = vrot.slane %v1020_v39, %v2834_v46 }
 0x220   : > { %v877_v47 = vadd.f32 %v875_v26, %v847_v29  ;;  %v998_v34 = vmul.f32 %v3032_v61, %v988_v57  ;;  %v1049_v62 = vrot.slane %v1021_v24, %v2834_v46  ;;  %v982_v9 = vcombine.low %v978_v45, %v979_v55 }
 0x221   : > { %v999_v36 = vmul.f32 %v3032_v61, %v992_v1  ;;  %v1065_v11 = vrot.slane %v1020_v39, %v2839_v52  ;;  %v1069_v17 = vrot.slane %v1021_v24, %v2839_v52  ;;  %v1035_v12 = vmul.f32 %v2903_v53, %v1025_v23  ;;  %v1227_v61 = vpop.permute.xlu0 %1226 }
 0x222   : > { %v907_v44 = vadd.f32 %v905_v59, %v877_v47  ;;  %v1103_v0 = vpop.permute.xlu1 %1102  ;;  %v1036_v25 = vmul.f32 %v2903_v53, %v1029_v33  ;;  %v1055_v3 = vmul.f32 %v1053_v60, %v1045_v32  ;;  %v1056_v47 = vmul.f32 %v1053_v60, %v1049_v62 }
 0x223   : > { %v1107_v2 = vsel %vm1106_vm7, %v1103_v0, %v1105_v16  ;;  %v1108_v5 = vsel %vm1106_vm7, %v1105_v16, %v1103_v0  ;;  %v1002_v42 = vcombine.low %v998_v34, %v999_v36  ;;  %v1075_v59 = vmul.f32 %v2947_v50, %v1065_v11  ;;  %v3126_v34 = vld [vmem:[%s3601_s1 + $0x10] ss:$0 sm:$0xff] }
 0x224   : > { %v944_v49 = vadd.f32 %v942_v28, %v907_v44  ;;  %v1117_v56 = vmul.f32 %v3086_v13, %v1107_v2  ;;  %v1118_v29 = vmul.f32 %v3090_v27, %v1108_v5  ;;  %v1076_v45 = vmul.f32 %v2947_v50, %v1069_v17  ;;  %v3131_v2 = vld [vmem:[%s3601_s1 + $0x18] ss:$0 sm:$0xff] }
 0x225   : > { %v1085_v55 = vrot.slane %v1020_v39, %v2842_v54  ;;  %v1089_v57 = vrot.slane %v1021_v24, %v2842_v54  ;;  %v1039_v53 = vcombine.low %v1035_v12, %v1036_v25  ;;  %v1059_v0 = vcombine.low %v1055_v3, %v1056_v47  ;;  %v1202_v5 = vpop.permute.xlu0 %1201 }
 0x226   : > { %v964_v26 = vadd.f32 %v962_v43, %v944_v49  ;;  %v1150_v63 = vpop.permute.xlu1 %1149  ;;  %v1122_v44 = vrot.slane %v1117_v56, %v2795_v30  ;;  %v1126_v16 = vrot.slane %v1118_v29, %v2795_v30  ;;  %v1142_v1 = vrot.slane %v1117_v56, %v2834_v46 }
 0x227   : > { %v1146_v33 = vrot.slane %v1118_v29, %v2834_v46  ;;  %v1095_v50 = vmul.f32 %v1093_v14, %v1085_v55  ;;  %v1096_v43 = vmul.f32 %v1093_v14, %v1089_v57  ;;  %v1162_v39 = vrot.slane %v1117_v56, %v2839_v52 }
 0x228   : > { %v984_v15 = vadd.f32 %v982_v9, %v964_v26  ;;  %v1166_v24 = vrot.slane %v1118_v29, %v2839_v52  ;;  %v1079_v36 = vcombine.low %v1075_v59, %v1076_v45  ;;  %v1132_v32 = vmul.f32 %v3016_v18, %v1122_v44 }
 0x229   : > { %v1133_v14 = vmul.f32 %v3016_v18, %v1126_v16  ;;  %v1152_v9 = vmul.f32 %v1150_v63, %v1142_v1  ;;  %v1153_v11 = vmul.f32 %v1150_v63, %v1146_v33  ;;  %v1099_v25 = vcombine.low %v1095_v50, %v1096_v43 }
 0x22a   : > { %v1004_v23 = vadd.f32 %v1002_v42, %v984_v15  ;;  %v1190_v28 = vpop.permute.xlu1 %1189  ;;  %v1172_v3 = vmul.f32 %v3073_v21, %v1162_v39  ;;  %v1173_v47 = vmul.f32 %v3073_v21, %v1166_v24  ;;  %v1182_v18 = vrot.slane %v1117_v56, %v2842_v54  ;;  %v1267_v39 = vpop.permute.xlu0 %1266 }
 0x22b   : > { %v1186_v63 = vrot.slane %v1118_v29, %v2842_v54  ;;  %v1136_v45 = vcombine.low %v1132_v32, %v1133_v14 }
 0x22c   : > { %v1041_v60 = vadd.f32 %v1039_v53, %v1004_v23  ;;  %v1156_v23 = vcombine.low %v1152_v9, %v1153_v11  ;;  %v1192_v53 = vmul.f32 %v1190_v28, %v1182_v18  ;;  %v1176_v21 = vcombine.low %v1172_v3, %v1173_v47 }
 0x22d   : > { %v1193_v1 = vmul.f32 %v1190_v28, %v1186_v63 }
 0x22e   : > { %v1061_v49 = vadd.f32 %v1059_v0, %v1041_v60  ;;  %v1200_v62 = vpop.permute.xlu1 %1199 }
 0x22f   : > { %v1204_v17 = vsel %vm1203_vm8, %v1200_v62, %v1202_v5  ;;  %v1205_v12 = vsel %vm1203_vm8, %v1202_v5, %v1200_v62  ;;  %v1196_v5 = vcombine.low %v1192_v53, %v1193_v1  ;;  %v1366_v53 = vld [vmem:[%s3604_s4 + $0x8] sm:$0xf]  ;;  %v1372_v1 = vld [vmem:[%s3604_s4 + $0x20] sm:$0xf] }
 0x230   : > { %v1081_v26 = vadd.f32 %v1079_v36, %v1061_v49  ;;  %v1214_v15 = vmul.f32 %v3126_v34, %v1204_v17  ;;  %v1215_v42 = vmul.f32 %v3131_v2, %v1205_v12 }
 0x232   : > { %v1101_v59 = vadd.f32 %v1099_v25, %v1081_v26  ;;  %v1219_v55 = vrot.slane %v1214_v15, %v2795_v30  ;;  %v1223_v57 = vrot.slane %v1215_v42, %v2795_v30  ;;  %v1247_v44 = vpop.permute.xlu1 %1246  ;;  %v1239_v33 = vrot.slane %v1214_v15, %v2834_v46 }
 0x233   : > { %v1243_v60 = vrot.slane %v1215_v42, %v2834_v46  ;;  %v1259_v56 = vrot.slane %v1214_v15, %v2839_v52  ;;  %v1263_v29 = vrot.slane %v1215_v42, %v2839_v52  ;;  %v1279_v28 = vrot.slane %v1214_v15, %v2842_v54 }
 0x234   : > { %v1138_v16 = vadd.f32 %v1136_v45, %v1101_v59  ;;  %v1229_v50 = vmul.f32 %v1227_v61, %v1219_v55  ;;  %v1230_v43 = vmul.f32 %v1227_v61, %v1223_v57  ;;  %v1249_v49 = vmul.f32 %v1247_v44, %v1239_v33  ;;  %v1374_v33 = vld [vmem:[%s3604_s4 + $0x28] sm:$0xf] }
 0x235   : > { %v1250_v36 = vmul.f32 %v1247_v44, %v1243_v60  ;;  %v1269_v14 = vmul.f32 %v1267_v39, %v1259_v56  ;;  %v1270_v11 = vmul.f32 %v1267_v39, %v1263_v29  ;;  %v1283_v17 = vrot.slane %v1215_v42, %v2842_v54  ;;  %v283_v42 = vld [vmem:[%s3606_s6 + $0x8] sm:$0xf]  ;;  %v1368_v44 = vld [vmem:[%s3604_s4 + $0x10] sm:$0xf] }
 0x236   : > { %v1158_v0 = vadd.f32 %v1156_v23, %v1138_v16  ;;  %v1287_v32 = vpop.permute.xlu1 %1286  ;;  %v1233_v9 = vcombine.low %v1229_v50, %v1230_v43  ;;  %v1364_v23 = vld [vmem:[%s3604_s4] sm:$0xf]  ;;  %v1370_v16 = vld [vmem:[%s3604_s4 + $0x18] sm:$0xf]  ;;  %v1376_v60 = vld [vmem:[%s3604_s4 + $0x30] sm:$0xf] }
 0x237   : > { %v1253_v26 = vcombine.low %v1249_v49, %v1250_v36  ;;  %v1289_v25 = vmul.f32 %v1287_v32, %v1279_v28  ;;  %v1290_v3 = vmul.f32 %v1287_v32, %v1283_v17  ;;  %v1273_v61 = vcombine.low %v1269_v14, %v1270_v11  ;;  %v284_v36 = vld [vmem:[%s3606_s6 + $0xc] sm:$0xf]  ;;  %v1365_v32 = vld [vmem:[%s3604_s4 + $0x4] sm:$0xf]  ;;  %v1369_v28 = vld [vmem:[%s3604_s4 + $0x14] sm:$0xf] }
 0x238   : > { %v1178_v24 = vadd.f32 %v1176_v21, %v1158_v0  ;;  %v1378_v21 = vld [vmem:[%s3604_s4 + $0x38] sm:$0xf]  ;;  %v1367_v14 = vld [vmem:[%s3604_s4 + $0xc] sm:$0xf]  ;;  %v1377_v17 = vld [vmem:[%s3604_s4 + $0x34] sm:$0xf] }
 0x239   : > { %v1293_v63 = vcombine.low %v1289_v25, %v1290_v3  ;;  %v1375_v11 = vld [vmem:[%s3604_s4 + $0x2c] sm:$0xf] }
 0x23a   : > { %v1198_v62 = vadd.f32 %v1196_v5, %v1178_v24 }
 0x23c   : > { %v1235_v12 = vadd.f32 %v1233_v9, %v1198_v62  ;;  %v1371_v62 = vld [vmem:[%s3604_s4 + $0x1c] sm:$0xf]  ;;  %v1373_v9 = vld [vmem:[%s3604_s4 + $0x24] sm:$0xf] }
 0x23e   : > { %v1255_v47 = vadd.f32 %v1253_v26, %v1235_v12  ;;  %v1379_v12 = vld [vmem:[%s3604_s4 + $0x3c] sm:$0xf] }
 0x240   : > { %v1275_v18 = vadd.f32 %v1273_v61, %v1255_v47 }
 0x242   : > { %v1295_v59 = vadd.f32 %v1293_v63, %v1275_v18 }
 0x244   : > { %v1297_v45 = vcombine.high %v1295_v59, %v1295_v59  ;;  %v1299_v55 = vsel %vm291_vm0, %v1295_v59, 0.0 }
 0x246   : > { %v1300_v57 = vsel %vm291_vm0, %v1297_v45, 0.0 }
 0x247   : > { %v1301_v15 = vadd.f32 %v1300_v57, %v1299_v55 }
 0x249   : > { %1302 = vadd.xlane.f32.xlu0 %v1301_v15 }
 0x25f   : > { %1339 = vperm.xlu0 %2436, %v283_v42  }
 0x263   : > { %1422 = vperm.xlu0 %2436, %v1364_v23  }
 0x267   : > { %1462 = vperm.xlu0 %2436, %v1366_v53   ;;  %v1380_v53 = vld [vmem:[%s3604_s4 + $0x40] sm:$0xf] }
 0x26b   : > { %1510 = vperm.xlu0 %2436, %v1368_v44   ;;  %v1382_v44 = vld [vmem:[%s3604_s4 + $0x48] sm:$0xf] }
 0x26f   : > { %1550 = vperm.xlu0 %2436, %v1370_v16   ;;  %v1381_v16 = vld [vmem:[%s3604_s4 + $0x44] sm:$0xf] }
 0x273   : > { %1598 = vperm.xlu0 %2436, %v1372_v1   ;;  %v1383_v1 = vld [vmem:[%s3604_s4 + $0x4c] sm:$0xf] }
 0x277   : > { %1638 = vperm.xlu0 %2436, %v1374_v33   ;;  %v1384_v33 = vld [vmem:[%s3604_s4 + $0x50] sm:$0xf] }
 0x27b   : > { %1686 = vperm.xlu0 %2436, %v1376_v60   ;;  %v1385_v60 = vld [vmem:[%s3604_s4 + $0x54] sm:$0xf] }
 0x27f   : > { %1726 = vperm.xlu0 %2436, %v1378_v21   ;;  %v1386_v21 = vld [vmem:[%s3604_s4 + $0x58] sm:$0xf] }
 0x2d6   : > { %v1303_v56 = vpop.xlane.xlu0 %1302 }
 0x2d7   : > { %v1304_v0 = vmul.f32 0.00390625, %v1303_v56  ;;  %v1387_v56 = vld [vmem:[%s3604_s4 + $0x5c] sm:$0xf] }
 0x2d9   : > { %v1312_v29 = vrot.slane %v1304_v0, %v2651_v22  ;;  %v1388_v0 = vld [vmem:[%s3604_s4 + $0x60] sm:$0xf] }
 0x2db   : > { %v1314_v50 = vsub.f32 %v1295_v59, %v1312_v29  ;;  %v1390_v29 = vld [vmem:[%s3604_s4 + $0x68] sm:$0xf] }
 0x2dd   : > { %v1315_v43 = vmul.f32 %v1314_v50, %v1314_v50 }
 0x2de   : > { %v1340_v61 = vpop.permute.xlu0 %1339 }
 0x2df   : > { %v1317_v39 = vcombine.high %v1315_v43, %v1315_v43  ;;  %v1319_v24 = vsel %vm291_vm0, %v1315_v43, 0.0  ;;  %v1347_v59 = vrot.slane %v1340_v61, %v2651_v22  ;;  %v1391_v43 = vld [vmem:[%s3604_s4 + $0x6c] sm:$0xf] }
 0x2e1   : > { %v1320_v5 = vsel %vm291_vm0, %v1317_v39, 0.0  ;;  %v1392_v39 = vld [vmem:[%s3604_s4 + $0x70] sm:$0xf] }
 0x2e2   : > { %v1321_v49 = vadd.f32 %v1320_v5, %v1319_v24  ;;  %v1393_v24 = vld [vmem:[%s3604_s4 + $0x74] sm:$0xf]  ;;  %v1394_v5 = vld [vmem:[%s3604_s4 + $0x78] sm:$0xf] }
 0x2e4   : > { %1322 = vadd.xlane.f32.xlu1 %v1321_v49  ;;  %v1395_v49 = vld [vmem:[%s3604_s4 + $0x7c] sm:$0xf] }
 0x2f5   : > { %1352 = vperm.xlu1 %2435, %v284_v36   ;;  %v1396_v36 = vld [vmem:[%s3604_s4 + $0x80] sm:$0xf] }
 0x2f9   : > { %1442 = vperm.xlu1 %2435, %v1365_v32   ;;  %v1397_v32 = vld [vmem:[%s3604_s4 + $0x84] sm:$0xf] }
 0x2fd   : > { %1482 = vperm.xlu1 %2435, %v1367_v14   ;;  %v1399_v14 = vld [vmem:[%s3604_s4 + $0x8c] sm:$0xf] }
 0x301   : > { %1530 = vperm.xlu1 %2435, %v1369_v28   ;;  %v1398_v28 = vld [vmem:[%s3604_s4 + $0x88] sm:$0xf] }
 0x305   : > { %1570 = vperm.xlu1 %2435, %v1371_v62   ;;  %v1423_v62 = vpop.permute.xlu0 %1422 }
 0x309   : > { %1618 = vperm.xlu1 %2435, %v1373_v9  }
 0x30d   : > { %1658 = vperm.xlu1 %2435, %v1375_v11   ;;  %v1463_v11 = vpop.permute.xlu0 %1462 }
 0x311   : > { %1706 = vperm.xlu1 %2435, %v1377_v17  }
 0x315   : > { %1746 = vperm.xlu1 %2435, %v1379_v12   ;;  %v1511_v12 = vpop.permute.xlu0 %1510 }
 0x371   : > { %v1323_v26 = vpop.xlane.xlu1 %1322 }
 0x372   : > { %v1324_v25 = vmul.f32 0.00390625, %v1323_v26 }
 0x374   : > { %v1325_v3 = vadd.f32 1e-05, %v1324_v25  ;;  %v3303_v25 = vpop.permute.xlu0 %1550 }
 0x375   : > { %v1353_v63 = vpop.permute.xlu1 %1352 }
 0x376   : > { %2440 = vrsqrt.f32 %v1325_v3  ;;  %v1360_v57 = vrot.slane %v1353_v63, %v2651_v22 }
 0x379   : > { %v1443_v9 = vpop.permute.xlu1 %1442 }
 0x37d   : > { %v1483_v17 = vpop.permute.xlu1 %1482 }
 0x380   : > { %v2441_v47 = vpop.eup %2440 }
 0x381   : > { %v1334_v18 = vrot.slane %v2441_v47, %v2651_v22  ;;  %v1531_v26 = vpop.permute.xlu1 %1530  ;;  %v3307_v47 = vpop.permute.xlu0 %1598 }
 0x383   : > { %v1336_v45 = vmul.f32 %v1334_v18, %v1314_v50  ;;  %v1389_v50 = vld [vmem:[%s3604_s4 + $0x64] sm:$0xf] }
 0x385   : > { %v1349_v55 = vmul.f32 %v1347_v59, %v1336_v45  ;;  %v3305_v3 = vpop.permute.xlu1 %1570  ;;  %v3311_v18 = vpop.permute.xlu0 %1638 }
 0x387   : > { %v1362_v15 = vadd.f32 %v1360_v57, %v1349_v55 }
 0x389   : > { %v3215_v42 = vmax.f32 %v1362_v15, 0.0  ;;  %v3309_v61 = vpop.permute.xlu1 %1618  ;;  %v3315_v59 = vpop.permute.xlu0 %1686 }
 0x38b   : > { %1404 = vrot.lane.b32.xlu1 %v3215_v42, %s2510_s9  ;;  %v1402_v23 = vcombine.high %v3215_v42, %v3215_v42 }
 0x38d   : > { %1406 = vrot.lane.b32.xlu0 %v1402_v23, %s2510_s9  ;;  %v3313_v63 = vpop.permute.xlu1 %1658  ;;  %v3319_v55 = vpop.permute.xlu0 %1726  ;;  %s2297_s9 = scalar_lea.sflag [#allocation3], %s269_s18 }
 0x38f   : > { %1492 = vrot.lane.b32.xlu1 %v3215_v42, %s2512_s16 }
 0x391   : > { %1776 = vperm.xlu0 %2436, %v1380_v53   ;;  %v3317_v45 = vpop.permute.xlu1 %1706 }
 0x393   : > { %1580 = vrot.lane.b32.xlu1 %v3215_v42, %s2511_s13 }
 0x395   : > { %1494 = vrot.lane.b32.xlu0 %v1402_v23, %s2512_s16  ;;  %v3321_v57 = vpop.permute.xlu1 %1746 }
 0x397   : > { %1668 = vrot.lane.b32.xlu1 %v3215_v42, %s2513_s17 }
 0x399   : > { %1836 = vperm.xlu0 %2436, %v1382_v44  }
 0x39b   : > { %1806 = vperm.xlu1 %2435, %v1381_v16  }
 0x39d   : > { %1582 = vrot.lane.b32.xlu0 %v1402_v23, %s2511_s13  ;;  %s3623_s13 = smov 112  }
 0x39f   : > { %1866 = vperm.xlu1 %2435, %v1383_v1  }
 0x3a1   : > { %1894 = vperm.xlu0 %2436, %v1384_v33  }
 0x3a3   : > { %1876 = vrot.lane.b32.xlu1 %v3215_v42, %s3621_s14 }
 0x3a5   : > { %1670 = vrot.lane.b32.xlu0 %v1402_v23, %s2513_s17  ;;  %s3622_s17 = smov 113  }
 0x3a7   : > { %1914 = vperm.xlu1 %2435, %v1385_v60  }
 0x3a9   : > { %1934 = vperm.xlu0 %2436, %v1386_v21  }
 0x3ab   : > { %1954 = vperm.xlu1 %2435, %v1387_v56  }
 0x3ad   : > { %1982 = vperm.xlu0 %2436, %v1388_v0  }
 0x3af   : > { %1964 = vrot.lane.b32.xlu1 %v3215_v42, %s3622_s17 }
 0x3b1   : > { %2022 = vperm.xlu0 %2436, %v1390_v29  }
 0x3b3   : > { %2002 = vperm.xlu1 %2435, %v1389_v50  }
 0x3b5   : > { %1878 = vrot.lane.b32.xlu0 %v1402_v23, %s3621_s14 }
 0x3b7   : > { %2042 = vperm.xlu1 %2435, %v1391_v43  }
 0x3b9   : > { %2070 = vperm.xlu0 %2436, %v1392_v39   ;;  %v1400_v39 = vld [vmem:[%s3605_s5] sm:$0xff] }
 0x3bb   : > { %2052 = vrot.lane.b32.xlu1 %v3215_v42, %s3623_s13 }
 0x3bd   : > { %1966 = vrot.lane.b32.xlu0 %v1402_v23, %s3622_s17  ;;  %s2385_s17 = sshll.u32 %s2580_s28, 7  ;;  %s2518_s28 = smov [#allocation2]  }
 0x3be   : > { %s3558_s21 = scalar_lea.hbm %s3607_s7, %s2385_s17  ;;  %s2448_s23 = sshll.u32 %s2518_s28, 4  ;;  %s2449_s23 = int_to_ptr.vmem [resolvable:$false] %s2448_s23 }
 0x3bf   : > { %2090 = vperm.xlu1 %2435, %v1393_v24   ;;  %s2450_s14 = scalar_lea.vmem %s2449_s23, 256 }
 0x3c1   : > { %2110 = vperm.xlu0 %2436, %v1394_v5  }
 0x3c3   : > { %2130 = vperm.xlu1 %2435, %v1395_v49  }
 0x3c5   : > { %2054 = vrot.lane.b32.xlu0 %v1402_v23, %s3623_s13 }
 0x3c7   : > { %2140 = vrot.lane.b32.xlu1 %v3215_v42, %s3624_s19 }
 0x3c9   : > { %2158 = vperm.xlu0 %2436, %v1396_v36  }
 0x3cb   : > { %2178 = vperm.xlu1 %2435, %v1397_v32  }
 0x3cd   : > { %2142 = vrot.lane.b32.xlu0 %v1402_v23, %s3624_s19  ;;  %s2374_s19 = sshll.u32 %s269_s18, 3 }
 0x3ce   : > { %s271_s15 = scalar_lea.vmem [#allocation2], %s2374_s19 }
 0x3cf   : > { %2218 = vperm.xlu1 %2435, %v1399_v14   ;;  %s2311_s20 = sshll.u32 %s271_s15, 4  ;;  %s3560_s20 = int_to_ptr.vmem [resolvable:$true] %s2311_s20 }
 0x3d0   : > { %s2444_s22 = scalar_lea.vmem %s3560_s20, 128  ;;  %p2451_p0 = scmp.lt.s32.totalorder %s3560_s20, %s2449_s23 }
 0x3d1   : > { %2198 = vperm.xlu0 %2436, %v1398_v28   ;;  %p2445_p11 = scmp.ne.s32.totalorder %s3560_s20, %s2444_s22  ;;  %p2452_p1 = scmp.lt.s32.totalorder %s2450_s14, %s2444_s22 }
 0x3d3   : > { %p2446_p12 = pnand %p2445_p11, %p2597_p5  ;;  %p2453_p2 = por %p2452_p1, %p2451_p0 }
 0x3d5   : > { %p2447_p13 = pneg %p2446_p12 }
 0x3d7   : > { %p2454_p3 = pnand %p2453_p2, %p2447_p13 }
 0x3fd   : > { %v1405_v15 = vpop.permute.xlu1 %1404 }
 0x3ff   : > { %v1407_v23 = vpop.permute.xlu0 %1406 }
 0x400   : > { %v1408_v53 = vsel %vm404_vm1, %v1405_v15, %v1407_v23  ;;  %v1409_v44 = vsel %vm404_vm1, %v1407_v23, %v1405_v15 }
 0x401   : > { %v1410_v16 = vmul.f32 %v1409_v44, %v2815_v35  ;;  %v1411_v1 = vmul.f32 %v1408_v53, %v2819_v19  ;;  %v1493_v50 = vpop.permute.xlu1 %1492 }
 0x403   : > { %v1415_v33 = vrot.slane %v1410_v16, %v2795_v30  ;;  %v1419_v60 = vrot.slane %v1411_v1, %v2795_v30  ;;  %v1435_v0 = vrot.slane %v1410_v16, %v2834_v46  ;;  %v1439_v29 = vrot.slane %v1411_v1, %v2834_v46 }
 0x404   : > { %v1455_v19 = vrot.slane %v1410_v16, %v2839_v52  ;;  %v1459_v5 = vrot.slane %v1411_v1, %v2839_v52  ;;  %v1475_v36 = vrot.slane %v1410_v16, %v2842_v54  ;;  %v1479_v32 = vrot.slane %v1411_v1, %v2842_v54 }
 0x405   : > { %v1425_v21 = vmul.f32 %v1423_v62, %v1415_v33  ;;  %v1426_v56 = vmul.f32 %v1423_v62, %v1419_v60  ;;  %v1445_v24 = vmul.f32 %v1443_v9, %v1435_v0  ;;  %v1446_v35 = vmul.f32 %v1443_v9, %v1439_v29  ;;  %v1581_v14 = vpop.permute.xlu1 %1580 }
 0x406   : > { %v1465_v15 = vmul.f32 %v1463_v11, %v1455_v19  ;;  %v1466_v23 = vmul.f32 %v1463_v11, %v1459_v5  ;;  %v1485_v44 = vmul.f32 %v1483_v17, %v1475_v36  ;;  %v1486_v33 = vmul.f32 %v1483_v17, %v1479_v32 }
 0x407   : > { %v1429_v43 = vcombine.low %v1425_v21, %v1426_v56  ;;  %v1449_v62 = vcombine.low %v1445_v24, %v1446_v35 }
 0x408   : > { %v1469_v9 = vcombine.low %v1465_v15, %v1466_v23 }
 0x409   : > { %v1431_v49 = vadd.f32 %v1429_v43, %v1400_v39  ;;  %v1669_v16 = vpop.permute.xlu1 %1668  ;;  %v1489_v43 = vcombine.low %v1485_v44, %v1486_v33 }
 0x40b   : > { %v1451_v53 = vadd.f32 %v1449_v62, %v1431_v49 }
 0x40d   : > { %v1471_v29 = vadd.f32 %v1469_v9, %v1451_v53 }
 0x40f   : > { %v1491_v15 = vadd.f32 %v1489_v43, %v1471_v29 }
 0x410   : > { %v3340_v28 = vpop.permute.xlu0 %1776 }
 0x414   : > { %v1495_v60 = vpop.permute.xlu0 %1494 }
 0x415   : > { %v1496_v21 = vsel %vm501_vm3, %v1493_v50, %v1495_v60  ;;  %v1497_v56 = vsel %vm501_vm3, %v1495_v60, %v1493_v50 }
 0x416   : > { %v1498_v1 = vmul.f32 %v1497_v56, %v2867_v6  ;;  %v1499_v0 = vmul.f32 %v1496_v21, %v2871_v8 }
 0x418   : > { %v1503_v11 = vrot.slane %v1498_v1, %v2795_v30  ;;  %v1507_v39 = vrot.slane %v1499_v0, %v2795_v30  ;;  %v1523_v17 = vrot.slane %v1498_v1, %v2834_v46  ;;  %v1527_v24 = vrot.slane %v1499_v0, %v2834_v46  ;;  %v3352_v35 = vpop.permute.xlu0 %1836 }
 0x419   : > { %v1543_v19 = vrot.slane %v1498_v1, %v2839_v52  ;;  %v1547_v50 = vrot.slane %v1499_v0, %v2839_v52  ;;  %v1563_v6 = vrot.slane %v1498_v1, %v2842_v54  ;;  %v1567_v8 = vrot.slane %v1499_v0, %v2842_v54 }
 0x41a   : > { %v1513_v5 = vmul.f32 %v1511_v12, %v1503_v11  ;;  %v1514_v49 = vmul.f32 %v1511_v12, %v1507_v39  ;;  %v1533_v36 = vmul.f32 %v1531_v26, %v1523_v17  ;;  %v1534_v32 = vmul.f32 %v1531_v26, %v1527_v24  ;;  %v3358_v62 = vpop.permute.xlu1 %1806 }
 0x41b   : > { %v1553_v23 = vmul.f32 %v3303_v25, %v1543_v19  ;;  %v1554_v44 = vmul.f32 %v3303_v25, %v1547_v50  ;;  %v1573_v33 = vmul.f32 %v3305_v3, %v1563_v6  ;;  %v1574_v60 = vmul.f32 %v3305_v3, %v1567_v8 }
 0x41c   : > { %v1517_v53 = vcombine.low %v1513_v5, %v1514_v49  ;;  %v1583_v9 = vpop.permute.xlu0 %1582  ;;  %v1537_v56 = vcombine.low %v1533_v36, %v1534_v32 }
 0x41d   : > { %v1584_v12 = vsel %vm598_vm2, %v1581_v14, %v1583_v9  ;;  %v1585_v26 = vsel %vm598_vm2, %v1583_v9, %v1581_v14  ;;  %v1557_v43 = vcombine.low %v1553_v23, %v1554_v44  ;;  %v1577_v11 = vcombine.low %v1573_v33, %v1574_v60 }
 0x41e   : > { %v1519_v21 = vadd.f32 %v1517_v53, %v1491_v15  ;;  %v3368_v1 = vpop.permute.xlu1 %1866  ;;  %v1586_v0 = vmul.f32 %v1585_v26, %v2860_v4  ;;  %v1587_v29 = vmul.f32 %v1584_v12, %v2875_v10 }
 0x420   : > { %v1539_v25 = vadd.f32 %v1537_v56, %v1519_v21  ;;  %v3372_v39 = vpop.permute.xlu0 %1894  ;;  %v1591_v3 = vrot.slane %v1586_v0, %v2795_v30  ;;  %v1595_v17 = vrot.slane %v1587_v29, %v2795_v30  ;;  %v1611_v24 = vrot.slane %v1586_v0, %v2834_v46 }
 0x421   : > { %v1615_v19 = vrot.slane %v1587_v29, %v2834_v46  ;;  %v1631_v50 = vrot.slane %v1586_v0, %v2839_v52  ;;  %v1635_v4 = vrot.slane %v1587_v29, %v2839_v52  ;;  %v1651_v10 = vrot.slane %v1586_v0, %v2842_v54 }
 0x422   : > { %v1559_v14 = vadd.f32 %v1557_v43, %v1539_v25  ;;  %v3381_v6 = vpop.permute.xlu1 %1876  ;;  %v1601_v8 = vmul.f32 %v3307_v47, %v1591_v3  ;;  %v1602_v5 = vmul.f32 %v3307_v47, %v1595_v17  ;;  %v1621_v49 = vmul.f32 %v3309_v61, %v1611_v24 }
 0x423   : > { %v1622_v36 = vmul.f32 %v3309_v61, %v1615_v19  ;;  %v1641_v15 = vmul.f32 %v3311_v18, %v1631_v50  ;;  %v1642_v23 = vmul.f32 %v3311_v18, %v1635_v4  ;;  %v1655_v53 = vrot.slane %v1587_v29, %v2842_v54  ;;  %v3625_v29 = vld [vmem:[#allocation5_spill] sm:$0xff] }
 0x424   : > { %v1579_v32 = vadd.f32 %v1577_v11, %v1559_v14  ;;  %v1671_v44 = vpop.permute.xlu0 %1670  ;;  %v1605_v33 = vcombine.low %v1601_v8, %v1602_v5  ;;  %v1661_v60 = vmul.f32 %v3313_v63, %v1651_v10  ;;  %v1759_v0 = vrot.slane %v3215_v42, %v2795_v30 }
 0x425   : > { %v1662_v9 = vmul.f32 %v3313_v63, %v1655_v53  ;;  %v1672_v47 = vsel %vm695_vm4, %v1669_v16, %v1671_v44  ;;  %v1673_v21 = vsel %vm695_vm4, %v1671_v44, %v1669_v16  ;;  %v1625_v12 = vcombine.low %v1621_v49, %v1622_v36 }
 0x426   : > { %v3396_v61 = vpop.permute.xlu1 %1914  ;;  %v1607_v56 = vadd.f32 %v1605_v33, %v1579_v32  ;;  %v1674_v18 = vmul.f32 %v1673_v21, %v2925_v37  ;;  %v1675_v26 = vmul.f32 %v1672_v47, %v2929_v38  ;;  %v3626_v25 = vsub.s32 4, %v3625_v29 }
 0x427   : > { %v1645_v43 = vcombine.low %v1641_v15, %v1642_v23  ;;  %v1665_v11 = vcombine.low %v1661_v60, %v1662_v9  ;;  %v1789_v36 = vrot.slane %v3215_v42, %v2834_v46  ;;  %v1793_v32 = vrot.slane %v3215_v42, %v2895_v48 }
 0x428   : > { %v1763_v63 = vrot.slane %v3215_v42, %v3626_v25  ;;  %v3405_v3 = vpop.permute.xlu0 %1934  ;;  %v1627_v16 = vadd.f32 %v1625_v12, %v1607_v56  ;;  %v1679_v17 = vrot.slane %v1674_v18, %v2795_v30  ;;  %v1683_v24 = vrot.slane %v1675_v26, %v2795_v30 }
 0x429   : > { %v1699_v37 = vrot.slane %v1674_v18, %v2834_v46  ;;  %v1703_v38 = vrot.slane %v1675_v26, %v2834_v46  ;;  %v1719_v19 = vrot.slane %v1674_v18, %v2839_v52  ;;  %v1723_v14 = vrot.slane %v1675_v26, %v2839_v52 }
 0x42a   : > { %v1739_v50 = vrot.slane %v1674_v18, %v2842_v54  ;;  %v3414_v4 = vpop.permute.xlu1 %1954  ;;  %v1647_v10 = vadd.f32 %v1645_v43, %v1627_v16  ;;  %v1689_v8 = vmul.f32 %v3315_v59, %v1679_v17  ;;  %v1690_v5 = vmul.f32 %v3315_v59, %v1683_v24 }
 0x42b   : > { %v1709_v49 = vmul.f32 %v3317_v45, %v1699_v37  ;;  %v1710_v15 = vmul.f32 %v3317_v45, %v1703_v38  ;;  %v1743_v23 = vrot.slane %v1675_v26, %v2842_v54  ;;  %v1729_v60 = vmul.f32 %v3319_v55, %v1719_v19 }
 0x42c   : > { %v3425_v53 = vpop.permute.xlu0 %1982  ;;  %v1667_v44 = vadd.f32 %v1665_v11, %v1647_v10  ;;  %v1693_v33 = vcombine.low %v1689_v8, %v1690_v5  ;;  %v1730_v59 = vmul.f32 %v3319_v55, %v1723_v14  ;;  %v1769_v9 = vrot.slane %v1759_v0, %v2795_v30 }
 0x42d   : > { %v1773_v47 = vrot.slane %v1763_v63, %v2795_v30  ;;  %v1819_v21 = vrot.slane %v3215_v42, %v2839_v52  ;;  %v1823_v48 = vrot.slane %v3215_v42, %v2885_v40  ;;  %v1713_v12 = vcombine.low %v1709_v49, %v1710_v15 }
 0x42e   : > { %v3435_v45 = vpop.permute.xlu1 %1964  ;;  %v1695_v56 = vadd.f32 %v1693_v33, %v1667_v44  ;;  %v1749_v18 = vmul.f32 %v3321_v57, %v1739_v50  ;;  %v1750_v26 = vmul.f32 %v3321_v57, %v1743_v23  ;;  %v1779_v55 = vmul.f32 %v3340_v28, %v1769_v9 }
 0x42f   : > { %v1780_v0 = vmul.f32 %v3340_v28, %v1773_v47  ;;  %v1849_v29 = vrot.slane %v3215_v42, %v2842_v54  ;;  %v1853_v25 = vrot.slane %v3215_v42, %v2972_v7  ;;  %v1799_v40 = vrot.slane %v1789_v36, %v2834_v46 }
 0x430   : > { %v3445_v63 = vpop.permute.xlu0 %2022  ;;  %v1803_v43 = vrot.slane %v1793_v32, %v2834_v46  ;;  %v1715_v11 = vadd.f32 %v1713_v12, %v1695_v56  ;;  %v1733_v16 = vcombine.low %v1729_v60, %v1730_v59  ;;  %v1829_v57 = vrot.slane %v1819_v21, %v2839_v52 }
 0x431   : > { %v1833_v17 = vrot.slane %v1823_v48, %v2839_v52  ;;  %v1809_v28 = vmul.f32 %v3358_v62, %v1799_v40  ;;  %v1753_v7 = vcombine.low %v1749_v18, %v1750_v26  ;;  %v1783_v42 = vcombine.low %v1779_v55, %v1780_v0 }
 0x432   : > { %v3451_v24 = vpop.permute.xlu1 %2002  ;;  %v1810_v37 = vmul.f32 %v3358_v62, %v1803_v43  ;;  %v1735_v38 = vadd.f32 %v1733_v16, %v1715_v11  ;;  %v1839_v19 = vmul.f32 %v3352_v35, %v1829_v57  ;;  %v1859_v14 = vrot.slane %v1849_v29, %v2842_v54 }
 0x433   : > { %v1863_v50 = vrot.slane %v1853_v25, %v2842_v54  ;;  %v1840_v8 = vmul.f32 %v3352_v35, %v1833_v17 }
 0x434   : > { %v1879_v10 = vpop.permute.xlu0 %1878  ;;  %v1755_v5 = vadd.f32 %v1753_v7, %v1735_v38  ;;  %v1869_v36 = vmul.f32 %v3368_v1, %v1859_v14  ;;  %v1813_v33 = vcombine.low %v1809_v28, %v1810_v37 }
 0x435   : > { %v1880_v49 = vsel %vm912_vm5, %v3381_v6, %v1879_v10  ;;  %v1881_v62 = vsel %vm912_vm5, %v1879_v10, %v3381_v6  ;;  %v1870_v32 = vmul.f32 %v3368_v1, %v1863_v50  ;;  %v1843_v21 = vcombine.low %v1839_v19, %v1840_v8 }
 0x436   : > { %v1882_v15 = vmul.f32 %v1880_v49, %v3023_v41  ;;  %v1883_v23 = vmul.f32 %v1881_v62, %v3027_v51  ;;  %v2043_v44 = vpop.permute.xlu1 %2042  ;;  %v1785_v35 = vadd.f32 %v1783_v42, %v1755_v5 }
 0x437   : > { %v1873_v51 = vcombine.low %v1869_v36, %v1870_v32 }
 0x438   : > { %v1887_v60 = vrot.slane %v1882_v15, %v2795_v30  ;;  %v1891_v59 = vrot.slane %v1883_v23, %v2795_v30  ;;  %v1907_v9 = vrot.slane %v1882_v15, %v2834_v46  ;;  %v1911_v47 = vrot.slane %v1883_v23, %v2834_v46  ;;  %v3473_v6 = vpop.permute.xlu0 %2070 }
 0x439   : > { %v1815_v48 = vadd.f32 %v1813_v33, %v1785_v35  ;;  %v1927_v1 = vrot.slane %v1882_v15, %v2839_v52  ;;  %v1931_v41 = vrot.slane %v1883_v23, %v2839_v52  ;;  %v1947_v18 = vrot.slane %v1882_v15, %v2842_v54 }
 0x43a   : > { %v1897_v56 = vmul.f32 %v3372_v39, %v1887_v60  ;;  %v1898_v12 = vmul.f32 %v3372_v39, %v1891_v59  ;;  %v2053_v26 = vpop.permute.xlu1 %2052  ;;  %v1917_v0 = vmul.f32 %v3396_v61, %v1907_v9  ;;  %v1918_v29 = vmul.f32 %v3396_v61, %v1911_v47 }
 0x43b   : > { %v1845_v55 = vadd.f32 %v1843_v21, %v1815_v48  ;;  %v1951_v25 = vrot.slane %v1883_v23, %v2842_v54  ;;  %v1937_v43 = vmul.f32 %v3405_v3, %v1927_v1  ;;  %v1938_v11 = vmul.f32 %v3405_v3, %v1931_v41 }
 0x43c   : > { %v1901_v40 = vcombine.low %v1897_v56, %v1898_v12  ;;  %v1967_v16 = vpop.permute.xlu0 %1966  ;;  %v1957_v17 = vmul.f32 %v3414_v4, %v1947_v18  ;;  %v1921_v7 = vcombine.low %v1917_v0, %v1918_v29 }
 0x43d   : > { %v1875_v57 = vadd.f32 %v1873_v51, %v1845_v55  ;;  %v1968_v39 = vsel %vm1009_vm6, %v3435_v45, %v1967_v16  ;;  %v1958_v28 = vmul.f32 %v3414_v4, %v1951_v25  ;;  %v1969_v61 = vsel %vm1009_vm6, %v1967_v16, %v3435_v45 }
 0x43e   : > { %v1970_v37 = vmul.f32 %v1968_v39, %v3057_v58  ;;  %v1971_v3 = vmul.f32 %v1969_v61, %v3061_v20  ;;  %v2091_v42 = vpop.permute.xlu1 %2090  ;;  %v1941_v19 = vcombine.low %v1937_v43, %v1938_v11 }
 0x43f   : > { %v1903_v38 = vadd.f32 %v1901_v40, %v1875_v57  ;;  %v1961_v49 = vcombine.low %v1957_v17, %v1958_v28 }
 0x440   : > { %v1975_v14 = vrot.slane %v1970_v37, %v2795_v30  ;;  %v1995_v50 = vrot.slane %v1970_v37, %v2834_v46  ;;  %v2015_v10 = vrot.slane %v1970_v37, %v2839_v52  ;;  %v2111_v8 = vpop.permute.xlu0 %2110  ;;  %v1979_v5 = vrot.slane %v1971_v3, %v2795_v30 }
 0x441   : > { %v1923_v4 = vadd.f32 %v1921_v7, %v1903_v38  ;;  %v1999_v45 = vrot.slane %v1971_v3, %v2834_v46  ;;  %v2019_v58 = vrot.slane %v1971_v3, %v2839_v52  ;;  %v2035_v20 = vrot.slane %v1970_v37, %v2842_v54 }
 0x442   : > { %v1985_v62 = vmul.f32 %v3425_v53, %v1975_v14  ;;  %v2039_v36 = vrot.slane %v1971_v3, %v2842_v54  ;;  %v1986_v15 = vmul.f32 %v3425_v53, %v1979_v5  ;;  %v2005_v23 = vmul.f32 %v3451_v24, %v1995_v50  ;;  %v2131_v21 = vpop.permute.xlu1 %2130 }
 0x443   : > { %v1943_v32 = vadd.f32 %v1941_v19, %v1923_v4  ;;  %v2006_v33 = vmul.f32 %v3451_v24, %v1999_v45  ;;  %v2025_v35 = vmul.f32 %v3445_v63, %v2015_v10  ;;  %v2026_v60 = vmul.f32 %v3445_v63, %v2019_v58 }
 0x444   : > { %v2055_v59 = vpop.permute.xlu0 %2054  ;;  %v1989_v47 = vcombine.low %v1985_v62, %v1986_v15  ;;  %v2045_v48 = vmul.f32 %v2043_v44, %v2035_v20  ;;  %v2046_v1 = vmul.f32 %v2043_v44, %v2039_v36 }
 0x445   : > { %v1963_v9 = vadd.f32 %v1961_v49, %v1943_v32  ;;  %v2056_v41 = vsel %vm1106_vm7, %v2053_v26, %v2055_v59  ;;  %v2057_v53 = vsel %vm1106_vm7, %v2055_v59, %v2053_v26  ;;  %v2009_v56 = vcombine.low %v2005_v23, %v2006_v33 }
 0x446   : > { %v2058_v24 = vmul.f32 %v2056_v41, %v3086_v13  ;;  %v2059_v12 = vmul.f32 %v2057_v53, %v3090_v27  ;;  %v2029_v18 = vcombine.low %v2025_v35, %v2026_v60  ;;  %v2049_v11 = vcombine.low %v2045_v48, %v2046_v1  ;;  %v2141_v57 = vpop.permute.xlu1 %2140 }
 0x447   : > { %v1991_v51 = vadd.f32 %v1989_v47, %v1963_v9 }
 0x448   : > { %v2159_v63 = vpop.permute.xlu0 %2158  ;;  %v2063_v0 = vrot.slane %v2058_v24, %v2795_v30  ;;  %v2067_v29 = vrot.slane %v2059_v12, %v2795_v30  ;;  %v2083_v44 = vrot.slane %v2058_v24, %v2834_v46  ;;  %v2087_v25 = vrot.slane %v2059_v12, %v2834_v46 }
 0x449   : > { %v2011_v55 = vadd.f32 %v2009_v56, %v1991_v51  ;;  %v2103_v40 = vrot.slane %v2058_v24, %v2839_v52  ;;  %v2107_v26 = vrot.slane %v2059_v12, %v2839_v52  ;;  %v2123_v43 = vrot.slane %v2058_v24, %v2842_v54 }
 0x44a   : > { %v2073_v27 = vmul.f32 %v3473_v6, %v2063_v0  ;;  %v2074_v16 = vmul.f32 %v3473_v6, %v2067_v29  ;;  %v2093_v39 = vmul.f32 %v2091_v42, %v2083_v44  ;;  %v2094_v17 = vmul.f32 %v2091_v42, %v2087_v25  ;;  %v2179_v45 = vpop.permute.xlu1 %2178  ;;  %v285_v29 = vld [vmem:[%s3606_s6 + $0x10] sm:$0xf] }
 0x44b   : > { %v2031_v13 = vadd.f32 %v2029_v18, %v2011_v55  ;;  %v2127_v28 = vrot.slane %v2059_v12, %v2842_v54  ;;  %v2113_v7 = vmul.f32 %v2111_v8, %v2103_v40  ;;  %v2114_v19 = vmul.f32 %v2111_v8, %v2107_v26 }
 0x44c   : > { %v2143_v61 = vpop.permute.xlu0 %2142  ;;  %v2077_v38 = vcombine.low %v2073_v27, %v2074_v16  ;;  %v2133_v14 = vmul.f32 %v2131_v21, %v2123_v43  ;;  %v2097_v5 = vcombine.low %v2093_v39, %v2094_v17 }
 0x44d   : > { %v2051_v37 = vadd.f32 %v2049_v11, %v2031_v13  ;;  %v2144_v3 = vsel %vm1203_vm8, %v2141_v57, %v2143_v61  ;;  %v2134_v50 = vmul.f32 %v2131_v21, %v2127_v28  ;;  %v2145_v10 = vsel %vm1203_vm8, %v2143_v61, %v2141_v57  ;;  %v286_v57 = vld [vmem:[%s3606_s6 + $0x14] sm:$0xf] }
 0x44e   : > { %v2146_v6 = vmul.f32 %v3126_v34, %v2144_v3  ;;  %v2147_v42 = vmul.f32 %v3131_v2, %v2145_v10  ;;  %v2117_v20 = vcombine.low %v2113_v7, %v2114_v19  ;;  %v2219_v48 = vpop.permute.xlu1 %2218 }
 0x44f   : > { %v2079_v4 = vadd.f32 %v2077_v38, %v2051_v37  ;;  %v2137_v32 = vcombine.low %v2133_v14, %v2134_v50 }
 0x450   : > { %v2151_v58 = vrot.slane %v2146_v6, %v2795_v30  ;;  %v2155_v49 = vrot.slane %v2147_v42, %v2795_v30  ;;  %v2171_v62 = vrot.slane %v2146_v6, %v2834_v46  ;;  %v2175_v8 = vrot.slane %v2147_v42, %v2834_v46  ;;  %v2199_v33 = vpop.permute.xlu0 %2198 }
 0x451   : > { %v2099_v36 = vadd.f32 %v2097_v5, %v2079_v4  ;;  %v2191_v31 = vrot.slane %v2146_v6, %v2839_v52  ;;  %v2211_v34 = vrot.slane %v2146_v6, %v2842_v54  ;;  %v2215_v2 = vrot.slane %v2147_v42, %v2842_v54 }
 0x452   : > { %v2161_v15 = vmul.f32 %v2159_v63, %v2151_v58  ;;  %v2162_v23 = vmul.f32 %v2159_v63, %v2155_v49  ;;  %v2181_v60 = vmul.f32 %v2179_v45, %v2171_v62  ;;  %v2182_v59 = vmul.f32 %v2179_v45, %v2175_v8 }
 0x453   : > { %v2119_v35 = vadd.f32 %v2117_v20, %v2099_v36  ;;  %v2195_v30 = vrot.slane %v2147_v42, %v2839_v52  ;;  %v2201_v46 = vmul.f32 %v2199_v33, %v2191_v31  ;;  %v2221_v1 = vmul.f32 %v2219_v48, %v2211_v34 }
 0x454   : > { %v2165_v9 = vcombine.low %v2161_v15, %v2162_v23  ;;  %v2222_v41 = vmul.f32 %v2219_v48, %v2215_v2  ;;  %v2185_v51 = vcombine.low %v2181_v60, %v2182_v59 }
 0x455   : > { %v2139_v47 = vadd.f32 %v2137_v32, %v2119_v35  ;;  %v2202_v21 = vmul.f32 %v2199_v33, %v2195_v30 }
 0x456   : > { %v2225_v12 = vcombine.low %v2221_v1, %v2222_v41 }
 0x457   : > { %v2167_v53 = vadd.f32 %v2165_v9, %v2139_v47  ;;  %v2205_v24 = vcombine.low %v2201_v46, %v2202_v21 }
 0x459   : > { %v2187_v56 = vadd.f32 %v2185_v51, %v2167_v53 }
 0x45b   : > { %v2207_v18 = vadd.f32 %v2205_v24, %v2187_v56 }
 0x45d   : > { %v2227_v54 = vadd.f32 %v2225_v12, %v2207_v18 }
 0x45f   : > { %v2229_v63 = vcombine.high %v2227_v54, %v2227_v54  ;;  %v2231_v55 = vsel %vm291_vm0, %v2227_v54, 0.0 }
 0x461   : > { %v2232_v0 = vsel %vm291_vm0, %v2229_v63, 0.0 }
 0x462   : > { %v2233_v52 = vadd.f32 %v2232_v0, %v2231_v55 }
 0x464   : > { %2234 = vadd.xlane.f32.xlu0 %v2233_v52 }
 0x47a   : > { %2271 = vperm.xlu0 %2436, %v285_v29  }
 0x4f1   : > { %v2235_v44 = vpop.xlane.xlu0 %2234 }
 0x4f2   : > { %v2236_v25 = vmul.f32 0.00390625, %v2235_v44 }
 0x4f4   : > { %v2244_v40 = vrot.slane %v2236_v25, %v2651_v22 }
 0x4f6   : > { %v2246_v26 = vsub.f32 %v2227_v54, %v2244_v40 }
 0x4f8   : > { %v2247_v43 = vmul.f32 %v2246_v26, %v2246_v26 }
 0x4f9   : > { %v2272_v37 = vpop.permute.xlu0 %2271 }
 0x4fa   : > { %v2249_v13 = vcombine.high %v2247_v43, %v2247_v43  ;;  %v2251_v11 = vsel %vm291_vm0, %v2247_v43, 0.0  ;;  %v2279_v3 = vrot.slane %v2272_v37, %v2651_v22 }
 0x4fc   : > { %v2252_v27 = vsel %vm291_vm0, %v2249_v13, 0.0 }
 0x4fd   : > { %v2253_v16 = vadd.f32 %v2252_v27, %v2251_v11 }
 0x4ff   : > { %2254 = vadd.xlane.f32.xlu1 %v2253_v16 }
 0x510   : > { %2284 = vperm.xlu1 %2435, %v286_v57  }
 0x58c   : > { %v2255_v39 = vpop.xlane.xlu1 %2254 }
 0x58d   : > { %v2256_v17 = vmul.f32 0.00390625, %v2255_v39 }
 0x58f   : > { %v2257_v28 = vadd.f32 1e-05, %v2256_v17 }
 0x590   : > { %v2285_v7 = vpop.permute.xlu1 %2284 }
 0x591   : > { %2442 = vrsqrt.f32 %v2257_v28  ;;  %v2292_v50 = vrot.slane %v2285_v7, %v2651_v22 }
 0x59b   : > { %v2443_v61 = vpop.eup %2442 }
 0x59c   : > { %v2266_v38 = vrot.slane %v2443_v61, %v2651_v22 }
 0x59e   : > { %v2268_v19 = vmul.f32 %v2266_v38, %v2246_v26 }
 0x5a0   : > { %v2281_v14 = vmul.f32 %v2279_v3, %v2268_v19 }
 0x5a2   : > { %v2294_v10 = vadd.f32 %v2292_v50, %v2281_v14 }
 0x5a4   : > { %2295 = vst [vmem:[%s271_s15] sm:$0xff] %v2294_v10 }
 0x5a5   : > { %2457 = shalt.err (!%p2454_p3)
}
 0x5a6   : > { %s2458_s29 = scalar_lea.hbm %s3558_s21, 128  ;;  %s2462_s19 = scalar_lea.hbm %s3607_s7, 256 }
 0x5a7   : > { %p2459_p4 = scmp.ne.s32.totalorder %s3558_s21, %s2458_s29  ;;  %p2463_p9 = scmp.lt.u32.totalorder %s3558_s21, %s3607_s7 }
 0x5a8   : > { %p2464_p10 = scmp.lt.u32.totalorder %s2462_s19, %s2458_s29  ;;  %p2466_p12 = scmp.lt.u32.totalorder %s2458_s29, %s3558_s21 }
 0x5a9   : > { %p2460_p7 = pnand %p2459_p4, %p2597_p5 }
 0x5aa   : > { %p2465_p11 = por %p2464_p10, %p2463_p9 }
 0x5ab   : > { %p2461_p8 = pneg %p2460_p7 }
 0x5ac   : > { %p2467_p13 = por %p2466_p12, %p2465_p11 }
 0x5ae   : > { %p2468_p0 = pnand %p2467_p13, %p2461_p8 }
 0x5b0   : > { %2471 = shalt.err (!%p2468_p0)
}
 0x5b1   : > { %2386 = dma.vmem_to_hbm [thread:$0]  (%p2597_p5), %s3560_s20, 128, %s3558_s21, %s2297_s9  }
 0x5b2 PF: > { %p2392_p1 = scmp.ge.s32.totalorder %s2506_s27, 2  ;;  %s2323_s8 = sand.u32 1, %s2494_s24  }
 0x5b3   : > { %s2324_s13 = scalar_lea.sflag [#allocation3], %s2323_s8 }
 0x5b4   : > { %p2389_p2 = pnand %p2392_p1, %p2601_p6 }
 0x5b6   : > { %2489 = dma.done.wait (!%p2389_p2), %s2324_s13, 128  }
 0x5b7   : > { %2491 = vsyncadd (!%p2389_p2), %s2324_s13, 4294967168  ;;  %p17_p3 = scmp.ge.s32.totalorder %s2584_s30, 4   ;;  %s3627_s24 = smov %s2498_s25 }
 0x5b8   : > { %s3628_s25 = smov %s2502_s26  ;;  %s3629_s26 = smov %s2595_s10 }
 0x5b9   : > { %s3630_s27 = smov %s2584_s30  ;;  %19 = sbr.rel (!%p17_p3) target bundleno = 3 (0x3), region = 83 }
 0x5c0   :  { %2329 = vsyncpa [#allocation3], 1 }
 0x5c1   :  { %2331 = vsyncpa [#allocation3 + $0x1], 1 }

</bundles_post_ra>
